<compile_context>
chip_gen: v7x
topology: tpu7x:2x2x1
jax: 0.10.0
libtpu: 0.0.40
codegen_flags: <defaults>
</compile_context>

<pallas_src>
import functools
import numpy as np
import jax
import jax.numpy as jnp
from jax import lax
from jax.experimental import pallas as pl
from jax.experimental.pallas import tpu as pltpu


def _round_up(x, m):
    return ((x + m - 1) // m) * m


def _vmem_limit_bytes():
    """~48 MiB on v7x (64 MiB physical), capped at 100 MiB on v5e/v6e (128 MiB)."""
    try:
        cap = int(getattr(pltpu.get_tpu_info(), "vmem_capacity_bytes",
                          128 * 1024 * 1024))
    except Exception:
        cap = 128 * 1024 * 1024
    return int(min(max(cap - 16 * 1024 * 1024, 16 * 1024 * 1024),
                   100 * 1024 * 1024))


# -----------------------------------------------------------------------------
# Fused per-layer kernel: input projection + bidirectional recurrence (+ head)
# -----------------------------------------------------------------------------
def _bilstm_layer_kernel(len_ref, x_ref, w_in_ref, b_ref, wh_f_ref, wh_b_ref,
                         *rest, T, Hp, is_last, rec_unroll):
    """One bidirectional LSTM layer over one batch tile.

    len_ref : [Bt, 1]        int32   sequence lengths (>= 1)
    x_ref   : [T, Bt, Din]   bf16    layer input (time-major)
    w_in_ref: [Din, 8Hp]     bf16    input weights, direction-major (i,f,g,o | i,f,g,o)
    b_ref   : [1, 8Hp]       f32     b_ih + b_hh, same column layout
    wh_*_ref: [Hp, 4Hp]      bf16    recurrent weights per direction
    rest (is_last=False): y_ref [T, Bt, 2Hp] bf16 output, 2x gin scratch
    rest (is_last=True) : w_lin_f/w_lin_b [Hp, Cp] f32, b_lin [1, Cp] f32,
                          logits_ref [Bt, Cp] f32 output, 2x gin scratch
    """
    if is_last:
        wlf_ref, wlb_ref, bl_ref, out_ref, ginf_sc, ginb_sc = rest
    else:
        out_ref, ginf_sc, ginb_sc = rest

    Bt = x_ref.shape[1]
    Hp4 = 4 * Hp
    lens = len_ref[...]                                        # [Bt, 1] int32

    # ---- Phase 1: input projection (bf16 MXU, f32 acc), off the serial path. ----
    # gates_in[t] = x[t] @ W_in + bias, stored per-direction in bf16 VMEM scratch.
    def proj_step(t, carry):
        g = (jnp.dot(x_ref[t], w_in_ref[...],
                     preferred_element_type=jnp.float32) + b_ref[...])   # [Bt, 8Hp]
        ginf_sc[t] = g[:, :Hp4].astype(ginf_sc.dtype)
        ginb_sc[t] = g[:, Hp4:].astype(ginb_sc.dtype)
        return carry

    lax.fori_loop(0, T, proj_step, 0, unroll=(True if T <= 16 else 4))

    # ---- Phase 2: recurrence; h/c and backward-last carried in vregs. ----
    zeros = jnp.zeros((Bt, Hp), jnp.float32)

    def step(t, carry):
        h_f, c_f, h_b, c_b, last_b = carry
        t_f = t                      # forward time index
        t_b = T - 1 - t              # backward time index (same iteration)

        g_f = (jnp.dot(h_f.astype(jnp.bfloat16), wh_f_ref[...],
                       preferred_element_type=jnp.float32)
               + ginf_sc[t_f].astype(jnp.float32))             # [Bt, 4Hp]
        g_b = (jnp.dot(h_b.astype(jnp.bfloat16), wh_b_ref[...],
                       preferred_element_type=jnp.float32)
               + ginb_sc[t_b].astype(jnp.float32))

        i_f = jax.nn.sigmoid(g_f[:, 0:Hp])
        f_f = jax.nn.sigmoid(g_f[:, Hp:2 * Hp])
        u_f = jnp.tanh(g_f[:, 2 * Hp:3 * Hp])
        o_f = jax.nn.sigmoid(g_f[:, 3 * Hp:4 * Hp])
        i_b = jax.nn.sigmoid(g_b[:, 0:Hp])
        f_b = jax.nn.sigmoid(g_b[:, Hp:2 * Hp])
        u_b = jnp.tanh(g_b[:, 2 * Hp:3 * Hp])
        o_b = jax.nn.sigmoid(g_b[:, 3 * Hp:4 * Hp])

        c_f_new = f_f * c_f + i_f * u_f
        c_b_new = f_b * c_b + i_b * u_b
        h_f_new = o_f * jnp.tanh(c_f_new)
        h_b_new = o_b * jnp.tanh(c_b_new)

        valid_f = t_f < lens                                   # [Bt, 1] bool
        valid_b = t_b < lens
        h_f2 = jnp.where(valid_f, h_f_new, h_f)
        c_f2 = jnp.where(valid_f, c_f_new, c_f)
        h_b2 = jnp.where(valid_b, h_b_new, h_b)
        c_b2 = jnp.where(valid_b, c_b_new, c_b)

        # Backward feature at t = length-1 (its first valid step), kept as a carry.
        last_b2 = jnp.where(t_b == lens - 1, h_b2, last_b)

        if not is_last:
            # Padded positions emit exactly 0 (packed-sequence semantics).
            out_ref[t_f, :, 0:Hp] = jnp.where(valid_f, h_f2, 0.0).astype(out_ref.dtype)
            out_ref[t_b, :, Hp:2 * Hp] = jnp.where(valid_b, h_b2, 0.0).astype(out_ref.dtype)

        return h_f2, c_f2, h_b2, c_b2, last_b2

    h_f, _, _, _, last_b = lax.fori_loop(
        0, T, step, (zeros, zeros, zeros, zeros, zeros), unroll=rec_unroll)

    if is_last:
        # Classifier head fused into the epilogue: logits = [h_f | last_b] @ W + b.
        # (forward last-timestep output == final frozen forward hidden state)
        out_ref[...] = (jnp.dot(h_f, wlf_ref[...], preferred_element_type=jnp.float32)
                        + jnp.dot(last_b, wlb_ref[...], preferred_element_type=jnp.float32)
                        + bl_ref[...])


# -----------------------------------------------------------------------------
# Wrapper
# -----------------------------------------------------------------------------
def _pick_bt(Bp):
    """Batch tile (Bp is a multiple of 8): fill MXU rows up to 128; split above
    (gives >= 2 'parallel' grid steps for v7x megacore on large batches)."""
    if Bp <= 128:
        return Bp
    for bt in (128, 64, 32, 16, 8):
        if Bp % bt == 0:
            return bt
    return 8


def _bilstm_layer(x_tbd, lens2d, lp, head=None, *, Hp):
    """x_tbd: [T, Bp, Din] bf16 -> y [T, Bp, 2Hp] bf16, or logits [Bp, Cp] if head."""
    T, Bp, Din = x_tbd.shape
    Hp4, Hp8 = 4 * Hp, 8 * Hp
    is_last = head is not None
    Bt = _pick_bt(Bp)
    nb = Bp // Bt
    rec_unroll = True if T <= 8 else 2          # keep vreg pressure low for long T

    kernel = functools.partial(_bilstm_layer_kernel, T=T, Hp=Hp,
                               is_last=is_last, rec_unroll=rec_unroll)

    rep = lambda b: (0, 0)                      # replicated weight blocks
    in_specs = [pl.BlockSpec((Bt, 1), lambda b: (b, 0)),
                pl.BlockSpec((T, Bt, Din), lambda b: (0, b, 0)),
                pl.BlockSpec((Din, Hp8), rep),
                pl.BlockSpec((1, Hp8), rep),
                pl.BlockSpec((Hp, Hp4), rep),
                pl.BlockSpec((Hp, Hp4), rep)]
    args = [lens2d, x_tbd, lp["w_in"], lp["bias"], lp["wh_f"], lp["wh_b"]]

    if is_last:
        Cp = head["w_lin_f"].shape[1]
        in_specs += [pl.BlockSpec((Hp, Cp), rep),
                     pl.BlockSpec((Hp, Cp), rep),
                     pl.BlockSpec((1, Cp), rep)]
        args += [head["w_lin_f"], head["w_lin_b"], head["b_lin"]]
        out_shape = jax.ShapeDtypeStruct((Bp, Cp), jnp.float32)
        out_specs = pl.BlockSpec((Bt, Cp), lambda b: (b, 0))
    else:
        out_shape = jax.ShapeDtypeStruct((T, Bp, 2 * Hp), jnp.bfloat16)
        out_specs = pl.BlockSpec((T, Bt, 2 * Hp), lambda b: (0, b, 0))

    return pl.pallas_call(
        kernel,
        out_shape=out_shape,
        grid=(nb,),
        in_specs=in_specs,
        out_specs=out_specs,
        scratch_shapes=[pltpu.VMEM((T, Bt, Hp4), jnp.bfloat16),   # gates_in fwd
                        pltpu.VMEM((T, Bt, Hp4), jnp.bfloat16)],  # gates_in bwd
        compiler_params=pltpu.CompilerParams(
            dimension_semantics=("parallel",),
            vmem_limit_bytes=_vmem_limit_bytes()),
    )(*args)


def text_rnn_forward(packed, input_data, seq_lengths):
    """input_data: [B, T, E] f32, seq_lengths: [B] int32 (>= 1) -> logits [B, C]."""
    B, T, _ = input_data.shape
    Hp = packed["Hp"]
    C = packed["num_classes"]
    Bp = _round_up(max(B, 8), 8)                 # sublane-aligned batch

    # Layer-0 input cast to bf16 up front (halves the HBM->VMEM DMA bytes).
    x_tbd = jnp.transpose(input_data.astype(jnp.bfloat16), (1, 0, 2))  # [T, B, E]
    lens = seq_lengths.astype(jnp.int32)
    if Bp != B:
        x_tbd = jnp.pad(x_tbd, ((0, 0), (0, Bp - B), (0, 0)))
        lens = jnp.pad(lens, (0, Bp - B), constant_values=1)
    lens2d = lens.reshape(Bp, 1)

    n_layers = len(packed["layers"])
    for li, lp in enumerate(packed["layers"]):
        head = packed["head"] if li == n_layers - 1 else None
        x_tbd = _bilstm_layer(x_tbd, lens2d, lp, head=head, Hp=Hp)

    # NOTE: self.softmax is defined in the PyTorch module but never applied in forward.
    logits_p = x_tbd                              # [Bp, Cp] from the last-layer kernel
    return logits_p[:B, :C]


# -----------------------------------------------------------------------------
# Parameter init (PyTorch nn.LSTM / nn.Linear shapes & init ranges) + packing
# -----------------------------------------------------------------------------
def init_params(key, embedding_size, hidden_size, num_layers, num_classes):
    H = hidden_size
    Hp = _round_up(H, 128)                        # lane-pad hidden size
    Cp = _round_up(num_classes, 128)
    Hp4, Hp8 = 4 * Hp, 8 * Hp

    raw_layers, packed_layers = [], []
    d_in = embedding_size
    for layer in range(num_layers):
        kscale = 1.0 / np.sqrt(H)
        raw = {}
        for d in ("f", "b"):
            key, k1, k2, k3, k4 = jax.random.split(key, 5)
            raw["w_ih_" + d] = jax.random.uniform(k1, (4 * H, d_in), jnp.float32, -kscale, kscale)
            raw["w_hh_" + d] = jax.random.uniform(k2, (4 * H, H), jnp.float32, -kscale, kscale)
            raw["b_ih_" + d] = jax.random.uniform(k3, (4 * H,), jnp.float32, -kscale, kscale)
            raw["b_hh_" + d] = jax.random.uniform(k4, (4 * H,), jnp.float32, -kscale, kscale)
        raw_layers.append(raw)

        # Pack into lane-padded, direction-major / gate-minor column layout.
        first = (layer == 0)
        din_p = d_in if first else 2 * Hp
        row_map = (np.arange(d_in) if first
                   else np.concatenate([np.arange(H), np.arange(Hp, Hp + H)]))
        w_in = np.zeros((din_p, Hp8), np.float32)
        bias = np.zeros((1, Hp8), np.float32)
        wh = {"f": np.zeros((Hp, Hp4), np.float32),
              "b": np.zeros((Hp, Hp4), np.float32)}
        for di, d in enumerate(("f", "b")):
            wiT = np.asarray(raw["w_ih_" + d]).T            # [d_in, 4H]
            whT = np.asarray(raw["w_hh_" + d]).T            # [H, 4H]
            bsum = np.asarray(raw["b_ih_" + d]) + np.asarray(raw["b_hh_" + d])
            for g in range(4):                              # gate order: i, f, g, o
                col0 = di * Hp4 + g * Hp
                w_in[row_map, col0:col0 + H] = wiT[:, g * H:(g + 1) * H]
                bias[0, col0:col0 + H] = bsum[g * H:(g + 1) * H]
                wh[d][0:H, g * Hp:g * Hp + H] = whT[:, g * H:(g + 1) * H]
        packed_layers.append({"w_in": jnp.asarray(w_in, jnp.bfloat16),
                              "bias": jnp.asarray(bias, jnp.float32),
                              "wh_f": jnp.asarray(wh["f"], jnp.bfloat16),
                              "wh_b": jnp.asarray(wh["b"], jnp.bfloat16)})
        d_in = 2 * H

    kl = 1.0 / np.sqrt(2 * H)
    key, k1, k2 = jax.random.split(key, 3)
    w_lin = jax.random.uniform(k1, (num_classes, 2 * H), jnp.float32, -kl, kl)
    b_lin = jax.random.uniform(k2, (num_classes,), jnp.float32, -kl, kl)
    wlT = np.asarray(w_lin).T                               # [2H, C]
    w_lin_f = np.zeros((Hp, Cp), np.float32)
    w_lin_b = np.zeros((Hp, Cp), np.float32)
    w_lin_f[0:H, 0:num_classes] = wlT[0:H]
    w_lin_b[0:H, 0:num_classes] = wlT[H:2 * H]
    b_lin_p = np.zeros((1, Cp), np.float32)
    b_lin_p[0, 0:num_classes] = np.asarray(b_lin)

    raw_params = {"layers": raw_layers, "w_lin": w_lin, "b_lin": b_lin}
    packed_params = {"layers": packed_layers,
                     "head": {"w_lin_f": jnp.asarray(w_lin_f),
                              "w_lin_b": jnp.asarray(w_lin_b),
                              "b_lin": jnp.asarray(b_lin_p)},
                     "Hp": Hp, "H": H, "num_classes": num_classes}
    return packed_params, raw_params


# -----------------------------------------------------------------------------
# Pure-JAX reference (same packed-LSTM semantics, mirrors the kernel's bf16 rounding)
# -----------------------------------------------------------------------------
def _bf16(a):
    return a.astype(jnp.bfloat16).astype(jnp.float32)


def ref_forward(raw, input_data, seq_lengths, hidden_size):
    B, T, _ = input_data.shape
    H = hidden_size
    lens = seq_lengths.astype(jnp.int32)
    x = _bf16(input_data.astype(jnp.float32))               # mirror bf16 input cast
    y_f32 = None
    for rl in raw["layers"]:
        wiT_f, whT_f = rl["w_ih_f"].T, rl["w_hh_f"].T
        wiT_b, whT_b = rl["w_ih_b"].T, rl["w_hh_b"].T
        b_f = rl["b_ih_f"] + rl["b_hh_f"]
        b_b = rl["b_ih_b"] + rl["b_hh_b"]
        # bf16 MXU projection + bf16 gates_in storage (mirrors the kernel scratch).
        gin_f = _bf16(jnp.einsum("btd,dg->btg", x, _bf16(wiT_f)) + b_f)
        gin_b = _bf16(jnp.einsum("btd,dg->btg", x, _bf16(wiT_b)) + b_b)

        def cell(g_in, h, c, whT):
            gates = _bf16(h) @ _bf16(whT) + g_in
            i = jax.nn.sigmoid(gates[:, 0 * H:1 * H])
            f = jax.nn.sigmoid(gates[:, 1 * H:2 * H])
            g = jnp.tanh(gates[:, 2 * H:3 * H])
            o = jax.nn.sigmoid(gates[:, 3 * H:4 * H])
            c2 = f * c + i * g
            return o * jnp.tanh(c2), c2

        h = jnp.zeros((B, H)); c = jnp.zeros((B, H)); yf = []
        for t in range(T):
            hn, cn = cell(gin_f[:, t], h, c, whT_f)
            v = (t < lens)[:, None]
            h = jnp.where(v, hn, h); c = jnp.where(v, cn, c)
            yf.append(jnp.where(v, h, 0.0))
        h = jnp.zeros((B, H)); c = jnp.zeros((B, H)); yb = [None] * T
        for t in range(T - 1, -1, -1):
            hn, cn = cell(gin_b[:, t], h, c, whT_b)
            v = (t < lens)[:, None]
            h = jnp.where(v, hn, h); c = jnp.where(v, cn, c)
            yb[t] = jnp.where(v, h, 0.0)
        y_f32 = jnp.concatenate([jnp.stack(yf, 1), jnp.stack(yb, 1)], -1)  # [B,T,2H]
        x = _bf16(y_f32)                                    # mirror bf16 layer handoff
    last = y_f32[jnp.arange(B), lens - 1, :]
    return last @ raw["w_lin"].T + raw["b_lin"]


# -----------------------------------------------------------------------------
if __name__ == "__main__":
    embedding_size = 16
    hidden_size = 32
    num_layers = 1
    num_classes = 5
    B, T = 2, 8

    key = jax.random.PRNGKey(0)
    key, kp, kx = jax.random.split(key, 3)
    packed, raw = init_params(kp, embedding_size, hidden_size, num_layers, num_classes)

    input_data = jax.random.normal(kx, (B, T, embedding_size), jnp.float32)
    seq_lengths = jnp.array([8, 5], dtype=jnp.int32)        # lengths must be >= 1

    logits = text_rnn_forward(packed, input_data, seq_lengths)
    logits = jax.block_until_ready(logits)

    ref = ref_forward(raw, input_data, seq_lengths, hidden_size)
    assert logits.shape == (B, num_classes)
    err = float(np.max(np.abs(np.asarray(logits) - np.asarray(ref))))
    assert np.allclose(np.asarray(logits), np.asarray(ref), atol=1e-2, rtol=1e-2), err

    print("KERNEL_OK")
</pallas_src>

<mosaic_0001>
module attributes {stable_mosaic.version = 11 : i64} {
  func.func @_bilstm_layer_kernel(%arg0: i32, %arg1: memref<8x1xi32, #tpu.memory_space<vmem>>, %arg2: memref<8x8x16xbf16, #tpu.memory_space<vmem>>, %arg3: memref<16x1024xbf16, #tpu.memory_space<vmem>>, %arg4: memref<1x1024xf32, #tpu.memory_space<vmem>>, %arg5: memref<128x512xbf16, #tpu.memory_space<vmem>>, %arg6: memref<128x512xbf16, #tpu.memory_space<vmem>>, %arg7: memref<128x128xf32, #tpu.memory_space<vmem>>, %arg8: memref<128x128xf32, #tpu.memory_space<vmem>>, %arg9: memref<1x128xf32, #tpu.memory_space<vmem>>, %arg10: memref<8x128xf32, #tpu.memory_space<vmem>>, %arg11: memref<8x8x512xbf16, #tpu.memory_space<vmem>>, %arg12: memref<8x8x512xbf16, #tpu.memory_space<vmem>>) attributes {dimension_semantics = [#tpu.dimension_semantics<parallel>], iteration_bounds = array<i64: 1>, scalar_prefetch = 0 : i64, scratch_operands = 2 : i64, tpu.core_type = #tpu.core_type<tc>, window_params = [{transform_indices = @transform_0, window_bounds = array<i64: 8, 1>}, {transform_indices = @transform_1, window_bounds = array<i64: 8, 8, 16>}, {pipeline_mode = #tpu.pipeline_mode<synchronous>, transform_indices = @transform_2, window_bounds = array<i64: 16, 1024>}, {pipeline_mode = #tpu.pipeline_mode<synchronous>, transform_indices = @transform_3, window_bounds = array<i64: 1, 1024>}, {pipeline_mode = #tpu.pipeline_mode<synchronous>, transform_indices = @transform_4, window_bounds = array<i64: 128, 512>}, {pipeline_mode = #tpu.pipeline_mode<synchronous>, transform_indices = @transform_5, window_bounds = array<i64: 128, 512>}, {pipeline_mode = #tpu.pipeline_mode<synchronous>, transform_indices = @transform_6, window_bounds = array<i64: 128, 128>}, {pipeline_mode = #tpu.pipeline_mode<synchronous>, transform_indices = @transform_7, window_bounds = array<i64: 128, 128>}, {pipeline_mode = #tpu.pipeline_mode<synchronous>, transform_indices = @transform_8, window_bounds = array<i64: 1, 128>}, {transform_indices = @transform_9, window_bounds = array<i64: 8, 128>}]} {
    %c0 = arith.constant 0 : index
    %c0_0 = arith.constant 0 : index
    %0 = vector.load %arg1[%c0, %c0_0] : memref<8x1xi32, #tpu.memory_space<vmem>>, vector<8x1xi32>
    %c0_i32 = arith.constant 0 : i32
    %1 = arith.index_cast %c0_i32 : i32 to index
    %c0_1 = arith.constant 0 : index
    %c0_2 = arith.constant 0 : index
    %2 = vector.load %arg2[%1, %c0_1, %c0_2] : memref<8x8x16xbf16, #tpu.memory_space<vmem>>, vector<1x8x16xbf16>
    %3 = vector.shape_cast %2 : vector<1x8x16xbf16> to vector<8x16xbf16>
    %c0_3 = arith.constant 0 : index
    %c0_4 = arith.constant 0 : index
    %4 = vector.load %arg3[%c0_3, %c0_4] : memref<16x1024xbf16, #tpu.memory_space<vmem>>, vector<16x1024xbf16>
    %cst = arith.constant dense<0.000000e+00> : vector<8x1024xf32>
    %5 = tpu.matmul %3, %4, %cst {dimension_numbers = #tpu.dot_dimension_numbers<[1], [0], [0], [1], [0, 0, 1, 1], [], []>} : vector<8x16xbf16>, vector<16x1024xbf16>, vector<8x1024xf32> -> vector<8x1024xf32>
    %c0_5 = arith.constant 0 : index
    %c0_6 = arith.constant 0 : index
    %6 = vector.load %arg4[%c0_5, %c0_6] : memref<1x1024xf32, #tpu.memory_space<vmem>>, vector<1x1024xf32>
    %7 = vector.broadcast %6 : vector<1x1024xf32> to vector<8x1024xf32>
    %8 = arith.addf %5, %7 : vector<8x1024xf32>
    %9 = vector.extract_strided_slice %8 {offsets = [0, 0], sizes = [8, 512], strides = [1, 1]} : vector<8x1024xf32> to vector<8x512xf32>
    %10 = arith.truncf %9 : vector<8x512xf32> to vector<8x512xbf16>
    %11 = arith.index_cast %c0_i32 : i32 to index
    %c0_7 = arith.constant 0 : index
    %c0_8 = arith.constant 0 : index
    %12 = vector.load %arg11[%11, %c0_7, %c0_8] : memref<8x8x512xbf16, #tpu.memory_space<vmem>>, vector<1x8x512xbf16>
    %13 = vector.shape_cast %12 : vector<1x8x512xbf16> to vector<8x512xbf16>
    %14 = vector.shape_cast %10 : vector<8x512xbf16> to vector<1x8x512xbf16>
    tpu.vector_store %arg11[%11, %c0_7, %c0_8], %14 {strides = array<i32>} : memref<8x8x512xbf16, #tpu.memory_space<vmem>>, vector<1x8x512xbf16>,
    %15 = vector.extract_strided_slice %8 {offsets = [0, 512], sizes = [8, 512], strides = [1, 1]} : vector<8x1024xf32> to vector<8x512xf32>
    %16 = arith.truncf %15 : vector<8x512xf32> to vector<8x512xbf16>
    %17 = arith.index_cast %c0_i32 : i32 to index
    %c0_9 = arith.constant 0 : index
    %c0_10 = arith.constant 0 : index
    %18 = vector.load %arg12[%17, %c0_9, %c0_10] : memref<8x8x512xbf16, #tpu.memory_space<vmem>>, vector<1x8x512xbf16>
    %19 = vector.shape_cast %18 : vector<1x8x512xbf16> to vector<8x512xbf16>
    %20 = vector.shape_cast %16 : vector<8x512xbf16> to vector<1x8x512xbf16>
    tpu.vector_store %arg12[%17, %c0_9, %c0_10], %20 {strides = array<i32>} : memref<8x8x512xbf16, #tpu.memory_space<vmem>>, vector<1x8x512xbf16>,
    %c1_i32 = arith.constant 1 : i32
    %21 = arith.index_cast %c1_i32 : i32 to index
    %c0_11 = arith.constant 0 : index
    %c0_12 = arith.constant 0 : index
    %22 = vector.load %arg2[%21, %c0_11, %c0_12] : memref<8x8x16xbf16, #tpu.memory_space<vmem>>, vector<1x8x16xbf16>
    %23 = vector.shape_cast %22 : vector<1x8x16xbf16> to vector<8x16xbf16>
    %c0_13 = arith.constant 0 : index
    %c0_14 = arith.constant 0 : index
    %24 = vector.load %arg3[%c0_13, %c0_14] : memref<16x1024xbf16, #tpu.memory_space<vmem>>, vector<16x1024xbf16>
    %cst_15 = arith.constant dense<0.000000e+00> : vector<8x1024xf32>
    %25 = tpu.matmul %23, %24, %cst_15 {dimension_numbers = #tpu.dot_dimension_numbers<[1], [0], [0], [1], [0, 0, 1, 1], [], []>} : vector<8x16xbf16>, vector<16x1024xbf16>, vector<8x1024xf32> -> vector<8x1024xf32>
    %c0_16 = arith.constant 0 : index
    %c0_17 = arith.constant 0 : index
    %26 = vector.load %arg4[%c0_16, %c0_17] : memref<1x1024xf32, #tpu.memory_space<vmem>>, vector<1x1024xf32>
    %27 = vector.broadcast %26 : vector<1x1024xf32> to vector<8x1024xf32>
    %28 = arith.addf %25, %27 : vector<8x1024xf32>
    %29 = vector.extract_strided_slice %28 {offsets = [0, 0], sizes = [8, 512], strides = [1, 1]} : vector<8x1024xf32> to vector<8x512xf32>
    %30 = arith.truncf %29 : vector<8x512xf32> to vector<8x512xbf16>
    %31 = arith.index_cast %c1_i32 : i32 to index
    %c0_18 = arith.constant 0 : index
    %c0_19 = arith.constant 0 : index
    %32 = vector.load %arg11[%31, %c0_18, %c0_19] : memref<8x8x512xbf16, #tpu.memory_space<vmem>>, vector<1x8x512xbf16>
    %33 = vector.shape_cast %32 : vector<1x8x512xbf16> to vector<8x512xbf16>
    %34 = vector.shape_cast %30 : vector<8x512xbf16> to vector<1x8x512xbf16>
    tpu.vector_store %arg11[%31, %c0_18, %c0_19], %34 {strides = array<i32>} : memref<8x8x512xbf16, #tpu.memory_space<vmem>>, vector<1x8x512xbf16>,
    %35 = vector.extract_strided_slice %28 {offsets = [0, 512], sizes = [8, 512], strides = [1, 1]} : vector<8x1024xf32> to vector<8x512xf32>
    %36 = arith.truncf %35 : vector<8x512xf32> to vector<8x512xbf16>
    %37 = arith.index_cast %c1_i32 : i32 to index
    %c0_20 = arith.constant 0 : index
    %c0_21 = arith.constant 0 : index
    %38 = vector.load %arg12[%37, %c0_20, %c0_21] : memref<8x8x512xbf16, #tpu.memory_space<vmem>>, vector<1x8x512xbf16>
    %39 = vector.shape_cast %38 : vector<1x8x512xbf16> to vector<8x512xbf16>
    %40 = vector.shape_cast %36 : vector<8x512xbf16> to vector<1x8x512xbf16>
    tpu.vector_store %arg12[%37, %c0_20, %c0_21], %40 {strides = array<i32>} : memref<8x8x512xbf16, #tpu.memory_space<vmem>>, vector<1x8x512xbf16>,
    %c2_i32 = arith.constant 2 : i32
    %41 = arith.index_cast %c2_i32 : i32 to index
    %c0_22 = arith.constant 0 : index
    %c0_23 = arith.constant 0 : index
    %42 = vector.load %arg2[%41, %c0_22, %c0_23] : memref<8x8x16xbf16, #tpu.memory_space<vmem>>, vector<1x8x16xbf16>
    %43 = vector.shape_cast %42 : vector<1x8x16xbf16> to vector<8x16xbf16>
    %c0_24 = arith.constant 0 : index
    %c0_25 = arith.constant 0 : index
    %44 = vector.load %arg3[%c0_24, %c0_25] : memref<16x1024xbf16, #tpu.memory_space<vmem>>, vector<16x1024xbf16>
    %cst_26 = arith.constant dense<0.000000e+00> : vector<8x1024xf32>
    %45 = tpu.matmul %43, %44, %cst_26 {dimension_numbers = #tpu.dot_dimension_numbers<[1], [0], [0], [1], [0, 0, 1, 1], [], []>} : vector<8x16xbf16>, vector<16x1024xbf16>, vector<8x1024xf32> -> vector<8x1024xf32>
    %c0_27 = arith.constant 0 : index
    %c0_28 = arith.constant 0 : index
    %46 = vector.load %arg4[%c0_27, %c0_28] : memref<1x1024xf32, #tpu.memory_space<vmem>>, vector<1x1024xf32>
    %47 = vector.broadcast %46 : vector<1x1024xf32> to vector<8x1024xf32>
    %48 = arith.addf %45, %47 : vector<8x1024xf32>
    %49 = vector.extract_strided_slice %48 {offsets = [0, 0], sizes = [8, 512], strides = [1, 1]} : vector<8x1024xf32> to vector<8x512xf32>
    %50 = arith.truncf %49 : vector<8x512xf32> to vector<8x512xbf16>
    %51 = arith.index_cast %c2_i32 : i32 to index
    %c0_29 = arith.constant 0 : index
    %c0_30 = arith.constant 0 : index
    %52 = vector.load %arg11[%51, %c0_29, %c0_30] : memref<8x8x512xbf16, #tpu.memory_space<vmem>>, vector<1x8x512xbf16>
    %53 = vector.shape_cast %52 : vector<1x8x512xbf16> to vector<8x512xbf16>
    %54 = vector.shape_cast %50 : vector<8x512xbf16> to vector<1x8x512xbf16>
    tpu.vector_store %arg11[%51, %c0_29, %c0_30], %54 {strides = array<i32>} : memref<8x8x512xbf16, #tpu.memory_space<vmem>>, vector<1x8x512xbf16>,
    %55 = vector.extract_strided_slice %48 {offsets = [0, 512], sizes = [8, 512], strides = [1, 1]} : vector<8x1024xf32> to vector<8x512xf32>
    %56 = arith.truncf %55 : vector<8x512xf32> to vector<8x512xbf16>
    %57 = arith.index_cast %c2_i32 : i32 to index
    %c0_31 = arith.constant 0 : index
    %c0_32 = arith.constant 0 : index
    %58 = vector.load %arg12[%57, %c0_31, %c0_32] : memref<8x8x512xbf16, #tpu.memory_space<vmem>>, vector<1x8x512xbf16>
    %59 = vector.shape_cast %58 : vector<1x8x512xbf16> to vector<8x512xbf16>
    %60 = vector.shape_cast %56 : vector<8x512xbf16> to vector<1x8x512xbf16>
    tpu.vector_store %arg12[%57, %c0_31, %c0_32], %60 {strides = array<i32>} : memref<8x8x512xbf16, #tpu.memory_space<vmem>>, vector<1x8x512xbf16>,
    %c3_i32 = arith.constant 3 : i32
    %61 = arith.index_cast %c3_i32 : i32 to index
    %c0_33 = arith.constant 0 : index
    %c0_34 = arith.constant 0 : index
    %62 = vector.load %arg2[%61, %c0_33, %c0_34] : memref<8x8x16xbf16, #tpu.memory_space<vmem>>, vector<1x8x16xbf16>
    %63 = vector.shape_cast %62 : vector<1x8x16xbf16> to vector<8x16xbf16>
    %c0_35 = arith.constant 0 : index
    %c0_36 = arith.constant 0 : index
    %64 = vector.load %arg3[%c0_35, %c0_36] : memref<16x1024xbf16, #tpu.memory_space<vmem>>, vector<16x1024xbf16>
    %cst_37 = arith.constant dense<0.000000e+00> : vector<8x1024xf32>
    %65 = tpu.matmul %63, %64, %cst_37 {dimension_numbers = #tpu.dot_dimension_numbers<[1], [0], [0], [1], [0, 0, 1, 1], [], []>} : vector<8x16xbf16>, vector<16x1024xbf16>, vector<8x1024xf32> -> vector<8x1024xf32>
    %c0_38 = arith.constant 0 : index
    %c0_39 = arith.constant 0 : index
    %66 = vector.load %arg4[%c0_38, %c0_39] : memref<1x1024xf32, #tpu.memory_space<vmem>>, vector<1x1024xf32>
    %67 = vector.broadcast %66 : vector<1x1024xf32> to vector<8x1024xf32>
    %68 = arith.addf %65, %67 : vector<8x1024xf32>
    %69 = vector.extract_strided_slice %68 {offsets = [0, 0], sizes = [8, 512], strides = [1, 1]} : vector<8x1024xf32> to vector<8x512xf32>
    %70 = arith.truncf %69 : vector<8x512xf32> to vector<8x512xbf16>
    %71 = arith.index_cast %c3_i32 : i32 to index
    %c0_40 = arith.constant 0 : index
    %c0_41 = arith.constant 0 : index
    %72 = vector.load %arg11[%71, %c0_40, %c0_41] : memref<8x8x512xbf16, #tpu.memory_space<vmem>>, vector<1x8x512xbf16>
    %73 = vector.shape_cast %72 : vector<1x8x512xbf16> to vector<8x512xbf16>
    %74 = vector.shape_cast %70 : vector<8x512xbf16> to vector<1x8x512xbf16>
    tpu.vector_store %arg11[%71, %c0_40, %c0_41], %74 {strides = array<i32>} : memref<8x8x512xbf16, #tpu.memory_space<vmem>>, vector<1x8x512xbf16>,
    %75 = vector.extract_strided_slice %68 {offsets = [0, 512], sizes = [8, 512], strides = [1, 1]} : vector<8x1024xf32> to vector<8x512xf32>
    %76 = arith.truncf %75 : vector<8x512xf32> to vector<8x512xbf16>
    %77 = arith.index_cast %c3_i32 : i32 to index
    %c0_42 = arith.constant 0 : index
    %c0_43 = arith.constant 0 : index
    %78 = vector.load %arg12[%77, %c0_42, %c0_43] : memref<8x8x512xbf16, #tpu.memory_space<vmem>>, vector<1x8x512xbf16>
    %79 = vector.shape_cast %78 : vector<1x8x512xbf16> to vector<8x512xbf16>
    %80 = vector.shape_cast %76 : vector<8x512xbf16> to vector<1x8x512xbf16>
    tpu.vector_store %arg12[%77, %c0_42, %c0_43], %80 {strides = array<i32>} : memref<8x8x512xbf16, #tpu.memory_space<vmem>>, vector<1x8x512xbf16>,
    %c4_i32 = arith.constant 4 : i32
    %81 = arith.index_cast %c4_i32 : i32 to index
    %c0_44 = arith.constant 0 : index
    %c0_45 = arith.constant 0 : index
    %82 = vector.load %arg2[%81, %c0_44, %c0_45] : memref<8x8x16xbf16, #tpu.memory_space<vmem>>, vector<1x8x16xbf16>
    %83 = vector.shape_cast %82 : vector<1x8x16xbf16> to vector<8x16xbf16>
    %c0_46 = arith.constant 0 : index
    %c0_47 = arith.constant 0 : index
    %84 = vector.load %arg3[%c0_46, %c0_47] : memref<16x1024xbf16, #tpu.memory_space<vmem>>, vector<16x1024xbf16>
    %cst_48 = arith.constant dense<0.000000e+00> : vector<8x1024xf32>
    %85 = tpu.matmul %83, %84, %cst_48 {dimension_numbers = #tpu.dot_dimension_numbers<[1], [0], [0], [1], [0, 0, 1, 1], [], []>} : vector<8x16xbf16>, vector<16x1024xbf16>, vector<8x1024xf32> -> vector<8x1024xf32>
    %c0_49 = arith.constant 0 : index
    %c0_50 = arith.constant 0 : index
    %86 = vector.load %arg4[%c0_49, %c0_50] : memref<1x1024xf32, #tpu.memory_space<vmem>>, vector<1x1024xf32>
    %87 = vector.broadcast %86 : vector<1x1024xf32> to vector<8x1024xf32>
    %88 = arith.addf %85, %87 : vector<8x1024xf32>
    %89 = vector.extract_strided_slice %88 {offsets = [0, 0], sizes = [8, 512], strides = [1, 1]} : vector<8x1024xf32> to vector<8x512xf32>
    %90 = arith.truncf %89 : vector<8x512xf32> to vector<8x512xbf16>
    %91 = arith.index_cast %c4_i32 : i32 to index
    %c0_51 = arith.constant 0 : index
    %c0_52 = arith.constant 0 : index
    %92 = vector.load %arg11[%91, %c0_51, %c0_52] : memref<8x8x512xbf16, #tpu.memory_space<vmem>>, vector<1x8x512xbf16>
    %93 = vector.shape_cast %92 : vector<1x8x512xbf16> to vector<8x512xbf16>
    %94 = vector.shape_cast %90 : vector<8x512xbf16> to vector<1x8x512xbf16>
    tpu.vector_store %arg11[%91, %c0_51, %c0_52], %94 {strides = array<i32>} : memref<8x8x512xbf16, #tpu.memory_space<vmem>>, vector<1x8x512xbf16>,
    %95 = vector.extract_strided_slice %88 {offsets = [0, 512], sizes = [8, 512], strides = [1, 1]} : vector<8x1024xf32> to vector<8x512xf32>
    %96 = arith.truncf %95 : vector<8x512xf32> to vector<8x512xbf16>
    %97 = arith.index_cast %c4_i32 : i32 to index
    %c0_53 = arith.constant 0 : index
    %c0_54 = arith.constant 0 : index
    %98 = vector.load %arg12[%97, %c0_53, %c0_54] : memref<8x8x512xbf16, #tpu.memory_space<vmem>>, vector<1x8x512xbf16>
    %99 = vector.shape_cast %98 : vector<1x8x512xbf16> to vector<8x512xbf16>
    %100 = vector.shape_cast %96 : vector<8x512xbf16> to vector<1x8x512xbf16>
    tpu.vector_store %arg12[%97, %c0_53, %c0_54], %100 {strides = array<i32>} : memref<8x8x512xbf16, #tpu.memory_space<vmem>>, vector<1x8x512xbf16>,
    %c5_i32 = arith.constant 5 : i32
    %101 = arith.index_cast %c5_i32 : i32 to index
    %c0_55 = arith.constant 0 : index
    %c0_56 = arith.constant 0 : index
    %102 = vector.load %arg2[%101, %c0_55, %c0_56] : memref<8x8x16xbf16, #tpu.memory_space<vmem>>, vector<1x8x16xbf16>
    %103 = vector.shape_cast %102 : vector<1x8x16xbf16> to vector<8x16xbf16>
    %c0_57 = arith.constant 0 : index
    %c0_58 = arith.constant 0 : index
    %104 = vector.load %arg3[%c0_57, %c0_58] : memref<16x1024xbf16, #tpu.memory_space<vmem>>, vector<16x1024xbf16>
    %cst_59 = arith.constant dense<0.000000e+00> : vector<8x1024xf32>
    %105 = tpu.matmul %103, %104, %cst_59 {dimension_numbers = #tpu.dot_dimension_numbers<[1], [0], [0], [1], [0, 0, 1, 1], [], []>} : vector<8x16xbf16>, vector<16x1024xbf16>, vector<8x1024xf32> -> vector<8x1024xf32>
    %c0_60 = arith.constant 0 : index
    %c0_61 = arith.constant 0 : index
    %106 = vector.load %arg4[%c0_60, %c0_61] : memref<1x1024xf32, #tpu.memory_space<vmem>>, vector<1x1024xf32>
    %107 = vector.broadcast %106 : vector<1x1024xf32> to vector<8x1024xf32>
    %108 = arith.addf %105, %107 : vector<8x1024xf32>
    %109 = vector.extract_strided_slice %108 {offsets = [0, 0], sizes = [8, 512], strides = [1, 1]} : vector<8x1024xf32> to vector<8x512xf32>
    %110 = arith.truncf %109 : vector<8x512xf32> to vector<8x512xbf16>
    %111 = arith.index_cast %c5_i32 : i32 to index
    %c0_62 = arith.constant 0 : index
    %c0_63 = arith.constant 0 : index
    %112 = vector.load %arg11[%111, %c0_62, %c0_63] : memref<8x8x512xbf16, #tpu.memory_space<vmem>>, vector<1x8x512xbf16>
    %113 = vector.shape_cast %112 : vector<1x8x512xbf16> to vector<8x512xbf16>
    %114 = vector.shape_cast %110 : vector<8x512xbf16> to vector<1x8x512xbf16>
    tpu.vector_store %arg11[%111, %c0_62, %c0_63], %114 {strides = array<i32>} : memref<8x8x512xbf16, #tpu.memory_space<vmem>>, vector<1x8x512xbf16>,
    %115 = vector.extract_strided_slice %108 {offsets = [0, 512], sizes = [8, 512], strides = [1, 1]} : vector<8x1024xf32> to vector<8x512xf32>
    %116 = arith.truncf %115 : vector<8x512xf32> to vector<8x512xbf16>
    %117 = arith.index_cast %c5_i32 : i32 to index
    %c0_64 = arith.constant 0 : index
    %c0_65 = arith.constant 0 : index
    %118 = vector.load %arg12[%117, %c0_64, %c0_65] : memref<8x8x512xbf16, #tpu.memory_space<vmem>>, vector<1x8x512xbf16>
    %119 = vector.shape_cast %118 : vector<1x8x512xbf16> to vector<8x512xbf16>
    %120 = vector.shape_cast %116 : vector<8x512xbf16> to vector<1x8x512xbf16>
    tpu.vector_store %arg12[%117, %c0_64, %c0_65], %120 {strides = array<i32>} : memref<8x8x512xbf16, #tpu.memory_space<vmem>>, vector<1x8x512xbf16>,
    %c6_i32 = arith.constant 6 : i32
    %121 = arith.index_cast %c6_i32 : i32 to index
    %c0_66 = arith.constant 0 : index
    %c0_67 = arith.constant 0 : index
    %122 = vector.load %arg2[%121, %c0_66, %c0_67] : memref<8x8x16xbf16, #tpu.memory_space<vmem>>, vector<1x8x16xbf16>
    %123 = vector.shape_cast %122 : vector<1x8x16xbf16> to vector<8x16xbf16>
    %c0_68 = arith.constant 0 : index
    %c0_69 = arith.constant 0 : index
    %124 = vector.load %arg3[%c0_68, %c0_69] : memref<16x1024xbf16, #tpu.memory_space<vmem>>, vector<16x1024xbf16>
    %cst_70 = arith.constant dense<0.000000e+00> : vector<8x1024xf32>
    %125 = tpu.matmul %123, %124, %cst_70 {dimension_numbers = #tpu.dot_dimension_numbers<[1], [0], [0], [1], [0, 0, 1, 1], [], []>} : vector<8x16xbf16>, vector<16x1024xbf16>, vector<8x1024xf32> -> vector<8x1024xf32>
    %c0_71 = arith.constant 0 : index
    %c0_72 = arith.constant 0 : index
    %126 = vector.load %arg4[%c0_71, %c0_72] : memref<1x1024xf32, #tpu.memory_space<vmem>>, vector<1x1024xf32>
    %127 = vector.broadcast %126 : vector<1x1024xf32> to vector<8x1024xf32>
    %128 = arith.addf %125, %127 : vector<8x1024xf32>
    %129 = vector.extract_strided_slice %128 {offsets = [0, 0], sizes = [8, 512], strides = [1, 1]} : vector<8x1024xf32> to vector<8x512xf32>
    %130 = arith.truncf %129 : vector<8x512xf32> to vector<8x512xbf16>
    %131 = arith.index_cast %c6_i32 : i32 to index
    %c0_73 = arith.constant 0 : index
    %c0_74 = arith.constant 0 : index
    %132 = vector.load %arg11[%131, %c0_73, %c0_74] : memref<8x8x512xbf16, #tpu.memory_space<vmem>>, vector<1x8x512xbf16>
    %133 = vector.shape_cast %132 : vector<1x8x512xbf16> to vector<8x512xbf16>
    %134 = vector.shape_cast %130 : vector<8x512xbf16> to vector<1x8x512xbf16>
    tpu.vector_store %arg11[%131, %c0_73, %c0_74], %134 {strides = array<i32>} : memref<8x8x512xbf16, #tpu.memory_space<vmem>>, vector<1x8x512xbf16>,
    %135 = vector.extract_strided_slice %128 {offsets = [0, 512], sizes = [8, 512], strides = [1, 1]} : vector<8x1024xf32> to vector<8x512xf32>
    %136 = arith.truncf %135 : vector<8x512xf32> to vector<8x512xbf16>
    %137 = arith.index_cast %c6_i32 : i32 to index
    %c0_75 = arith.constant 0 : index
    %c0_76 = arith.constant 0 : index
    %138 = vector.load %arg12[%137, %c0_75, %c0_76] : memref<8x8x512xbf16, #tpu.memory_space<vmem>>, vector<1x8x512xbf16>
    %139 = vector.shape_cast %138 : vector<1x8x512xbf16> to vector<8x512xbf16>
    %140 = vector.shape_cast %136 : vector<8x512xbf16> to vector<1x8x512xbf16>
    tpu.vector_store %arg12[%137, %c0_75, %c0_76], %140 {strides = array<i32>} : memref<8x8x512xbf16, #tpu.memory_space<vmem>>, vector<1x8x512xbf16>,
    %c7_i32 = arith.constant 7 : i32
    %141 = arith.index_cast %c7_i32 : i32 to index
    %c0_77 = arith.constant 0 : index
    %c0_78 = arith.constant 0 : index
    %142 = vector.load %arg2[%141, %c0_77, %c0_78] : memref<8x8x16xbf16, #tpu.memory_space<vmem>>, vector<1x8x16xbf16>
    %143 = vector.shape_cast %142 : vector<1x8x16xbf16> to vector<8x16xbf16>
    %c0_79 = arith.constant 0 : index
    %c0_80 = arith.constant 0 : index
    %144 = vector.load %arg3[%c0_79, %c0_80] : memref<16x1024xbf16, #tpu.memory_space<vmem>>, vector<16x1024xbf16>
    %cst_81 = arith.constant dense<0.000000e+00> : vector<8x1024xf32>
    %145 = tpu.matmul %143, %144, %cst_81 {dimension_numbers = #tpu.dot_dimension_numbers<[1], [0], [0], [1], [0, 0, 1, 1], [], []>} : vector<8x16xbf16>, vector<16x1024xbf16>, vector<8x1024xf32> -> vector<8x1024xf32>
    %c0_82 = arith.constant 0 : index
    %c0_83 = arith.constant 0 : index
    %146 = vector.load %arg4[%c0_82, %c0_83] : memref<1x1024xf32, #tpu.memory_space<vmem>>, vector<1x1024xf32>
    %147 = vector.broadcast %146 : vector<1x1024xf32> to vector<8x1024xf32>
    %148 = arith.addf %145, %147 : vector<8x1024xf32>
    %149 = vector.extract_strided_slice %148 {offsets = [0, 0], sizes = [8, 512], strides = [1, 1]} : vector<8x1024xf32> to vector<8x512xf32>
    %150 = arith.truncf %149 : vector<8x512xf32> to vector<8x512xbf16>
    %151 = arith.index_cast %c7_i32 : i32 to index
    %c0_84 = arith.constant 0 : index
    %c0_85 = arith.constant 0 : index
    %152 = vector.load %arg11[%151, %c0_84, %c0_85] : memref<8x8x512xbf16, #tpu.memory_space<vmem>>, vector<1x8x512xbf16>
    %153 = vector.shape_cast %152 : vector<1x8x512xbf16> to vector<8x512xbf16>
    %154 = vector.shape_cast %150 : vector<8x512xbf16> to vector<1x8x512xbf16>
    tpu.vector_store %arg11[%151, %c0_84, %c0_85], %154 {strides = array<i32>} : memref<8x8x512xbf16, #tpu.memory_space<vmem>>, vector<1x8x512xbf16>,
    %155 = vector.extract_strided_slice %148 {offsets = [0, 512], sizes = [8, 512], strides = [1, 1]} : vector<8x1024xf32> to vector<8x512xf32>
    %156 = arith.truncf %155 : vector<8x512xf32> to vector<8x512xbf16>
    %157 = arith.index_cast %c7_i32 : i32 to index
    %c0_86 = arith.constant 0 : index
    %c0_87 = arith.constant 0 : index
    %158 = vector.load %arg12[%157, %c0_86, %c0_87] : memref<8x8x512xbf16, #tpu.memory_space<vmem>>, vector<1x8x512xbf16>
    %159 = vector.shape_cast %158 : vector<1x8x512xbf16> to vector<8x512xbf16>
    %160 = vector.shape_cast %156 : vector<8x512xbf16> to vector<1x8x512xbf16>
    tpu.vector_store %arg12[%157, %c0_86, %c0_87], %160 {strides = array<i32>} : memref<8x8x512xbf16, #tpu.memory_space<vmem>>, vector<1x8x512xbf16>,
    %c8_i32 = arith.constant 8 : i32
    %cst_88 = arith.constant 0.000000e+00 : f32
    %161 = vector.broadcast %cst_88 : f32 to vector<8x128xf32>
    %c0_i32_89 = arith.constant 0 : i32
    %c7_i32_90 = arith.constant 7 : i32
    %162 = arith.subi %c7_i32_90, %c0_i32_89 : i32
    %163 = arith.truncf %161 : vector<8x128xf32> to vector<8x128xbf16>
    %c0_91 = arith.constant 0 : index
    %c0_92 = arith.constant 0 : index
    %164 = vector.load %arg5[%c0_91, %c0_92] : memref<128x512xbf16, #tpu.memory_space<vmem>>, vector<128x512xbf16>
    %cst_93 = arith.constant dense<0.000000e+00> : vector<8x512xf32>
    %165 = tpu.matmul %163, %164, %cst_93 {dimension_numbers = #tpu.dot_dimension_numbers<[1], [0], [0], [1], [0, 0, 1, 1], [], []>} : vector<8x128xbf16>, vector<128x512xbf16>, vector<8x512xf32> -> vector<8x512xf32>
    %166 = arith.index_cast %c0_i32_89 : i32 to index
    %c0_94 = arith.constant 0 : index
    %c0_95 = arith.constant 0 : index
    %167 = vector.load %arg11[%166, %c0_94, %c0_95] : memref<8x8x512xbf16, #tpu.memory_space<vmem>>, vector<1x8x512xbf16>
    %168 = vector.shape_cast %167 : vector<1x8x512xbf16> to vector<8x512xbf16>
    %169 = arith.extf %168 : vector<8x512xbf16> to vector<8x512xf32>
    %170 = arith.addf %165, %169 : vector<8x512xf32>
    %171 = arith.truncf %161 : vector<8x128xf32> to vector<8x128xbf16>
    %c0_96 = arith.constant 0 : index
    %c0_97 = arith.constant 0 : index
    %172 = vector.load %arg6[%c0_96, %c0_97] : memref<128x512xbf16, #tpu.memory_space<vmem>>, vector<128x512xbf16>
    %cst_98 = arith.constant dense<0.000000e+00> : vector<8x512xf32>
    %173 = tpu.matmul %171, %172, %cst_98 {dimension_numbers = #tpu.dot_dimension_numbers<[1], [0], [0], [1], [0, 0, 1, 1], [], []>} : vector<8x128xbf16>, vector<128x512xbf16>, vector<8x512xf32> -> vector<8x512xf32>
    %174 = arith.index_cast %162 : i32 to index
    %c0_99 = arith.constant 0 : index
    %c0_100 = arith.constant 0 : index
    %175 = vector.load %arg12[%174, %c0_99, %c0_100] : memref<8x8x512xbf16, #tpu.memory_space<vmem>>, vector<1x8x512xbf16>
    %176 = vector.shape_cast %175 : vector<1x8x512xbf16> to vector<8x512xbf16>
    %177 = arith.extf %176 : vector<8x512xbf16> to vector<8x512xf32>
    %178 = arith.addf %173, %177 : vector<8x512xf32>
    %179 = vector.extract_strided_slice %170 {offsets = [0, 0], sizes = [8, 128], strides = [1, 1]} : vector<8x512xf32> to vector<8x128xf32>
    %180 = arith.negf %179 : vector<8x128xf32>
    %181 = math.exp %180 : vector<8x128xf32>
    %cst_101 = arith.constant 1.000000e+00 : f32
    %182 = vector.broadcast %cst_101 : f32 to vector<8x128xf32>
    %183 = arith.addf %182, %181 : vector<8x128xf32>
    %184 = arith.divf %182, %183 : vector<8x128xf32>
    %185 = vector.extract_strided_slice %170 {offsets = [0, 128], sizes = [8, 128], strides = [1, 1]} : vector<8x512xf32> to vector<8x128xf32>
    %186 = arith.negf %185 : vector<8x128xf32>
    %187 = math.exp %186 : vector<8x128xf32>
    %cst_102 = arith.constant 1.000000e+00 : f32
    %188 = vector.broadcast %cst_102 : f32 to vector<8x128xf32>
    %189 = arith.addf %188, %187 : vector<8x128xf32>
    %190 = arith.divf %188, %189 : vector<8x128xf32>
    %191 = vector.extract_strided_slice %170 {offsets = [0, 256], sizes = [8, 128], strides = [1, 1]} : vector<8x512xf32> to vector<8x128xf32>
    %192 = math.tanh %191 : vector<8x128xf32>
    %193 = vector.extract_strided_slice %170 {offsets = [0, 384], sizes = [8, 128], strides = [1, 1]} : vector<8x512xf32> to vector<8x128xf32>
    %194 = arith.negf %193 : vector<8x128xf32>
    %195 = math.exp %194 : vector<8x128xf32>
    %cst_103 = arith.constant 1.000000e+00 : f32
    %196 = vector.broadcast %cst_103 : f32 to vector<8x128xf32>
    %197 = arith.addf %196, %195 : vector<8x128xf32>
    %198 = arith.divf %196, %197 : vector<8x128xf32>
    %199 = vector.extract_strided_slice %178 {offsets = [0, 0], sizes = [8, 128], strides = [1, 1]} : vector<8x512xf32> to vector<8x128xf32>
    %200 = arith.negf %199 : vector<8x128xf32>
    %201 = math.exp %200 : vector<8x128xf32>
    %cst_104 = arith.constant 1.000000e+00 : f32
    %202 = vector.broadcast %cst_104 : f32 to vector<8x128xf32>
    %203 = arith.addf %202, %201 : vector<8x128xf32>
    %204 = arith.divf %202, %203 : vector<8x128xf32>
    %205 = vector.extract_strided_slice %178 {offsets = [0, 128], sizes = [8, 128], strides = [1, 1]} : vector<8x512xf32> to vector<8x128xf32>
    %206 = arith.negf %205 : vector<8x128xf32>
    %207 = math.exp %206 : vector<8x128xf32>
    %cst_105 = arith.constant 1.000000e+00 : f32
    %208 = vector.broadcast %cst_105 : f32 to vector<8x128xf32>
    %209 = arith.addf %208, %207 : vector<8x128xf32>
    %210 = arith.divf %208, %209 : vector<8x128xf32>
    %211 = vector.extract_strided_slice %178 {offsets = [0, 256], sizes = [8, 128], strides = [1, 1]} : vector<8x512xf32> to vector<8x128xf32>
    %212 = math.tanh %211 : vector<8x128xf32>
    %213 = vector.extract_strided_slice %178 {offsets = [0, 384], sizes = [8, 128], strides = [1, 1]} : vector<8x512xf32> to vector<8x128xf32>
    %214 = arith.negf %213 : vector<8x128xf32>
    %215 = math.exp %214 : vector<8x128xf32>
    %cst_106 = arith.constant 1.000000e+00 : f32
    %216 = vector.broadcast %cst_106 : f32 to vector<8x128xf32>
    %217 = arith.addf %216, %215 : vector<8x128xf32>
    %218 = arith.divf %216, %217 : vector<8x128xf32>
    %219 = arith.mulf %190, %161 : vector<8x128xf32>
    %220 = arith.mulf %184, %192 : vector<8x128xf32>
    %221 = arith.addf %219, %220 : vector<8x128xf32>
    %222 = arith.mulf %210, %161 : vector<8x128xf32>
    %223 = arith.mulf %204, %212 : vector<8x128xf32>
    %224 = arith.addf %222, %223 : vector<8x128xf32>
    %225 = math.tanh %221 : vector<8x128xf32>
    %226 = arith.mulf %198, %225 : vector<8x128xf32>
    %227 = math.tanh %224 : vector<8x128xf32>
    %228 = arith.mulf %218, %227 : vector<8x128xf32>
    %229 = vector.broadcast %c0_i32_89 : i32 to vector<8x1xi32>
    %230 = arith.cmpi slt, %229, %0 : vector<8x1xi32>
    %231 = vector.broadcast %162 : i32 to vector<8x1xi32>
    %232 = arith.cmpi slt, %231, %0 : vector<8x1xi32>
    %233 = vector.shape_cast %230 : vector<8x1xi1> to vector<8x1xi1>
    %234 = vector.broadcast %233 : vector<8x1xi1> to vector<8x128xi1>
    %235 = arith.select %234, %226, %161 : vector<8x128xi1>, vector<8x128xf32>
    %236 = vector.shape_cast %230 : vector<8x1xi1> to vector<8x1xi1>
    %237 = vector.broadcast %236 : vector<8x1xi1> to vector<8x128xi1>
    %238 = arith.select %237, %221, %161 : vector<8x128xi1>, vector<8x128xf32>
    %239 = vector.shape_cast %232 : vector<8x1xi1> to vector<8x1xi1>
    %240 = vector.broadcast %239 : vector<8x1xi1> to vector<8x128xi1>
    %241 = arith.select %240, %228, %161 : vector<8x128xi1>, vector<8x128xf32>
    %242 = vector.shape_cast %232 : vector<8x1xi1> to vector<8x1xi1>
    %243 = vector.broadcast %242 : vector<8x1xi1> to vector<8x128xi1>
    %244 = arith.select %243, %224, %161 : vector<8x128xi1>, vector<8x128xf32>
    %c1_i32_107 = arith.constant 1 : i32
    %245 = vector.broadcast %c1_i32_107 : i32 to vector<8x1xi32>
    %246 = arith.subi %0, %245 : vector<8x1xi32>
    %247 = vector.broadcast %162 : i32 to vector<8x1xi32>
    %248 = arith.cmpi eq, %247, %246 : vector<8x1xi32>
    %249 = vector.shape_cast %248 : vector<8x1xi1> to vector<8x1xi1>
    %250 = vector.broadcast %249 : vector<8x1xi1> to vector<8x128xi1>
    %251 = arith.select %250, %241, %161 : vector<8x128xi1>, vector<8x128xf32>
    %c1_i32_108 = arith.constant 1 : i32
    %c7_i32_109 = arith.constant 7 : i32
    %252 = arith.subi %c7_i32_109, %c1_i32_108 : i32
    %253 = arith.truncf %235 : vector<8x128xf32> to vector<8x128xbf16>
    %c0_110 = arith.constant 0 : index
    %c0_111 = arith.constant 0 : index
    %254 = vector.load %arg5[%c0_110, %c0_111] : memref<128x512xbf16, #tpu.memory_space<vmem>>, vector<128x512xbf16>
    %cst_112 = arith.constant dense<0.000000e+00> : vector<8x512xf32>
    %255 = tpu.matmul %253, %254, %cst_112 {dimension_numbers = #tpu.dot_dimension_numbers<[1], [0], [0], [1], [0, 0, 1, 1], [], []>} : vector<8x128xbf16>, vector<128x512xbf16>, vector<8x512xf32> -> vector<8x512xf32>
    %256 = arith.index_cast %c1_i32_108 : i32 to index
    %c0_113 = arith.constant 0 : index
    %c0_114 = arith.constant 0 : index
    %257 = vector.load %arg11[%256, %c0_113, %c0_114] : memref<8x8x512xbf16, #tpu.memory_space<vmem>>, vector<1x8x512xbf16>
    %258 = vector.shape_cast %257 : vector<1x8x512xbf16> to vector<8x512xbf16>
    %259 = arith.extf %258 : vector<8x512xbf16> to vector<8x512xf32>
    %260 = arith.addf %255, %259 : vector<8x512xf32>
    %261 = arith.truncf %241 : vector<8x128xf32> to vector<8x128xbf16>
    %c0_115 = arith.constant 0 : index
    %c0_116 = arith.constant 0 : index
    %262 = vector.load %arg6[%c0_115, %c0_116] : memref<128x512xbf16, #tpu.memory_space<vmem>>, vector<128x512xbf16>
    %cst_117 = arith.constant dense<0.000000e+00> : vector<8x512xf32>
    %263 = tpu.matmul %261, %262, %cst_117 {dimension_numbers = #tpu.dot_dimension_numbers<[1], [0], [0], [1], [0, 0, 1, 1], [], []>} : vector<8x128xbf16>, vector<128x512xbf16>, vector<8x512xf32> -> vector<8x512xf32>
    %264 = arith.index_cast %252 : i32 to index
    %c0_118 = arith.constant 0 : index
    %c0_119 = arith.constant 0 : index
    %265 = vector.load %arg12[%264, %c0_118, %c0_119] : memref<8x8x512xbf16, #tpu.memory_space<vmem>>, vector<1x8x512xbf16>
    %266 = vector.shape_cast %265 : vector<1x8x512xbf16> to vector<8x512xbf16>
    %267 = arith.extf %266 : vector<8x512xbf16> to vector<8x512xf32>
    %268 = arith.addf %263, %267 : vector<8x512xf32>
    %269 = vector.extract_strided_slice %260 {offsets = [0, 0], sizes = [8, 128], strides = [1, 1]} : vector<8x512xf32> to vector<8x128xf32>
    %270 = arith.negf %269 : vector<8x128xf32>
    %271 = math.exp %270 : vector<8x128xf32>
    %cst_120 = arith.constant 1.000000e+00 : f32
    %272 = vector.broadcast %cst_120 : f32 to vector<8x128xf32>
    %273 = arith.addf %272, %271 : vector<8x128xf32>
    %274 = arith.divf %272, %273 : vector<8x128xf32>
    %275 = vector.extract_strided_slice %260 {offsets = [0, 128], sizes = [8, 128], strides = [1, 1]} : vector<8x512xf32> to vector<8x128xf32>
    %276 = arith.negf %275 : vector<8x128xf32>
    %277 = math.exp %276 : vector<8x128xf32>
    %cst_121 = arith.constant 1.000000e+00 : f32
    %278 = vector.broadcast %cst_121 : f32 to vector<8x128xf32>
    %279 = arith.addf %278, %277 : vector<8x128xf32>
    %280 = arith.divf %278, %279 : vector<8x128xf32>
    %281 = vector.extract_strided_slice %260 {offsets = [0, 256], sizes = [8, 128], strides = [1, 1]} : vector<8x512xf32> to vector<8x128xf32>
    %282 = math.tanh %281 : vector<8x128xf32>
    %283 = vector.extract_strided_slice %260 {offsets = [0, 384], sizes = [8, 128], strides = [1, 1]} : vector<8x512xf32> to vector<8x128xf32>
    %284 = arith.negf %283 : vector<8x128xf32>
    %285 = math.exp %284 : vector<8x128xf32>
    %cst_122 = arith.constant 1.000000e+00 : f32
    %286 = vector.broadcast %cst_122 : f32 to vector<8x128xf32>
    %287 = arith.addf %286, %285 : vector<8x128xf32>
    %288 = arith.divf %286, %287 : vector<8x128xf32>
    %289 = vector.extract_strided_slice %268 {offsets = [0, 0], sizes = [8, 128], strides = [1, 1]} : vector<8x512xf32> to vector<8x128xf32>
    %290 = arith.negf %289 : vector<8x128xf32>
    %291 = math.exp %290 : vector<8x128xf32>
    %cst_123 = arith.constant 1.000000e+00 : f32
    %292 = vector.broadcast %cst_123 : f32 to vector<8x128xf32>
    %293 = arith.addf %292, %291 : vector<8x128xf32>
    %294 = arith.divf %292, %293 : vector<8x128xf32>
    %295 = vector.extract_strided_slice %268 {offsets = [0, 128], sizes = [8, 128], strides = [1, 1]} : vector<8x512xf32> to vector<8x128xf32>
    %296 = arith.negf %295 : vector<8x128xf32>
    %297 = math.exp %296 : vector<8x128xf32>
    %cst_124 = arith.constant 1.000000e+00 : f32
    %298 = vector.broadcast %cst_124 : f32 to vector<8x128xf32>
    %299 = arith.addf %298, %297 : vector<8x128xf32>
    %300 = arith.divf %298, %299 : vector<8x128xf32>
    %301 = vector.extract_strided_slice %268 {offsets = [0, 256], sizes = [8, 128], strides = [1, 1]} : vector<8x512xf32> to vector<8x128xf32>
    %302 = math.tanh %301 : vector<8x128xf32>
    %303 = vector.extract_strided_slice %268 {offsets = [0, 384], sizes = [8, 128], strides = [1, 1]} : vector<8x512xf32> to vector<8x128xf32>
    %304 = arith.negf %303 : vector<8x128xf32>
    %305 = math.exp %304 : vector<8x128xf32>
    %cst_125 = arith.constant 1.000000e+00 : f32
    %306 = vector.broadcast %cst_125 : f32 to vector<8x128xf32>
    %307 = arith.addf %306, %305 : vector<8x128xf32>
    %308 = arith.divf %306, %307 : vector<8x128xf32>
    %309 = arith.mulf %280, %238 : vector<8x128xf32>
    %310 = arith.mulf %274, %282 : vector<8x128xf32>
    %311 = arith.addf %309, %310 : vector<8x128xf32>
    %312 = arith.mulf %300, %244 : vector<8x128xf32>
    %313 = arith.mulf %294, %302 : vector<8x128xf32>
    %314 = arith.addf %312, %313 : vector<8x128xf32>
    %315 = math.tanh %311 : vector<8x128xf32>
    %316 = arith.mulf %288, %315 : vector<8x128xf32>
    %317 = math.tanh %314 : vector<8x128xf32>
    %318 = arith.mulf %308, %317 : vector<8x128xf32>
    %319 = vector.broadcast %c1_i32_108 : i32 to vector<8x1xi32>
    %320 = arith.cmpi slt, %319, %0 : vector<8x1xi32>
    %321 = vector.broadcast %252 : i32 to vector<8x1xi32>
    %322 = arith.cmpi slt, %321, %0 : vector<8x1xi32>
    %323 = vector.shape_cast %320 : vector<8x1xi1> to vector<8x1xi1>
    %324 = vector.broadcast %323 : vector<8x1xi1> to vector<8x128xi1>
    %325 = arith.select %324, %316, %235 : vector<8x128xi1>, vector<8x128xf32>
    %326 = vector.shape_cast %320 : vector<8x1xi1> to vector<8x1xi1>
    %327 = vector.broadcast %326 : vector<8x1xi1> to vector<8x128xi1>
    %328 = arith.select %327, %311, %238 : vector<8x128xi1>, vector<8x128xf32>
    %329 = vector.shape_cast %322 : vector<8x1xi1> to vector<8x1xi1>
    %330 = vector.broadcast %329 : vector<8x1xi1> to vector<8x128xi1>
    %331 = arith.select %330, %318, %241 : vector<8x128xi1>, vector<8x128xf32>
    %332 = vector.shape_cast %322 : vector<8x1xi1> to vector<8x1xi1>
    %333 = vector.broadcast %332 : vector<8x1xi1> to vector<8x128xi1>
    %334 = arith.select %333, %314, %244 : vector<8x128xi1>, vector<8x128xf32>
    %c1_i32_126 = arith.constant 1 : i32
    %335 = vector.broadcast %c1_i32_126 : i32 to vector<8x1xi32>
    %336 = arith.subi %0, %335 : vector<8x1xi32>
    %337 = vector.broadcast %252 : i32 to vector<8x1xi32>
    %338 = arith.cmpi eq, %337, %336 : vector<8x1xi32>
    %339 = vector.shape_cast %338 : vector<8x1xi1> to vector<8x1xi1>
    %340 = vector.broadcast %339 : vector<8x1xi1> to vector<8x128xi1>
    %341 = arith.select %340, %331, %251 : vector<8x128xi1>, vector<8x128xf32>
    %c2_i32_127 = arith.constant 2 : i32
    %c7_i32_128 = arith.constant 7 : i32
    %342 = arith.subi %c7_i32_128, %c2_i32_127 : i32
    %343 = arith.truncf %325 : vector<8x128xf32> to vector<8x128xbf16>
    %c0_129 = arith.constant 0 : index
    %c0_130 = arith.constant 0 : index
    %344 = vector.load %arg5[%c0_129, %c0_130] : memref<128x512xbf16, #tpu.memory_space<vmem>>, vector<128x512xbf16>
    %cst_131 = arith.constant dense<0.000000e+00> : vector<8x512xf32>
    %345 = tpu.matmul %343, %344, %cst_131 {dimension_numbers = #tpu.dot_dimension_numbers<[1], [0], [0], [1], [0, 0, 1, 1], [], []>} : vector<8x128xbf16>, vector<128x512xbf16>, vector<8x512xf32> -> vector<8x512xf32>
    %346 = arith.index_cast %c2_i32_127 : i32 to index
    %c0_132 = arith.constant 0 : index
    %c0_133 = arith.constant 0 : index
    %347 = vector.load %arg11[%346, %c0_132, %c0_133] : memref<8x8x512xbf16, #tpu.memory_space<vmem>>, vector<1x8x512xbf16>
    %348 = vector.shape_cast %347 : vector<1x8x512xbf16> to vector<8x512xbf16>
    %349 = arith.extf %348 : vector<8x512xbf16> to vector<8x512xf32>
    %350 = arith.addf %345, %349 : vector<8x512xf32>
    %351 = arith.truncf %331 : vector<8x128xf32> to vector<8x128xbf16>
    %c0_134 = arith.constant 0 : index
    %c0_135 = arith.constant 0 : index
    %352 = vector.load %arg6[%c0_134, %c0_135] : memref<128x512xbf16, #tpu.memory_space<vmem>>, vector<128x512xbf16>
    %cst_136 = arith.constant dense<0.000000e+00> : vector<8x512xf32>
    %353 = tpu.matmul %351, %352, %cst_136 {dimension_numbers = #tpu.dot_dimension_numbers<[1], [0], [0], [1], [0, 0, 1, 1], [], []>} : vector<8x128xbf16>, vector<128x512xbf16>, vector<8x512xf32> -> vector<8x512xf32>
    %354 = arith.index_cast %342 : i32 to index
    %c0_137 = arith.constant 0 : index
    %c0_138 = arith.constant 0 : index
    %355 = vector.load %arg12[%354, %c0_137, %c0_138] : memref<8x8x512xbf16, #tpu.memory_space<vmem>>, vector<1x8x512xbf16>
    %356 = vector.shape_cast %355 : vector<1x8x512xbf16> to vector<8x512xbf16>
    %357 = arith.extf %356 : vector<8x512xbf16> to vector<8x512xf32>
    %358 = arith.addf %353, %357 : vector<8x512xf32>
    %359 = vector.extract_strided_slice %350 {offsets = [0, 0], sizes = [8, 128], strides = [1, 1]} : vector<8x512xf32> to vector<8x128xf32>
    %360 = arith.negf %359 : vector<8x128xf32>
    %361 = math.exp %360 : vector<8x128xf32>
    %cst_139 = arith.constant 1.000000e+00 : f32
    %362 = vector.broadcast %cst_139 : f32 to vector<8x128xf32>
    %363 = arith.addf %362, %361 : vector<8x128xf32>
    %364 = arith.divf %362, %363 : vector<8x128xf32>
    %365 = vector.extract_strided_slice %350 {offsets = [0, 128], sizes = [8, 128], strides = [1, 1]} : vector<8x512xf32> to vector<8x128xf32>
    %366 = arith.negf %365 : vector<8x128xf32>
    %367 = math.exp %366 : vector<8x128xf32>
    %cst_140 = arith.constant 1.000000e+00 : f32
    %368 = vector.broadcast %cst_140 : f32 to vector<8x128xf32>
    %369 = arith.addf %368, %367 : vector<8x128xf32>
    %370 = arith.divf %368, %369 : vector<8x128xf32>
    %371 = vector.extract_strided_slice %350 {offsets = [0, 256], sizes = [8, 128], strides = [1, 1]} : vector<8x512xf32> to vector<8x128xf32>
    %372 = math.tanh %371 : vector<8x128xf32>
    %373 = vector.extract_strided_slice %350 {offsets = [0, 384], sizes = [8, 128], strides = [1, 1]} : vector<8x512xf32> to vector<8x128xf32>
    %374 = arith.negf %373 : vector<8x128xf32>
    %375 = math.exp %374 : vector<8x128xf32>
    %cst_141 = arith.constant 1.000000e+00 : f32
    %376 = vector.broadcast %cst_141 : f32 to vector<8x128xf32>
    %377 = arith.addf %376, %375 : vector<8x128xf32>
    %378 = arith.divf %376, %377 : vector<8x128xf32>
    %379 = vector.extract_strided_slice %358 {offsets = [0, 0], sizes = [8, 128], strides = [1, 1]} : vector<8x512xf32> to vector<8x128xf32>
    %380 = arith.negf %379 : vector<8x128xf32>
    %381 = math.exp %380 : vector<8x128xf32>
    %cst_142 = arith.constant 1.000000e+00 : f32
    %382 = vector.broadcast %cst_142 : f32 to vector<8x128xf32>
    %383 = arith.addf %382, %381 : vector<8x128xf32>
    %384 = arith.divf %382, %383 : vector<8x128xf32>
    %385 = vector.extract_strided_slice %358 {offsets = [0, 128], sizes = [8, 128], strides = [1, 1]} : vector<8x512xf32> to vector<8x128xf32>
    %386 = arith.negf %385 : vector<8x128xf32>
    %387 = math.exp %386 : vector<8x128xf32>
    %cst_143 = arith.constant 1.000000e+00 : f32
    %388 = vector.broadcast %cst_143 : f32 to vector<8x128xf32>
    %389 = arith.addf %388, %387 : vector<8x128xf32>
    %390 = arith.divf %388, %389 : vector<8x128xf32>
    %391 = vector.extract_strided_slice %358 {offsets = [0, 256], sizes = [8, 128], strides = [1, 1]} : vector<8x512xf32> to vector<8x128xf32>
    %392 = math.tanh %391 : vector<8x128xf32>
    %393 = vector.extract_strided_slice %358 {offsets = [0, 384], sizes = [8, 128], strides = [1, 1]} : vector<8x512xf32> to vector<8x128xf32>
    %394 = arith.negf %393 : vector<8x128xf32>
    %395 = math.exp %394 : vector<8x128xf32>
    %cst_144 = arith.constant 1.000000e+00 : f32
    %396 = vector.broadcast %cst_144 : f32 to vector<8x128xf32>
    %397 = arith.addf %396, %395 : vector<8x128xf32>
    %398 = arith.divf %396, %397 : vector<8x128xf32>
    %399 = arith.mulf %370, %328 : vector<8x128xf32>
    %400 = arith.mulf %364, %372 : vector<8x128xf32>
    %401 = arith.addf %399, %400 : vector<8x128xf32>
    %402 = arith.mulf %390, %334 : vector<8x128xf32>
    %403 = arith.mulf %384, %392 : vector<8x128xf32>
    %404 = arith.addf %402, %403 : vector<8x128xf32>
    %405 = math.tanh %401 : vector<8x128xf32>
    %406 = arith.mulf %378, %405 : vector<8x128xf32>
    %407 = math.tanh %404 : vector<8x128xf32>
    %408 = arith.mulf %398, %407 : vector<8x128xf32>
    %409 = vector.broadcast %c2_i32_127 : i32 to vector<8x1xi32>
    %410 = arith.cmpi slt, %409, %0 : vector<8x1xi32>
    %411 = vector.broadcast %342 : i32 to vector<8x1xi32>
    %412 = arith.cmpi slt, %411, %0 : vector<8x1xi32>
    %413 = vector.shape_cast %410 : vector<8x1xi1> to vector<8x1xi1>
    %414 = vector.broadcast %413 : vector<8x1xi1> to vector<8x128xi1>
    %415 = arith.select %414, %406, %325 : vector<8x128xi1>, vector<8x128xf32>
    %416 = vector.shape_cast %410 : vector<8x1xi1> to vector<8x1xi1>
    %417 = vector.broadcast %416 : vector<8x1xi1> to vector<8x128xi1>
    %418 = arith.select %417, %401, %328 : vector<8x128xi1>, vector<8x128xf32>
    %419 = vector.shape_cast %412 : vector<8x1xi1> to vector<8x1xi1>
    %420 = vector.broadcast %419 : vector<8x1xi1> to vector<8x128xi1>
    %421 = arith.select %420, %408, %331 : vector<8x128xi1>, vector<8x128xf32>
    %422 = vector.shape_cast %412 : vector<8x1xi1> to vector<8x1xi1>
    %423 = vector.broadcast %422 : vector<8x1xi1> to vector<8x128xi1>
    %424 = arith.select %423, %404, %334 : vector<8x128xi1>, vector<8x128xf32>
    %c1_i32_145 = arith.constant 1 : i32
    %425 = vector.broadcast %c1_i32_145 : i32 to vector<8x1xi32>
    %426 = arith.subi %0, %425 : vector<8x1xi32>
    %427 = vector.broadcast %342 : i32 to vector<8x1xi32>
    %428 = arith.cmpi eq, %427, %426 : vector<8x1xi32>
    %429 = vector.shape_cast %428 : vector<8x1xi1> to vector<8x1xi1>
    %430 = vector.broadcast %429 : vector<8x1xi1> to vector<8x128xi1>
    %431 = arith.select %430, %421, %341 : vector<8x128xi1>, vector<8x128xf32>
    %c3_i32_146 = arith.constant 3 : i32
    %c7_i32_147 = arith.constant 7 : i32
    %432 = arith.subi %c7_i32_147, %c3_i32_146 : i32
    %433 = arith.truncf %415 : vector<8x128xf32> to vector<8x128xbf16>
    %c0_148 = arith.constant 0 : index
    %c0_149 = arith.constant 0 : index
    %434 = vector.load %arg5[%c0_148, %c0_149] : memref<128x512xbf16, #tpu.memory_space<vmem>>, vector<128x512xbf16>
    %cst_150 = arith.constant dense<0.000000e+00> : vector<8x512xf32>
    %435 = tpu.matmul %433, %434, %cst_150 {dimension_numbers = #tpu.dot_dimension_numbers<[1], [0], [0], [1], [0, 0, 1, 1], [], []>} : vector<8x128xbf16>, vector<128x512xbf16>, vector<8x512xf32> -> vector<8x512xf32>
    %436 = arith.index_cast %c3_i32_146 : i32 to index
    %c0_151 = arith.constant 0 : index
    %c0_152 = arith.constant 0 : index
    %437 = vector.load %arg11[%436, %c0_151, %c0_152] : memref<8x8x512xbf16, #tpu.memory_space<vmem>>, vector<1x8x512xbf16>
    %438 = vector.shape_cast %437 : vector<1x8x512xbf16> to vector<8x512xbf16>
    %439 = arith.extf %438 : vector<8x512xbf16> to vector<8x512xf32>
    %440 = arith.addf %435, %439 : vector<8x512xf32>
    %441 = arith.truncf %421 : vector<8x128xf32> to vector<8x128xbf16>
    %c0_153 = arith.constant 0 : index
    %c0_154 = arith.constant 0 : index
    %442 = vector.load %arg6[%c0_153, %c0_154] : memref<128x512xbf16, #tpu.memory_space<vmem>>, vector<128x512xbf16>
    %cst_155 = arith.constant dense<0.000000e+00> : vector<8x512xf32>
    %443 = tpu.matmul %441, %442, %cst_155 {dimension_numbers = #tpu.dot_dimension_numbers<[1], [0], [0], [1], [0, 0, 1, 1], [], []>} : vector<8x128xbf16>, vector<128x512xbf16>, vector<8x512xf32> -> vector<8x512xf32>
    %444 = arith.index_cast %432 : i32 to index
    %c0_156 = arith.constant 0 : index
    %c0_157 = arith.constant 0 : index
    %445 = vector.load %arg12[%444, %c0_156, %c0_157] : memref<8x8x512xbf16, #tpu.memory_space<vmem>>, vector<1x8x512xbf16>
    %446 = vector.shape_cast %445 : vector<1x8x512xbf16> to vector<8x512xbf16>
    %447 = arith.extf %446 : vector<8x512xbf16> to vector<8x512xf32>
    %448 = arith.addf %443, %447 : vector<8x512xf32>
    %449 = vector.extract_strided_slice %440 {offsets = [0, 0], sizes = [8, 128], strides = [1, 1]} : vector<8x512xf32> to vector<8x128xf32>
    %450 = arith.negf %449 : vector<8x128xf32>
    %451 = math.exp %450 : vector<8x128xf32>
    %cst_158 = arith.constant 1.000000e+00 : f32
    %452 = vector.broadcast %cst_158 : f32 to vector<8x128xf32>
    %453 = arith.addf %452, %451 : vector<8x128xf32>
    %454 = arith.divf %452, %453 : vector<8x128xf32>
    %455 = vector.extract_strided_slice %440 {offsets = [0, 128], sizes = [8, 128], strides = [1, 1]} : vector<8x512xf32> to vector<8x128xf32>
    %456 = arith.negf %455 : vector<8x128xf32>
    %457 = math.exp %456 : vector<8x128xf32>
    %cst_159 = arith.constant 1.000000e+00 : f32
    %458 = vector.broadcast %cst_159 : f32 to vector<8x128xf32>
    %459 = arith.addf %458, %457 : vector<8x128xf32>
    %460 = arith.divf %458, %459 : vector<8x128xf32>
    %461 = vector.extract_strided_slice %440 {offsets = [0, 256], sizes = [8, 128], strides = [1, 1]} : vector<8x512xf32> to vector<8x128xf32>
    %462 = math.tanh %461 : vector<8x128xf32>
    %463 = vector.extract_strided_slice %440 {offsets = [0, 384], sizes = [8, 128], strides = [1, 1]} : vector<8x512xf32> to vector<8x128xf32>
    %464 = arith.negf %463 : vector<8x128xf32>
    %465 = math.exp %464 : vector<8x128xf32>
    %cst_160 = arith.constant 1.000000e+00 : f32
    %466 = vector.broadcast %cst_160 : f32 to vector<8x128xf32>
    %467 = arith.addf %466, %465 : vector<8x128xf32>
    %468 = arith.divf %466, %467 : vector<8x128xf32>
    %469 = vector.extract_strided_slice %448 {offsets = [0, 0], sizes = [8, 128], strides = [1, 1]} : vector<8x512xf32> to vector<8x128xf32>
    %470 = arith.negf %469 : vector<8x128xf32>
    %471 = math.exp %470 : vector<8x128xf32>
    %cst_161 = arith.constant 1.000000e+00 : f32
    %472 = vector.broadcast %cst_161 : f32 to vector<8x128xf32>
    %473 = arith.addf %472, %471 : vector<8x128xf32>
    %474 = arith.divf %472, %473 : vector<8x128xf32>
    %475 = vector.extract_strided_slice %448 {offsets = [0, 128], sizes = [8, 128], strides = [1, 1]} : vector<8x512xf32> to vector<8x128xf32>
    %476 = arith.negf %475 : vector<8x128xf32>
    %477 = math.exp %476 : vector<8x128xf32>
    %cst_162 = arith.constant 1.000000e+00 : f32
    %478 = vector.broadcast %cst_162 : f32 to vector<8x128xf32>
    %479 = arith.addf %478, %477 : vector<8x128xf32>
    %480 = arith.divf %478, %479 : vector<8x128xf32>
    %481 = vector.extract_strided_slice %448 {offsets = [0, 256], sizes = [8, 128], strides = [1, 1]} : vector<8x512xf32> to vector<8x128xf32>
    %482 = math.tanh %481 : vector<8x128xf32>
    %483 = vector.extract_strided_slice %448 {offsets = [0, 384], sizes = [8, 128], strides = [1, 1]} : vector<8x512xf32> to vector<8x128xf32>
    %484 = arith.negf %483 : vector<8x128xf32>
    %485 = math.exp %484 : vector<8x128xf32>
    %cst_163 = arith.constant 1.000000e+00 : f32
    %486 = vector.broadcast %cst_163 : f32 to vector<8x128xf32>
    %487 = arith.addf %486, %485 : vector<8x128xf32>
    %488 = arith.divf %486, %487 : vector<8x128xf32>
    %489 = arith.mulf %460, %418 : vector<8x128xf32>
    %490 = arith.mulf %454, %462 : vector<8x128xf32>
    %491 = arith.addf %489, %490 : vector<8x128xf32>
    %492 = arith.mulf %480, %424 : vector<8x128xf32>
    %493 = arith.mulf %474, %482 : vector<8x128xf32>
    %494 = arith.addf %492, %493 : vector<8x128xf32>
    %495 = math.tanh %491 : vector<8x128xf32>
    %496 = arith.mulf %468, %495 : vector<8x128xf32>
    %497 = math.tanh %494 : vector<8x128xf32>
    %498 = arith.mulf %488, %497 : vector<8x128xf32>
    %499 = vector.broadcast %c3_i32_146 : i32 to vector<8x1xi32>
    %500 = arith.cmpi slt, %499, %0 : vector<8x1xi32>
    %501 = vector.broadcast %432 : i32 to vector<8x1xi32>
    %502 = arith.cmpi slt, %501, %0 : vector<8x1xi32>
    %503 = vector.shape_cast %500 : vector<8x1xi1> to vector<8x1xi1>
    %504 = vector.broadcast %503 : vector<8x1xi1> to vector<8x128xi1>
    %505 = arith.select %504, %496, %415 : vector<8x128xi1>, vector<8x128xf32>
    %506 = vector.shape_cast %500 : vector<8x1xi1> to vector<8x1xi1>
    %507 = vector.broadcast %506 : vector<8x1xi1> to vector<8x128xi1>
    %508 = arith.select %507, %491, %418 : vector<8x128xi1>, vector<8x128xf32>
    %509 = vector.shape_cast %502 : vector<8x1xi1> to vector<8x1xi1>
    %510 = vector.broadcast %509 : vector<8x1xi1> to vector<8x128xi1>
    %511 = arith.select %510, %498, %421 : vector<8x128xi1>, vector<8x128xf32>
    %512 = vector.shape_cast %502 : vector<8x1xi1> to vector<8x1xi1>
    %513 = vector.broadcast %512 : vector<8x1xi1> to vector<8x128xi1>
    %514 = arith.select %513, %494, %424 : vector<8x128xi1>, vector<8x128xf32>
    %c1_i32_164 = arith.constant 1 : i32
    %515 = vector.broadcast %c1_i32_164 : i32 to vector<8x1xi32>
    %516 = arith.subi %0, %515 : vector<8x1xi32>
    %517 = vector.broadcast %432 : i32 to vector<8x1xi32>
    %518 = arith.cmpi eq, %517, %516 : vector<8x1xi32>
    %519 = vector.shape_cast %518 : vector<8x1xi1> to vector<8x1xi1>
    %520 = vector.broadcast %519 : vector<8x1xi1> to vector<8x128xi1>
    %521 = arith.select %520, %511, %431 : vector<8x128xi1>, vector<8x128xf32>
    %c4_i32_165 = arith.constant 4 : i32
    %c7_i32_166 = arith.constant 7 : i32
    %522 = arith.subi %c7_i32_166, %c4_i32_165 : i32
    %523 = arith.truncf %505 : vector<8x128xf32> to vector<8x128xbf16>
    %c0_167 = arith.constant 0 : index
    %c0_168 = arith.constant 0 : index
    %524 = vector.load %arg5[%c0_167, %c0_168] : memref<128x512xbf16, #tpu.memory_space<vmem>>, vector<128x512xbf16>
    %cst_169 = arith.constant dense<0.000000e+00> : vector<8x512xf32>
    %525 = tpu.matmul %523, %524, %cst_169 {dimension_numbers = #tpu.dot_dimension_numbers<[1], [0], [0], [1], [0, 0, 1, 1], [], []>} : vector<8x128xbf16>, vector<128x512xbf16>, vector<8x512xf32> -> vector<8x512xf32>
    %526 = arith.index_cast %c4_i32_165 : i32 to index
    %c0_170 = arith.constant 0 : index
    %c0_171 = arith.constant 0 : index
    %527 = vector.load %arg11[%526, %c0_170, %c0_171] : memref<8x8x512xbf16, #tpu.memory_space<vmem>>, vector<1x8x512xbf16>
    %528 = vector.shape_cast %527 : vector<1x8x512xbf16> to vector<8x512xbf16>
    %529 = arith.extf %528 : vector<8x512xbf16> to vector<8x512xf32>
    %530 = arith.addf %525, %529 : vector<8x512xf32>
    %531 = arith.truncf %511 : vector<8x128xf32> to vector<8x128xbf16>
    %c0_172 = arith.constant 0 : index
    %c0_173 = arith.constant 0 : index
    %532 = vector.load %arg6[%c0_172, %c0_173] : memref<128x512xbf16, #tpu.memory_space<vmem>>, vector<128x512xbf16>
    %cst_174 = arith.constant dense<0.000000e+00> : vector<8x512xf32>
    %533 = tpu.matmul %531, %532, %cst_174 {dimension_numbers = #tpu.dot_dimension_numbers<[1], [0], [0], [1], [0, 0, 1, 1], [], []>} : vector<8x128xbf16>, vector<128x512xbf16>, vector<8x512xf32> -> vector<8x512xf32>
    %534 = arith.index_cast %522 : i32 to index
    %c0_175 = arith.constant 0 : index
    %c0_176 = arith.constant 0 : index
    %535 = vector.load %arg12[%534, %c0_175, %c0_176] : memref<8x8x512xbf16, #tpu.memory_space<vmem>>, vector<1x8x512xbf16>
    %536 = vector.shape_cast %535 : vector<1x8x512xbf16> to vector<8x512xbf16>
    %537 = arith.extf %536 : vector<8x512xbf16> to vector<8x512xf32>
    %538 = arith.addf %533, %537 : vector<8x512xf32>
    %539 = vector.extract_strided_slice %530 {offsets = [0, 0], sizes = [8, 128], strides = [1, 1]} : vector<8x512xf32> to vector<8x128xf32>
    %540 = arith.negf %539 : vector<8x128xf32>
    %541 = math.exp %540 : vector<8x128xf32>
    %cst_177 = arith.constant 1.000000e+00 : f32
    %542 = vector.broadcast %cst_177 : f32 to vector<8x128xf32>
    %543 = arith.addf %542, %541 : vector<8x128xf32>
    %544 = arith.divf %542, %543 : vector<8x128xf32>
    %545 = vector.extract_strided_slice %530 {offsets = [0, 128], sizes = [8, 128], strides = [1, 1]} : vector<8x512xf32> to vector<8x128xf32>
    %546 = arith.negf %545 : vector<8x128xf32>
    %547 = math.exp %546 : vector<8x128xf32>
    %cst_178 = arith.constant 1.000000e+00 : f32
    %548 = vector.broadcast %cst_178 : f32 to vector<8x128xf32>
    %549 = arith.addf %548, %547 : vector<8x128xf32>
    %550 = arith.divf %548, %549 : vector<8x128xf32>
    %551 = vector.extract_strided_slice %530 {offsets = [0, 256], sizes = [8, 128], strides = [1, 1]} : vector<8x512xf32> to vector<8x128xf32>
    %552 = math.tanh %551 : vector<8x128xf32>
    %553 = vector.extract_strided_slice %530 {offsets = [0, 384], sizes = [8, 128], strides = [1, 1]} : vector<8x512xf32> to vector<8x128xf32>
    %554 = arith.negf %553 : vector<8x128xf32>
    %555 = math.exp %554 : vector<8x128xf32>
    %cst_179 = arith.constant 1.000000e+00 : f32
    %556 = vector.broadcast %cst_179 : f32 to vector<8x128xf32>
    %557 = arith.addf %556, %555 : vector<8x128xf32>
    %558 = arith.divf %556, %557 : vector<8x128xf32>
    %559 = vector.extract_strided_slice %538 {offsets = [0, 0], sizes = [8, 128], strides = [1, 1]} : vector<8x512xf32> to vector<8x128xf32>
    %560 = arith.negf %559 : vector<8x128xf32>
    %561 = math.exp %560 : vector<8x128xf32>
    %cst_180 = arith.constant 1.000000e+00 : f32
    %562 = vector.broadcast %cst_180 : f32 to vector<8x128xf32>
    %563 = arith.addf %562, %561 : vector<8x128xf32>
    %564 = arith.divf %562, %563 : vector<8x128xf32>
    %565 = vector.extract_strided_slice %538 {offsets = [0, 128], sizes = [8, 128], strides = [1, 1]} : vector<8x512xf32> to vector<8x128xf32>
    %566 = arith.negf %565 : vector<8x128xf32>
    %567 = math.exp %566 : vector<8x128xf32>
    %cst_181 = arith.constant 1.000000e+00 : f32
    %568 = vector.broadcast %cst_181 : f32 to vector<8x128xf32>
    %569 = arith.addf %568, %567 : vector<8x128xf32>
    %570 = arith.divf %568, %569 : vector<8x128xf32>
    %571 = vector.extract_strided_slice %538 {offsets = [0, 256], sizes = [8, 128], strides = [1, 1]} : vector<8x512xf32> to vector<8x128xf32>
    %572 = math.tanh %571 : vector<8x128xf32>
    %573 = vector.extract_strided_slice %538 {offsets = [0, 384], sizes = [8, 128], strides = [1, 1]} : vector<8x512xf32> to vector<8x128xf32>
    %574 = arith.negf %573 : vector<8x128xf32>
    %575 = math.exp %574 : vector<8x128xf32>
    %cst_182 = arith.constant 1.000000e+00 : f32
    %576 = vector.broadcast %cst_182 : f32 to vector<8x128xf32>
    %577 = arith.addf %576, %575 : vector<8x128xf32>
    %578 = arith.divf %576, %577 : vector<8x128xf32>
    %579 = arith.mulf %550, %508 : vector<8x128xf32>
    %580 = arith.mulf %544, %552 : vector<8x128xf32>
    %581 = arith.addf %579, %580 : vector<8x128xf32>
    %582 = arith.mulf %570, %514 : vector<8x128xf32>
    %583 = arith.mulf %564, %572 : vector<8x128xf32>
    %584 = arith.addf %582, %583 : vector<8x128xf32>
    %585 = math.tanh %581 : vector<8x128xf32>
    %586 = arith.mulf %558, %585 : vector<8x128xf32>
    %587 = math.tanh %584 : vector<8x128xf32>
    %588 = arith.mulf %578, %587 : vector<8x128xf32>
    %589 = vector.broadcast %c4_i32_165 : i32 to vector<8x1xi32>
    %590 = arith.cmpi slt, %589, %0 : vector<8x1xi32>
    %591 = vector.broadcast %522 : i32 to vector<8x1xi32>
    %592 = arith.cmpi slt, %591, %0 : vector<8x1xi32>
    %593 = vector.shape_cast %590 : vector<8x1xi1> to vector<8x1xi1>
    %594 = vector.broadcast %593 : vector<8x1xi1> to vector<8x128xi1>
    %595 = arith.select %594, %586, %505 : vector<8x128xi1>, vector<8x128xf32>
    %596 = vector.shape_cast %590 : vector<8x1xi1> to vector<8x1xi1>
    %597 = vector.broadcast %596 : vector<8x1xi1> to vector<8x128xi1>
    %598 = arith.select %597, %581, %508 : vector<8x128xi1>, vector<8x128xf32>
    %599 = vector.shape_cast %592 : vector<8x1xi1> to vector<8x1xi1>
    %600 = vector.broadcast %599 : vector<8x1xi1> to vector<8x128xi1>
    %601 = arith.select %600, %588, %511 : vector<8x128xi1>, vector<8x128xf32>
    %602 = vector.shape_cast %592 : vector<8x1xi1> to vector<8x1xi1>
    %603 = vector.broadcast %602 : vector<8x1xi1> to vector<8x128xi1>
    %604 = arith.select %603, %584, %514 : vector<8x128xi1>, vector<8x128xf32>
    %c1_i32_183 = arith.constant 1 : i32
    %605 = vector.broadcast %c1_i32_183 : i32 to vector<8x1xi32>
    %606 = arith.subi %0, %605 : vector<8x1xi32>
    %607 = vector.broadcast %522 : i32 to vector<8x1xi32>
    %608 = arith.cmpi eq, %607, %606 : vector<8x1xi32>
    %609 = vector.shape_cast %608 : vector<8x1xi1> to vector<8x1xi1>
    %610 = vector.broadcast %609 : vector<8x1xi1> to vector<8x128xi1>
    %611 = arith.select %610, %601, %521 : vector<8x128xi1>, vector<8x128xf32>
    %c5_i32_184 = arith.constant 5 : i32
    %c7_i32_185 = arith.constant 7 : i32
    %612 = arith.subi %c7_i32_185, %c5_i32_184 : i32
    %613 = arith.truncf %595 : vector<8x128xf32> to vector<8x128xbf16>
    %c0_186 = arith.constant 0 : index
    %c0_187 = arith.constant 0 : index
    %614 = vector.load %arg5[%c0_186, %c0_187] : memref<128x512xbf16, #tpu.memory_space<vmem>>, vector<128x512xbf16>
    %cst_188 = arith.constant dense<0.000000e+00> : vector<8x512xf32>
    %615 = tpu.matmul %613, %614, %cst_188 {dimension_numbers = #tpu.dot_dimension_numbers<[1], [0], [0], [1], [0, 0, 1, 1], [], []>} : vector<8x128xbf16>, vector<128x512xbf16>, vector<8x512xf32> -> vector<8x512xf32>
    %616 = arith.index_cast %c5_i32_184 : i32 to index
    %c0_189 = arith.constant 0 : index
    %c0_190 = arith.constant 0 : index
    %617 = vector.load %arg11[%616, %c0_189, %c0_190] : memref<8x8x512xbf16, #tpu.memory_space<vmem>>, vector<1x8x512xbf16>
    %618 = vector.shape_cast %617 : vector<1x8x512xbf16> to vector<8x512xbf16>
    %619 = arith.extf %618 : vector<8x512xbf16> to vector<8x512xf32>
    %620 = arith.addf %615, %619 : vector<8x512xf32>
    %621 = arith.truncf %601 : vector<8x128xf32> to vector<8x128xbf16>
    %c0_191 = arith.constant 0 : index
    %c0_192 = arith.constant 0 : index
    %622 = vector.load %arg6[%c0_191, %c0_192] : memref<128x512xbf16, #tpu.memory_space<vmem>>, vector<128x512xbf16>
    %cst_193 = arith.constant dense<0.000000e+00> : vector<8x512xf32>
    %623 = tpu.matmul %621, %622, %cst_193 {dimension_numbers = #tpu.dot_dimension_numbers<[1], [0], [0], [1], [0, 0, 1, 1], [], []>} : vector<8x128xbf16>, vector<128x512xbf16>, vector<8x512xf32> -> vector<8x512xf32>
    %624 = arith.index_cast %612 : i32 to index
    %c0_194 = arith.constant 0 : index
    %c0_195 = arith.constant 0 : index
    %625 = vector.load %arg12[%624, %c0_194, %c0_195] : memref<8x8x512xbf16, #tpu.memory_space<vmem>>, vector<1x8x512xbf16>
    %626 = vector.shape_cast %625 : vector<1x8x512xbf16> to vector<8x512xbf16>
    %627 = arith.extf %626 : vector<8x512xbf16> to vector<8x512xf32>
    %628 = arith.addf %623, %627 : vector<8x512xf32>
    %629 = vector.extract_strided_slice %620 {offsets = [0, 0], sizes = [8, 128], strides = [1, 1]} : vector<8x512xf32> to vector<8x128xf32>
    %630 = arith.negf %629 : vector<8x128xf32>
    %631 = math.exp %630 : vector<8x128xf32>
    %cst_196 = arith.constant 1.000000e+00 : f32
    %632 = vector.broadcast %cst_196 : f32 to vector<8x128xf32>
    %633 = arith.addf %632, %631 : vector<8x128xf32>
    %634 = arith.divf %632, %633 : vector<8x128xf32>
    %635 = vector.extract_strided_slice %620 {offsets = [0, 128], sizes = [8, 128], strides = [1, 1]} : vector<8x512xf32> to vector<8x128xf32>
    %636 = arith.negf %635 : vector<8x128xf32>
    %637 = math.exp %636 : vector<8x128xf32>
    %cst_197 = arith.constant 1.000000e+00 : f32
    %638 = vector.broadcast %cst_197 : f32 to vector<8x128xf32>
    %639 = arith.addf %638, %637 : vector<8x128xf32>
    %640 = arith.divf %638, %639 : vector<8x128xf32>
    %641 = vector.extract_strided_slice %620 {offsets = [0, 256], sizes = [8, 128], strides = [1, 1]} : vector<8x512xf32> to vector<8x128xf32>
    %642 = math.tanh %641 : vector<8x128xf32>
    %643 = vector.extract_strided_slice %620 {offsets = [0, 384], sizes = [8, 128], strides = [1, 1]} : vector<8x512xf32> to vector<8x128xf32>
    %644 = arith.negf %643 : vector<8x128xf32>
    %645 = math.exp %644 : vector<8x128xf32>
    %cst_198 = arith.constant 1.000000e+00 : f32
    %646 = vector.broadcast %cst_198 : f32 to vector<8x128xf32>
    %647 = arith.addf %646, %645 : vector<8x128xf32>
    %648 = arith.divf %646, %647 : vector<8x128xf32>
    %649 = vector.extract_strided_slice %628 {offsets = [0, 0], sizes = [8, 128], strides = [1, 1]} : vector<8x512xf32> to vector<8x128xf32>
    %650 = arith.negf %649 : vector<8x128xf32>
    %651 = math.exp %650 : vector<8x128xf32>
    %cst_199 = arith.constant 1.000000e+00 : f32
    %652 = vector.broadcast %cst_199 : f32 to vector<8x128xf32>
    %653 = arith.addf %652, %651 : vector<8x128xf32>
    %654 = arith.divf %652, %653 : vector<8x128xf32>
    %655 = vector.extract_strided_slice %628 {offsets = [0, 128], sizes = [8, 128], strides = [1, 1]} : vector<8x512xf32> to vector<8x128xf32>
    %656 = arith.negf %655 : vector<8x128xf32>
    %657 = math.exp %656 : vector<8x128xf32>
    %cst_200 = arith.constant 1.000000e+00 : f32
    %658 = vector.broadcast %cst_200 : f32 to vector<8x128xf32>
    %659 = arith.addf %658, %657 : vector<8x128xf32>
    %660 = arith.divf %658, %659 : vector<8x128xf32>
    %661 = vector.extract_strided_slice %628 {offsets = [0, 256], sizes = [8, 128], strides = [1, 1]} : vector<8x512xf32> to vector<8x128xf32>
    %662 = math.tanh %661 : vector<8x128xf32>
    %663 = vector.extract_strided_slice %628 {offsets = [0, 384], sizes = [8, 128], strides = [1, 1]} : vector<8x512xf32> to vector<8x128xf32>
    %664 = arith.negf %663 : vector<8x128xf32>
    %665 = math.exp %664 : vector<8x128xf32>
    %cst_201 = arith.constant 1.000000e+00 : f32
    %666 = vector.broadcast %cst_201 : f32 to vector<8x128xf32>
    %667 = arith.addf %666, %665 : vector<8x128xf32>
    %668 = arith.divf %666, %667 : vector<8x128xf32>
    %669 = arith.mulf %640, %598 : vector<8x128xf32>
    %670 = arith.mulf %634, %642 : vector<8x128xf32>
    %671 = arith.addf %669, %670 : vector<8x128xf32>
    %672 = arith.mulf %660, %604 : vector<8x128xf32>
    %673 = arith.mulf %654, %662 : vector<8x128xf32>
    %674 = arith.addf %672, %673 : vector<8x128xf32>
    %675 = math.tanh %671 : vector<8x128xf32>
    %676 = arith.mulf %648, %675 : vector<8x128xf32>
    %677 = math.tanh %674 : vector<8x128xf32>
    %678 = arith.mulf %668, %677 : vector<8x128xf32>
    %679 = vector.broadcast %c5_i32_184 : i32 to vector<8x1xi32>
    %680 = arith.cmpi slt, %679, %0 : vector<8x1xi32>
    %681 = vector.broadcast %612 : i32 to vector<8x1xi32>
    %682 = arith.cmpi slt, %681, %0 : vector<8x1xi32>
    %683 = vector.shape_cast %680 : vector<8x1xi1> to vector<8x1xi1>
    %684 = vector.broadcast %683 : vector<8x1xi1> to vector<8x128xi1>
    %685 = arith.select %684, %676, %595 : vector<8x128xi1>, vector<8x128xf32>
    %686 = vector.shape_cast %680 : vector<8x1xi1> to vector<8x1xi1>
    %687 = vector.broadcast %686 : vector<8x1xi1> to vector<8x128xi1>
    %688 = arith.select %687, %671, %598 : vector<8x128xi1>, vector<8x128xf32>
    %689 = vector.shape_cast %682 : vector<8x1xi1> to vector<8x1xi1>
    %690 = vector.broadcast %689 : vector<8x1xi1> to vector<8x128xi1>
    %691 = arith.select %690, %678, %601 : vector<8x128xi1>, vector<8x128xf32>
    %692 = vector.shape_cast %682 : vector<8x1xi1> to vector<8x1xi1>
    %693 = vector.broadcast %692 : vector<8x1xi1> to vector<8x128xi1>
    %694 = arith.select %693, %674, %604 : vector<8x128xi1>, vector<8x128xf32>
    %c1_i32_202 = arith.constant 1 : i32
    %695 = vector.broadcast %c1_i32_202 : i32 to vector<8x1xi32>
    %696 = arith.subi %0, %695 : vector<8x1xi32>
    %697 = vector.broadcast %612 : i32 to vector<8x1xi32>
    %698 = arith.cmpi eq, %697, %696 : vector<8x1xi32>
    %699 = vector.shape_cast %698 : vector<8x1xi1> to vector<8x1xi1>
    %700 = vector.broadcast %699 : vector<8x1xi1> to vector<8x128xi1>
    %701 = arith.select %700, %691, %611 : vector<8x128xi1>, vector<8x128xf32>
    %c6_i32_203 = arith.constant 6 : i32
    %c7_i32_204 = arith.constant 7 : i32
    %702 = arith.subi %c7_i32_204, %c6_i32_203 : i32
    %703 = arith.truncf %685 : vector<8x128xf32> to vector<8x128xbf16>
    %c0_205 = arith.constant 0 : index
    %c0_206 = arith.constant 0 : index
    %704 = vector.load %arg5[%c0_205, %c0_206] : memref<128x512xbf16, #tpu.memory_space<vmem>>, vector<128x512xbf16>
    %cst_207 = arith.constant dense<0.000000e+00> : vector<8x512xf32>
    %705 = tpu.matmul %703, %704, %cst_207 {dimension_numbers = #tpu.dot_dimension_numbers<[1], [0], [0], [1], [0, 0, 1, 1], [], []>} : vector<8x128xbf16>, vector<128x512xbf16>, vector<8x512xf32> -> vector<8x512xf32>
    %706 = arith.index_cast %c6_i32_203 : i32 to index
    %c0_208 = arith.constant 0 : index
    %c0_209 = arith.constant 0 : index
    %707 = vector.load %arg11[%706, %c0_208, %c0_209] : memref<8x8x512xbf16, #tpu.memory_space<vmem>>, vector<1x8x512xbf16>
    %708 = vector.shape_cast %707 : vector<1x8x512xbf16> to vector<8x512xbf16>
    %709 = arith.extf %708 : vector<8x512xbf16> to vector<8x512xf32>
    %710 = arith.addf %705, %709 : vector<8x512xf32>
    %711 = arith.truncf %691 : vector<8x128xf32> to vector<8x128xbf16>
    %c0_210 = arith.constant 0 : index
    %c0_211 = arith.constant 0 : index
    %712 = vector.load %arg6[%c0_210, %c0_211] : memref<128x512xbf16, #tpu.memory_space<vmem>>, vector<128x512xbf16>
    %cst_212 = arith.constant dense<0.000000e+00> : vector<8x512xf32>
    %713 = tpu.matmul %711, %712, %cst_212 {dimension_numbers = #tpu.dot_dimension_numbers<[1], [0], [0], [1], [0, 0, 1, 1], [], []>} : vector<8x128xbf16>, vector<128x512xbf16>, vector<8x512xf32> -> vector<8x512xf32>
    %714 = arith.index_cast %702 : i32 to index
    %c0_213 = arith.constant 0 : index
    %c0_214 = arith.constant 0 : index
    %715 = vector.load %arg12[%714, %c0_213, %c0_214] : memref<8x8x512xbf16, #tpu.memory_space<vmem>>, vector<1x8x512xbf16>
    %716 = vector.shape_cast %715 : vector<1x8x512xbf16> to vector<8x512xbf16>
    %717 = arith.extf %716 : vector<8x512xbf16> to vector<8x512xf32>
    %718 = arith.addf %713, %717 : vector<8x512xf32>
    %719 = vector.extract_strided_slice %710 {offsets = [0, 0], sizes = [8, 128], strides = [1, 1]} : vector<8x512xf32> to vector<8x128xf32>
    %720 = arith.negf %719 : vector<8x128xf32>
    %721 = math.exp %720 : vector<8x128xf32>
    %cst_215 = arith.constant 1.000000e+00 : f32
    %722 = vector.broadcast %cst_215 : f32 to vector<8x128xf32>
    %723 = arith.addf %722, %721 : vector<8x128xf32>
    %724 = arith.divf %722, %723 : vector<8x128xf32>
    %725 = vector.extract_strided_slice %710 {offsets = [0, 128], sizes = [8, 128], strides = [1, 1]} : vector<8x512xf32> to vector<8x128xf32>
    %726 = arith.negf %725 : vector<8x128xf32>
    %727 = math.exp %726 : vector<8x128xf32>
    %cst_216 = arith.constant 1.000000e+00 : f32
    %728 = vector.broadcast %cst_216 : f32 to vector<8x128xf32>
    %729 = arith.addf %728, %727 : vector<8x128xf32>
    %730 = arith.divf %728, %729 : vector<8x128xf32>
    %731 = vector.extract_strided_slice %710 {offsets = [0, 256], sizes = [8, 128], strides = [1, 1]} : vector<8x512xf32> to vector<8x128xf32>
    %732 = math.tanh %731 : vector<8x128xf32>
    %733 = vector.extract_strided_slice %710 {offsets = [0, 384], sizes = [8, 128], strides = [1, 1]} : vector<8x512xf32> to vector<8x128xf32>
    %734 = arith.negf %733 : vector<8x128xf32>
    %735 = math.exp %734 : vector<8x128xf32>
    %cst_217 = arith.constant 1.000000e+00 : f32
    %736 = vector.broadcast %cst_217 : f32 to vector<8x128xf32>
    %737 = arith.addf %736, %735 : vector<8x128xf32>
    %738 = arith.divf %736, %737 : vector<8x128xf32>
    %739 = vector.extract_strided_slice %718 {offsets = [0, 0], sizes = [8, 128], strides = [1, 1]} : vector<8x512xf32> to vector<8x128xf32>
    %740 = arith.negf %739 : vector<8x128xf32>
    %741 = math.exp %740 : vector<8x128xf32>
    %cst_218 = arith.constant 1.000000e+00 : f32
    %742 = vector.broadcast %cst_218 : f32 to vector<8x128xf32>
    %743 = arith.addf %742, %741 : vector<8x128xf32>
    %744 = arith.divf %742, %743 : vector<8x128xf32>
    %745 = vector.extract_strided_slice %718 {offsets = [0, 128], sizes = [8, 128], strides = [1, 1]} : vector<8x512xf32> to vector<8x128xf32>
    %746 = arith.negf %745 : vector<8x128xf32>
    %747 = math.exp %746 : vector<8x128xf32>
    %cst_219 = arith.constant 1.000000e+00 : f32
    %748 = vector.broadcast %cst_219 : f32 to vector<8x128xf32>
    %749 = arith.addf %748, %747 : vector<8x128xf32>
    %750 = arith.divf %748, %749 : vector<8x128xf32>
    %751 = vector.extract_strided_slice %718 {offsets = [0, 256], sizes = [8, 128], strides = [1, 1]} : vector<8x512xf32> to vector<8x128xf32>
    %752 = math.tanh %751 : vector<8x128xf32>
    %753 = vector.extract_strided_slice %718 {offsets = [0, 384], sizes = [8, 128], strides = [1, 1]} : vector<8x512xf32> to vector<8x128xf32>
    %754 = arith.negf %753 : vector<8x128xf32>
    %755 = math.exp %754 : vector<8x128xf32>
    %cst_220 = arith.constant 1.000000e+00 : f32
    %756 = vector.broadcast %cst_220 : f32 to vector<8x128xf32>
    %757 = arith.addf %756, %755 : vector<8x128xf32>
    %758 = arith.divf %756, %757 : vector<8x128xf32>
    %759 = arith.mulf %730, %688 : vector<8x128xf32>
    %760 = arith.mulf %724, %732 : vector<8x128xf32>
    %761 = arith.addf %759, %760 : vector<8x128xf32>
    %762 = arith.mulf %750, %694 : vector<8x128xf32>
    %763 = arith.mulf %744, %752 : vector<8x128xf32>
    %764 = arith.addf %762, %763 : vector<8x128xf32>
    %765 = math.tanh %761 : vector<8x128xf32>
    %766 = arith.mulf %738, %765 : vector<8x128xf32>
    %767 = math.tanh %764 : vector<8x128xf32>
    %768 = arith.mulf %758, %767 : vector<8x128xf32>
    %769 = vector.broadcast %c6_i32_203 : i32 to vector<8x1xi32>
    %770 = arith.cmpi slt, %769, %0 : vector<8x1xi32>
    %771 = vector.broadcast %702 : i32 to vector<8x1xi32>
    %772 = arith.cmpi slt, %771, %0 : vector<8x1xi32>
    %773 = vector.shape_cast %770 : vector<8x1xi1> to vector<8x1xi1>
    %774 = vector.broadcast %773 : vector<8x1xi1> to vector<8x128xi1>
    %775 = arith.select %774, %766, %685 : vector<8x128xi1>, vector<8x128xf32>
    %776 = vector.shape_cast %770 : vector<8x1xi1> to vector<8x1xi1>
    %777 = vector.broadcast %776 : vector<8x1xi1> to vector<8x128xi1>
    %778 = arith.select %777, %761, %688 : vector<8x128xi1>, vector<8x128xf32>
    %779 = vector.shape_cast %772 : vector<8x1xi1> to vector<8x1xi1>
    %780 = vector.broadcast %779 : vector<8x1xi1> to vector<8x128xi1>
    %781 = arith.select %780, %768, %691 : vector<8x128xi1>, vector<8x128xf32>
    %782 = vector.shape_cast %772 : vector<8x1xi1> to vector<8x1xi1>
    %783 = vector.broadcast %782 : vector<8x1xi1> to vector<8x128xi1>
    %784 = arith.select %783, %764, %694 : vector<8x128xi1>, vector<8x128xf32>
    %c1_i32_221 = arith.constant 1 : i32
    %785 = vector.broadcast %c1_i32_221 : i32 to vector<8x1xi32>
    %786 = arith.subi %0, %785 : vector<8x1xi32>
    %787 = vector.broadcast %702 : i32 to vector<8x1xi32>
    %788 = arith.cmpi eq, %787, %786 : vector<8x1xi32>
    %789 = vector.shape_cast %788 : vector<8x1xi1> to vector<8x1xi1>
    %790 = vector.broadcast %789 : vector<8x1xi1> to vector<8x128xi1>
    %791 = arith.select %790, %781, %701 : vector<8x128xi1>, vector<8x128xf32>
    %c7_i32_222 = arith.constant 7 : i32
    %c7_i32_223 = arith.constant 7 : i32
    %792 = arith.subi %c7_i32_223, %c7_i32_222 : i32
    %793 = arith.truncf %775 : vector<8x128xf32> to vector<8x128xbf16>
    %c0_224 = arith.constant 0 : index
    %c0_225 = arith.constant 0 : index
    %794 = vector.load %arg5[%c0_224, %c0_225] : memref<128x512xbf16, #tpu.memory_space<vmem>>, vector<128x512xbf16>
    %cst_226 = arith.constant dense<0.000000e+00> : vector<8x512xf32>
    %795 = tpu.matmul %793, %794, %cst_226 {dimension_numbers = #tpu.dot_dimension_numbers<[1], [0], [0], [1], [0, 0, 1, 1], [], []>} : vector<8x128xbf16>, vector<128x512xbf16>, vector<8x512xf32> -> vector<8x512xf32>
    %796 = arith.index_cast %c7_i32_222 : i32 to index
    %c0_227 = arith.constant 0 : index
    %c0_228 = arith.constant 0 : index
    %797 = vector.load %arg11[%796, %c0_227, %c0_228] : memref<8x8x512xbf16, #tpu.memory_space<vmem>>, vector<1x8x512xbf16>
    %798 = vector.shape_cast %797 : vector<1x8x512xbf16> to vector<8x512xbf16>
    %799 = arith.extf %798 : vector<8x512xbf16> to vector<8x512xf32>
    %800 = arith.addf %795, %799 : vector<8x512xf32>
    %801 = arith.truncf %781 : vector<8x128xf32> to vector<8x128xbf16>
    %c0_229 = arith.constant 0 : index
    %c0_230 = arith.constant 0 : index
    %802 = vector.load %arg6[%c0_229, %c0_230] : memref<128x512xbf16, #tpu.memory_space<vmem>>, vector<128x512xbf16>
    %cst_231 = arith.constant dense<0.000000e+00> : vector<8x512xf32>
    %803 = tpu.matmul %801, %802, %cst_231 {dimension_numbers = #tpu.dot_dimension_numbers<[1], [0], [0], [1], [0, 0, 1, 1], [], []>} : vector<8x128xbf16>, vector<128x512xbf16>, vector<8x512xf32> -> vector<8x512xf32>
    %804 = arith.index_cast %792 : i32 to index
    %c0_232 = arith.constant 0 : index
    %c0_233 = arith.constant 0 : index
    %805 = vector.load %arg12[%804, %c0_232, %c0_233] : memref<8x8x512xbf16, #tpu.memory_space<vmem>>, vector<1x8x512xbf16>
    %806 = vector.shape_cast %805 : vector<1x8x512xbf16> to vector<8x512xbf16>
    %807 = arith.extf %806 : vector<8x512xbf16> to vector<8x512xf32>
    %808 = arith.addf %803, %807 : vector<8x512xf32>
    %809 = vector.extract_strided_slice %800 {offsets = [0, 0], sizes = [8, 128], strides = [1, 1]} : vector<8x512xf32> to vector<8x128xf32>
    %810 = arith.negf %809 : vector<8x128xf32>
    %811 = math.exp %810 : vector<8x128xf32>
    %cst_234 = arith.constant 1.000000e+00 : f32
    %812 = vector.broadcast %cst_234 : f32 to vector<8x128xf32>
    %813 = arith.addf %812, %811 : vector<8x128xf32>
    %814 = arith.divf %812, %813 : vector<8x128xf32>
    %815 = vector.extract_strided_slice %800 {offsets = [0, 128], sizes = [8, 128], strides = [1, 1]} : vector<8x512xf32> to vector<8x128xf32>
    %816 = arith.negf %815 : vector<8x128xf32>
    %817 = math.exp %816 : vector<8x128xf32>
    %cst_235 = arith.constant 1.000000e+00 : f32
    %818 = vector.broadcast %cst_235 : f32 to vector<8x128xf32>
    %819 = arith.addf %818, %817 : vector<8x128xf32>
    %820 = arith.divf %818, %819 : vector<8x128xf32>
    %821 = vector.extract_strided_slice %800 {offsets = [0, 256], sizes = [8, 128], strides = [1, 1]} : vector<8x512xf32> to vector<8x128xf32>
    %822 = math.tanh %821 : vector<8x128xf32>
    %823 = vector.extract_strided_slice %800 {offsets = [0, 384], sizes = [8, 128], strides = [1, 1]} : vector<8x512xf32> to vector<8x128xf32>
    %824 = arith.negf %823 : vector<8x128xf32>
    %825 = math.exp %824 : vector<8x128xf32>
    %cst_236 = arith.constant 1.000000e+00 : f32
    %826 = vector.broadcast %cst_236 : f32 to vector<8x128xf32>
    %827 = arith.addf %826, %825 : vector<8x128xf32>
    %828 = arith.divf %826, %827 : vector<8x128xf32>
    %829 = vector.extract_strided_slice %808 {offsets = [0, 0], sizes = [8, 128], strides = [1, 1]} : vector<8x512xf32> to vector<8x128xf32>
    %830 = arith.negf %829 : vector<8x128xf32>
    %831 = math.exp %830 : vector<8x128xf32>
    %cst_237 = arith.constant 1.000000e+00 : f32
    %832 = vector.broadcast %cst_237 : f32 to vector<8x128xf32>
    %833 = arith.addf %832, %831 : vector<8x128xf32>
    %834 = arith.divf %832, %833 : vector<8x128xf32>
    %835 = vector.extract_strided_slice %808 {offsets = [0, 128], sizes = [8, 128], strides = [1, 1]} : vector<8x512xf32> to vector<8x128xf32>
    %836 = arith.negf %835 : vector<8x128xf32>
    %837 = math.exp %836 : vector<8x128xf32>
    %cst_238 = arith.constant 1.000000e+00 : f32
    %838 = vector.broadcast %cst_238 : f32 to vector<8x128xf32>
    %839 = arith.addf %838, %837 : vector<8x128xf32>
    %840 = arith.divf %838, %839 : vector<8x128xf32>
    %841 = vector.extract_strided_slice %808 {offsets = [0, 256], sizes = [8, 128], strides = [1, 1]} : vector<8x512xf32> to vector<8x128xf32>
    %842 = math.tanh %841 : vector<8x128xf32>
    %843 = vector.extract_strided_slice %808 {offsets = [0, 384], sizes = [8, 128], strides = [1, 1]} : vector<8x512xf32> to vector<8x128xf32>
    %844 = arith.negf %843 : vector<8x128xf32>
    %845 = math.exp %844 : vector<8x128xf32>
    %cst_239 = arith.constant 1.000000e+00 : f32
    %846 = vector.broadcast %cst_239 : f32 to vector<8x128xf32>
    %847 = arith.addf %846, %845 : vector<8x128xf32>
    %848 = arith.divf %846, %847 : vector<8x128xf32>
    %849 = arith.mulf %820, %778 : vector<8x128xf32>
    %850 = arith.mulf %814, %822 : vector<8x128xf32>
    %851 = arith.addf %849, %850 : vector<8x128xf32>
    %852 = arith.mulf %840, %784 : vector<8x128xf32>
    %853 = arith.mulf %834, %842 : vector<8x128xf32>
    %854 = arith.addf %852, %853 : vector<8x128xf32>
    %855 = math.tanh %851 : vector<8x128xf32>
    %856 = arith.mulf %828, %855 : vector<8x128xf32>
    %857 = math.tanh %854 : vector<8x128xf32>
    %858 = arith.mulf %848, %857 : vector<8x128xf32>
    %859 = vector.broadcast %c7_i32_222 : i32 to vector<8x1xi32>
    %860 = arith.cmpi slt, %859, %0 : vector<8x1xi32>
    %861 = vector.broadcast %792 : i32 to vector<8x1xi32>
    %862 = arith.cmpi slt, %861, %0 : vector<8x1xi32>
    %863 = vector.shape_cast %860 : vector<8x1xi1> to vector<8x1xi1>
    %864 = vector.broadcast %863 : vector<8x1xi1> to vector<8x128xi1>
    %865 = arith.select %864, %856, %775 : vector<8x128xi1>, vector<8x128xf32>
    %866 = vector.shape_cast %860 : vector<8x1xi1> to vector<8x1xi1>
    %867 = vector.broadcast %866 : vector<8x1xi1> to vector<8x128xi1>
    %868 = arith.select %867, %851, %778 : vector<8x128xi1>, vector<8x128xf32>
    %869 = vector.shape_cast %862 : vector<8x1xi1> to vector<8x1xi1>
    %870 = vector.broadcast %869 : vector<8x1xi1> to vector<8x128xi1>
    %871 = arith.select %870, %858, %781 : vector<8x128xi1>, vector<8x128xf32>
    %872 = vector.shape_cast %862 : vector<8x1xi1> to vector<8x1xi1>
    %873 = vector.broadcast %872 : vector<8x1xi1> to vector<8x128xi1>
    %874 = arith.select %873, %854, %784 : vector<8x128xi1>, vector<8x128xf32>
    %c1_i32_240 = arith.constant 1 : i32
    %875 = vector.broadcast %c1_i32_240 : i32 to vector<8x1xi32>
    %876 = arith.subi %0, %875 : vector<8x1xi32>
    %877 = vector.broadcast %792 : i32 to vector<8x1xi32>
    %878 = arith.cmpi eq, %877, %876 : vector<8x1xi32>
    %879 = vector.shape_cast %878 : vector<8x1xi1> to vector<8x1xi1>
    %880 = vector.broadcast %879 : vector<8x1xi1> to vector<8x128xi1>
    %881 = arith.select %880, %871, %791 : vector<8x128xi1>, vector<8x128xf32>
    %c8_i32_241 = arith.constant 8 : i32
    %c0_242 = arith.constant 0 : index
    %c0_243 = arith.constant 0 : index
    %882 = vector.load %arg7[%c0_242, %c0_243] : memref<128x128xf32, #tpu.memory_space<vmem>>, vector<128x128xf32>
    %cst_244 = arith.constant dense<0.000000e+00> : vector<8x128xf32>
    %883 = tpu.matmul %865, %882, %cst_244 {dimension_numbers = #tpu.dot_dimension_numbers<[1], [0], [0], [1], [0, 0, 1, 1], [], []>} : vector<8x128xf32>, vector<128x128xf32>, vector<8x128xf32> -> vector<8x128xf32>
    %c0_245 = arith.constant 0 : index
    %c0_246 = arith.constant 0 : index
    %884 = vector.load %arg8[%c0_245, %c0_246] : memref<128x128xf32, #tpu.memory_space<vmem>>, vector<128x128xf32>
    %cst_247 = arith.constant dense<0.000000e+00> : vector<8x128xf32>
    %885 = tpu.matmul %881, %884, %cst_247 {dimension_numbers = #tpu.dot_dimension_numbers<[1], [0], [0], [1], [0, 0, 1, 1], [], []>} : vector<8x128xf32>, vector<128x128xf32>, vector<8x128xf32> -> vector<8x128xf32>
    %886 = arith.addf %883, %885 : vector<8x128xf32>
    %c0_248 = arith.constant 0 : index
    %c0_249 = arith.constant 0 : index
    %887 = vector.load %arg9[%c0_248, %c0_249] : memref<1x128xf32, #tpu.memory_space<vmem>>, vector<1x128xf32>
    %888 = vector.broadcast %887 : vector<1x128xf32> to vector<8x128xf32>
    %889 = arith.addf %886, %888 : vector<8x128xf32>
    %c0_250 = arith.constant 0 : index
    %c0_251 = arith.constant 0 : index
    %890 = vector.load %arg10[%c0_250, %c0_251] : memref<8x128xf32, #tpu.memory_space<vmem>>, vector<8x128xf32>
    tpu.vector_store %arg10[%c0_250, %c0_251], %889 {strides = array<i32>} : memref<8x128xf32, #tpu.memory_space<vmem>>, vector<8x128xf32>,
    return
  }
  func.func @transform_0(%arg0: i32) -> (i32, i32) {
    %c0_i32 = arith.constant 0 : i32
    %c0_i32_0 = arith.constant 0 : i32
    return %arg0, %c0_i32 : i32, i32
  }
  func.func @transform_1(%arg0: i32) -> (i32, i32, i32) {
    %c0_i32 = arith.constant 0 : i32
    %c0_i32_0 = arith.constant 0 : i32
    %c0_i32_1 = arith.constant 0 : i32
    return %c0_i32, %arg0, %c0_i32_0 : i32, i32, i32
  }
  func.func @transform_2(%arg0: i32) -> (i32, i32) {
    %c0_i32 = arith.constant 0 : i32
    %c0_i32_0 = arith.constant 0 : i32
    %c0_i32_1 = arith.constant 0 : i32
    return %c0_i32, %c0_i32_0 : i32, i32
  }
  func.func @transform_3(%arg0: i32) -> (i32, i32) {
    %c0_i32 = arith.constant 0 : i32
    %c0_i32_0 = arith.constant 0 : i32
    %c0_i32_1 = arith.constant 0 : i32
    return %c0_i32, %c0_i32_0 : i32, i32
  }
  func.func @transform_4(%arg0: i32) -> (i32, i32) {
    %c0_i32 = arith.constant 0 : i32
    %c0_i32_0 = arith.constant 0 : i32
    %c0_i32_1 = arith.constant 0 : i32
    return %c0_i32, %c0_i32_0 : i32, i32
  }
  func.func @transform_5(%arg0: i32) -> (i32, i32) {
    %c0_i32 = arith.constant 0 : i32
    %c0_i32_0 = arith.constant 0 : i32
    %c0_i32_1 = arith.constant 0 : i32
    return %c0_i32, %c0_i32_0 : i32, i32
  }
  func.func @transform_6(%arg0: i32) -> (i32, i32) {
    %c0_i32 = arith.constant 0 : i32
    %c0_i32_0 = arith.constant 0 : i32
    %c0_i32_1 = arith.constant 0 : i32
    return %c0_i32, %c0_i32_0 : i32, i32
  }
  func.func @transform_7(%arg0: i32) -> (i32, i32) {
    %c0_i32 = arith.constant 0 : i32
    %c0_i32_0 = arith.constant 0 : i32
    %c0_i32_1 = arith.constant 0 : i32
    return %c0_i32, %c0_i32_0 : i32, i32
  }
  func.func @transform_8(%arg0: i32) -> (i32, i32) {
    %c0_i32 = arith.constant 0 : i32
    %c0_i32_0 = arith.constant 0 : i32
    %c0_i32_1 = arith.constant 0 : i32
    return %c0_i32, %c0_i32_0 : i32, i32
  }
  func.func @transform_9(%arg0: i32) -> (i32, i32) {
    %c0_i32 = arith.constant 0 : i32
    %c0_i32_0 = arith.constant 0 : i32
    return %arg0, %c0_i32 : i32, i32
  }
}

</mosaic_0001>

<bundles_post_ra>
// kernel: tpu_custom_call.1
= control target key start
LH: loop header
LB: loop body
LE: loop exit
PB: predicated region body
PF: predicated region fallthrough
CT: control target
= control target key end

     0   :  { %14 = vsyncpa [#allocation5], 0  ;;  %s7990_s0 = inlined_call_operand.hbm [shape: s32[8,1], index: 0, kind: input, shape index: {}]   ;;  %s7991_s1 = inlined_call_operand.hbm [shape: bf16[8,8,16], index: 1, kind: input, shape index: {}]   ;;  %s7992_s2 = inlined_call_operand.hbm [shape: bf16[16,1024], index: 2, kind: input, shape index: {}]   ;;  %s7993_s3 = inlined_call_operand.hbm [shape: f32[1,1024], index: 3, kind: input, shape index: {}]   ;;  %s7994_s4 = inlined_call_operand.hbm [shape: bf16[128,512], index: 4, kind: input, shape index: {}]   ;;  %s7995_s5 = inlined_call_operand.hbm [shape: bf16[128,512], index: 5, kind: input, shape index: {}]   ;;  %s7996_s6 = inlined_call_operand.hbm [shape: f32[128,128], index: 6, kind: input, shape index: {}]   ;;  %s7997_s7 = inlined_call_operand.hbm [shape: f32[128,128], index: 7, kind: input, shape index: {}]   ;;  %s7998_s8 = inlined_call_operand.hbm [shape: f32[1,128], index: 8, kind: input, shape index: {}]   ;;  %s7999_s9 = inlined_call_operand.hbm [shape: f32[8,128], index: 9, kind: output, shape index: {}]  }
   0x1   :  { %15 = vsyncpa [#allocation8], 0 }
   0x2   :  { %16 = vsyncpa [#allocation11], 0 }
   0x3   :  { %17 = vsyncpa [#allocation14], 0 }
   0x4   :  { %18 = vsyncpa [#allocation17], 0 }
   0x5   :  { %19 = vsyncpa [#allocation6], 0  ;;  %s6224_s30 = smov [#allocation7]   ;;  %s5992_s13 = scalar_lea.hbm %s7991_s1, 512 }
   0x6   :  { %s35_s10 = sshll.u32 %s6224_s30, 4  ;;  %p5993_p0 = scmp.ne.s32.totalorder %s7991_s1, %s5992_s13  ;;  %s36_s10 = int_to_ptr.vmem [resolvable:$true] %s35_s10 }
   0x7   :  { %p5996_p1 = scmp.lt.u32.totalorder %s5992_s13, %s7991_s1 }
   0x9   :  { %p5998_p2 = pnand %p5996_p1, %p5993_p0 }
   0xb   :  { %6001 = shalt.err (!%p5998_p2)
}
   0xc   :  { %s6002_s18 = scalar_lea.vmem %s36_s10, 512  ;;  %p6007_p4 = scmp.lt.s32.totalorder %s36_s10, %s36_s10 }
   0xd   :  { %p6003_p3 = scmp.ne.s32.totalorder %s36_s10, %s6002_s18  ;;  %p6008_p5 = scmp.lt.s32.totalorder %s6002_s18, %s6002_s18 }
   0xf   :  { %p6009_p6 = por %p6008_p5, %p6007_p4 }
  0x11   :  { %p6010_p7 = pnand %p6009_p6, %p6003_p3 }
  0x13   :  { %6013 = shalt.err (!%p6010_p7)
}
  0x14   :  { %s6225_s19 = smov 64   ;;  %s6226_s20 = smov 4  }
  0x15   :  { %41 = dma.hbm_to_vmem [thread:$0]  %s7991_s1, 512, %s36_s10, [#allocation8], %s6225_s19, %s6225_s19, %s6226_s20  }
  0x16   :  { %s6227_s23 = smov [#allocation10]   ;;  %s6014_s27 = scalar_lea.hbm %s7993_s3, 128 }
  0x17   :  { %s60_s24 = sshll.u32 %s6227_s23, 4  ;;  %p6015_p8 = scmp.ne.s32.totalorder %s7993_s3, %s6014_s27  ;;  %s61_s24 = int_to_ptr.vmem [resolvable:$true] %s60_s24 }
  0x18   :  { %p6018_p9 = scmp.lt.u32.totalorder %s6014_s27, %s7993_s3 }
  0x1a   :  { %p6020_p10 = pnand %p6018_p9, %p6015_p8 }
  0x1c   :  { %6023 = shalt.err (!%p6020_p10)
}
  0x1d   :  { %s6024_s12 = scalar_lea.vmem %s61_s24, 128  ;;  %p6029_p12 = scmp.lt.s32.totalorder %s61_s24, %s61_s24 }
  0x1e   :  { %p6025_p11 = scmp.ne.s32.totalorder %s61_s24, %s6024_s12  ;;  %p6030_p13 = scmp.lt.s32.totalorder %s6024_s12, %s6024_s12 }
  0x20   :  { %p6031_p0 = por %p6030_p13, %p6029_p12 }
  0x22   :  { %p6032_p1 = pnand %p6031_p0, %p6025_p11 }
  0x24   :  { %6035 = shalt.err (!%p6032_p1)
}
  0x25   :  { %63 = dma.hbm_to_vmem [thread:$0]  %s7993_s3, 128, %s61_s24, [#allocation11]  }
  0x26   :  { %s6228_s13 = smov [#allocation13]   ;;  %s6036_s17 = scalar_lea.hbm %s7995_s5, 4096 }
  0x27   :  { %s81_s14 = sshll.u32 %s6228_s13, 4  ;;  %p6037_p2 = scmp.ne.s32.totalorder %s7995_s5, %s6036_s17  ;;  %s82_s14 = int_to_ptr.vmem [resolvable:$true] %s81_s14 }
  0x28   :  { %p6040_p3 = scmp.lt.u32.totalorder %s6036_s17, %s7995_s5 }
  0x2a   :  { %p6042_p4 = pnand %p6040_p3, %p6037_p2 }
  0x2c   :  { %6045 = shalt.err (!%p6042_p4)
}
  0x2d   :  { %s6046_s22 = scalar_lea.vmem %s82_s14, 4096  ;;  %p6051_p6 = scmp.lt.s32.totalorder %s82_s14, %s82_s14 }
  0x2e   :  { %p6047_p5 = scmp.ne.s32.totalorder %s82_s14, %s6046_s22  ;;  %p6052_p7 = scmp.lt.s32.totalorder %s6046_s22, %s6046_s22 }
  0x30   :  { %p6053_p8 = por %p6052_p7, %p6051_p6 }
  0x32   :  { %p6054_p9 = pnand %p6053_p8, %p6047_p5 }
  0x34   :  { %6057 = shalt.err (!%p6054_p9)
}
  0x35   :  { %s6229_s3 = smov 256   ;;  %s6230_s23 = smov 16  }
  0x36   :  { %87 = dma.hbm_to_vmem [thread:$0]  %s7995_s5, 4096, %s82_s14, [#allocation14], %s6229_s3, %s6229_s3, %s6230_s23  }
  0x37   :  { %s6231_s26 = smov [#allocation16]   ;;  %s6232_s28 = smov [#allocation4]  }
  0x38   :  { %s105_s27 = sshll.u32 %s6231_s26, 4  ;;  %s26_s29 = sshll.u32 %s6232_s28, 4  ;;  %s106_s27 = int_to_ptr.vmem [resolvable:$true] %s105_s27  ;;  %s27_s29 = int_to_ptr.vmem [resolvable:$true] %s26_s29 }
  0x39   :  { %s6058_s12 = scalar_lea.hbm %s7997_s7, 2048 }
  0x3a   :  { %p6059_p10 = scmp.ne.s32.totalorder %s7997_s7, %s6058_s12  ;;  %p6062_p11 = scmp.lt.u32.totalorder %s6058_s12, %s7997_s7 }
  0x3c   :  { %p6064_p12 = pnand %p6062_p11, %p6059_p10 }
  0x3e   :  { %6067 = shalt.err (!%p6064_p12)
}
  0x3f   :  { %s6068_s5 = scalar_lea.vmem %s106_s27, 2048  ;;  %p6073_p0 = scmp.lt.s32.totalorder %s106_s27, %s106_s27 }
  0x40   :  { %p6069_p13 = scmp.ne.s32.totalorder %s106_s27, %s6068_s5  ;;  %p6074_p1 = scmp.lt.s32.totalorder %s6068_s5, %s6068_s5 }
  0x42   :  { %p6075_p2 = por %p6074_p1, %p6073_p0 }
  0x44   :  { %p6076_p3 = pnand %p6075_p2, %p6069_p13 }
  0x46   :  { %6079 = shalt.err (!%p6076_p3)
}
  0x47   :  { %s6233_s14 = smov 128   ;;  %s6234_s16 = smov 8  }
  0x48   :  { %111 = dma.hbm_to_vmem [thread:$0]  %s7997_s7, 2048, %s106_s27, [#allocation17], %s6233_s14, %s6233_s14, %s6234_s16  }
  0x49   :  { %s6080_s21 = scalar_lea.hbm %s7990_s0, 128 }
  0x4a   :  { %p6081_p4 = scmp.ne.s32.totalorder %s7990_s0, %s6080_s21  ;;  %p6084_p5 = scmp.lt.u32.totalorder %s6080_s21, %s7990_s0 }
  0x4c   :  { %p6086_p6 = pnand %p6084_p5, %p6081_p4 }
  0x4e   :  { %6089 = shalt.err (!%p6086_p6)
}
  0x4f   :  { %s6090_s28 = scalar_lea.vmem %s27_s29, 128  ;;  %p6095_p8 = scmp.lt.s32.totalorder %s27_s29, %s27_s29 }
  0x50   :  { %p6091_p7 = scmp.ne.s32.totalorder %s27_s29, %s6090_s28  ;;  %p6096_p9 = scmp.lt.s32.totalorder %s6090_s28, %s6090_s28 }
  0x52   :  { %p6097_p10 = por %p6096_p9, %p6095_p8 }
  0x54   :  { %p6098_p11 = pnand %p6097_p10, %p6091_p7 }
  0x56   :  { %6101 = shalt.err (!%p6098_p11)
}
  0x57   :  { %29 = dma.hbm_to_vmem [thread:$0]  %s7990_s0, 128, %s27_s29, [#allocation5]  }
  0x58   :  { %s6235_s30 = smov [#allocation9]   ;;  %s6102_s10 = scalar_lea.hbm %s7992_s2, 1024 }
  0x59   :  { %s47_s11 = sshll.u32 %s6235_s30, 4  ;;  %p6103_p12 = scmp.ne.s32.totalorder %s7992_s2, %s6102_s10  ;;  %s48_s11 = int_to_ptr.vmem [resolvable:$true] %s47_s11 }
  0x5a   :  { %p6106_p13 = scmp.lt.u32.totalorder %s6102_s10, %s7992_s2 }
  0x5c   :  { %p6108_p0 = pnand %p6106_p13, %p6103_p12 }
  0x5e   :  { %6111 = shalt.err (!%p6108_p0)
}
  0x5f   :  { %s6112_s18 = scalar_lea.vmem %s48_s11, 1024  ;;  %p6117_p2 = scmp.lt.s32.totalorder %s48_s11, %s48_s11 }
  0x60   :  { %p6113_p1 = scmp.ne.s32.totalorder %s48_s11, %s6112_s18  ;;  %p6118_p3 = scmp.lt.s32.totalorder %s6112_s18, %s6112_s18 }
  0x62   :  { %p6119_p4 = por %p6118_p3, %p6117_p2 }
  0x64   :  { %p6120_p5 = pnand %p6119_p4, %p6113_p1 }
  0x66   :  { %6123 = shalt.err (!%p6120_p5)
}
  0x67   :  { %s6236_s0 = smov 512   ;;  %s6237_s29 = smov 32  }
  0x68   :  { %53 = dma.hbm_to_vmem [thread:$0]  %s7992_s2, 1024, %s48_s11, [#allocation8], %s6236_s0, %s6236_s0, %s6237_s29  }
  0x69   :  { %s6238_s21 = smov [#allocation12]   ;;  %s6239_s24 = smov [#allocation15]  }
  0x6a   :  { %s69_s22 = sshll.u32 %s6238_s21, 4  ;;  %s93_s25 = sshll.u32 %s6239_s24, 4  ;;  %s70_s22 = int_to_ptr.vmem [resolvable:$true] %s69_s22  ;;  %s6374_s25 = int_to_ptr.vmem [resolvable:$true] %s93_s25 }
  0x6b   :  { %s6124_s7 = scalar_lea.hbm %s7994_s4, 4096 }
  0x6c   :  { %p6125_p6 = scmp.ne.s32.totalorder %s7994_s4, %s6124_s7  ;;  %p6128_p7 = scmp.lt.u32.totalorder %s6124_s7, %s7994_s4 }
  0x6e   :  { %p6130_p8 = pnand %p6128_p7, %p6125_p6 }
  0x70   :  { %6133 = shalt.err (!%p6130_p8)
}
  0x71   :  { %s6134_s2 = scalar_lea.vmem %s70_s22, 4096  ;;  %p6139_p10 = scmp.lt.s32.totalorder %s70_s22, %s70_s22 }
  0x72   :  { %p6135_p9 = scmp.ne.s32.totalorder %s70_s22, %s6134_s2  ;;  %p6140_p11 = scmp.lt.s32.totalorder %s6134_s2, %s6134_s2 }
  0x74   :  { %p6141_p12 = por %p6140_p11, %p6139_p10 }
  0x76   :  { %p6142_p13 = pnand %p6141_p12, %p6135_p9 }
  0x78   :  { %6145 = shalt.err (!%p6142_p13)
}
  0x79   :  { %75 = dma.hbm_to_vmem [thread:$0]  %s7994_s4, 4096, %s70_s22, [#allocation11], %s6229_s3, %s6229_s3, %s6230_s23  }
  0x7a   :  { %s6146_s5 = scalar_lea.hbm %s7996_s6, 2048 }
  0x7b   :  { %p6147_p0 = scmp.ne.s32.totalorder %s7996_s6, %s6146_s5  ;;  %p6150_p1 = scmp.lt.u32.totalorder %s6146_s5, %s7996_s6 }
  0x7d   :  { %p6152_p2 = pnand %p6150_p1, %p6147_p0 }
  0x7f   :  { %6155 = shalt.err (!%p6152_p2)
}
  0x80   :  { %s6156_s19 = scalar_lea.vmem %s6374_s25, 2048  ;;  %p6161_p4 = scmp.lt.s32.totalorder %s6374_s25, %s6374_s25 }
  0x81   :  { %p6157_p3 = scmp.ne.s32.totalorder %s6374_s25, %s6156_s19  ;;  %p6162_p5 = scmp.lt.s32.totalorder %s6156_s19, %s6156_s19 }
  0x83   :  { %p6163_p6 = por %p6162_p5, %p6161_p4 }
  0x85   :  { %p6164_p7 = pnand %p6163_p6, %p6157_p3 }
  0x87   :  { %6167 = shalt.err (!%p6164_p7)
}
  0x88   :  { %99 = dma.hbm_to_vmem [thread:$0]  %s7996_s6, 2048, %s6374_s25, [#allocation14], %s6233_s14, %s6233_s14, %s6234_s16  }
  0x89   :  { %s6240_s23 = smov [#allocation18]   ;;  %s6168_s24 = scalar_lea.hbm %s7998_s8, 16 }
  0x8a   :  { %s118_s20 = sshll.u32 %s6240_s23, 4  ;;  %p6169_p8 = scmp.ne.s32.totalorder %s7998_s8, %s6168_s24  ;;  %s119_s20 = int_to_ptr.vmem [resolvable:$true] %s118_s20 }
  0x8b   :  { %p6172_p9 = scmp.lt.u32.totalorder %s6168_s24, %s7998_s8 }
  0x8d   :  { %p6174_p10 = pnand %p6172_p9, %p6169_p8 }
  0x8f   :  { %6177 = shalt.err (!%p6174_p10)
}
  0x90   :  { %s6178_s30 = scalar_lea.vmem %s119_s20, 16  ;;  %s6182_s6 = scalar_lea.vmem %s119_s20, 32 }
  0x91   :  { %p6179_p11 = scmp.ne.s32.totalorder %s119_s20, %s6178_s30  ;;  %p6183_p12 = scmp.lt.s32.totalorder %s119_s20, %s119_s20 }
  0x92   :  { %p6184_p13 = scmp.lt.s32.totalorder %s6182_s6, %s6178_s30 }
  0x94   :  { %p6185_p0 = por %p6184_p13, %p6183_p12 }
  0x96   :  { %p6186_p1 = pnand %p6185_p0, %p6179_p11 }
  0x98   :  { %6189 = shalt.err (!%p6186_p1)
}
  0x99   :  { %121 = dma.hbm_to_vmem [thread:$0]  %s7998_s8, 16, %s119_s20, [#allocation17]  }
  0x9a   :  { %6212 = dma.done.wait [#allocation5], 128  }
  0x9b   :  { %6213 = vsyncadd [#allocation5], 4294967168 }
  0x9c   :  { %6214 = dma.done.wait [#allocation8], 1536  }
  0x9d   :  { %6215 = vsyncadd [#allocation8], 4294965760 }
  0x9e   :  { %6216 = dma.done.wait [#allocation11], 4224  }
  0x9f   :  { %6217 = vsyncadd [#allocation11], 4294963072 }
  0xa0   :  { %6218 = dma.done.wait [#allocation14], 6144  }
  0xa1   :  { %6219 = vsyncadd [#allocation14], 4294961152 }
  0xa2   :  { %6220 = dma.done.wait [#allocation17], 2064  }
  0xa3   :  { %6221 = vsyncadd [#allocation17], 4294965232  ;;  %v8000_v0 = vmov 0   ;;  %v152_v1 = vld [vmem:[#allocation9] sm:$0xff]  ;;  %v153_v3 = vld [vmem:[#allocation9 + $0x8] sm:$0xff]  ;;  %vm242_vm0 = vcmask 130048  }
  0xa4   :  { %278 = vmatprep.mubr.bf16.mxu0 %v8000_v0  ;;  %319 = vmatprep.mubr.bf16.mxu1 %v8000_v0  ;;  %v156_v2 = vld [vmem:[#allocation9 + $0x20] sm:$0xff]  ;;  %v157_v5 = vld [vmem:[#allocation9 + $0x28] sm:$0xff]  ;;  %v154_v7 = vld [vmem:[#allocation9 + $0x10] sm:$0xff]  ;;  %s6245_s8 = smov [#allocation19]  }
  0xa5   :  { %5510 = vset.pattern.permute.xlu0 %v8000_v0  ;;  %5511 = vset.pattern.permute.xlu1 %v8000_v0  ;;  %v6427_v4 = vcombine.high %v152_v1, %v156_v2  ;;  %v6429_v6 = vcombine.low %v152_v1, %v156_v2  ;;  %v6431_v8 = vcombine.high %v153_v3, %v157_v5  ;;  %v158_v10 = vld [vmem:[#allocation9 + $0x30] sm:$0xff]  ;;  %v155_v11 = vld [vmem:[#allocation9 + $0x18] sm:$0xff]  ;;  %v151_v15 = vld [vmem:[#allocation7] sm:$0xf]  ;;  %s5037_s25 = sshll.u32 %s6245_s8, 4  ;;  %s5038_s25 = int_to_ptr.vmem [resolvable:$true] %s5037_s25 }
  0xa6   :  { %v6433_v9 = vcombine.low %v153_v3, %v157_v5  ;;  %v159_v12 = vld [vmem:[#allocation9 + $0x38] sm:$0xff]  ;;  %v6436_v13 = vcombine.high %v154_v7, %v158_v10  ;;  %v6442_v16 = vcombine.low %v154_v7, %v158_v10  ;;  %v447_v18 = vld [vmem:[#allocation7 + $0x4] sm:$0xf]  ;;  %v744_v19 = vld [vmem:[#allocation7 + $0x8] sm:$0xf]  ;;  %s6190_s12 = scalar_lea.vmem %s5038_s25, 128  ;;  %p6195_p3 = scmp.lt.s32.totalorder %s5038_s25, %s5038_s25 }
  0xa7   :  { %246 = vmatprep.subr.bf16.mxu0 %v6427_v4  ;;  %v6438_v14 = vcombine.high %v155_v11, %v159_v12  ;;  %287 = vmatprep.subr.bf16.mxu1 %v6431_v8  ;;  %v6446_v17 = vcombine.low %v155_v11, %v159_v12  ;;  %v1041_v20 = vld [vmem:[#allocation7 + $0xc] sm:$0xf]  ;;  %v1338_v21 = vld [vmem:[#allocation7 + $0x10] sm:$0xf]  ;;  %v1635_v22 = vld [vmem:[#allocation7 + $0x14] sm:$0xf]  ;;  %p6191_p2 = scmp.ne.s32.totalorder %s5038_s25, %s6190_s12  ;;  %p6196_p4 = scmp.lt.s32.totalorder %s6190_s12, %s6190_s12 }
  0xa8   :  { %247 = vmatpush1.bf16.msra.mxu0 %v6429_v6  ;;  %288 = vmatpush1.bf16.msra.mxu1 %v6433_v9  ;;  %v1932_v23 = vld [vmem:[#allocation7 + $0x18] sm:$0xf]  ;;  %v2229_v24 = vld [vmem:[#allocation7 + $0x1c] sm:$0xf]  ;;  %v6564_v26 = vld [vmem:[#allocation12 + $0xc] ss:$16 sps:$4 sm:$0xff]  }
  0xa9   :  { %328 = vmatprep.subr.bf16.mxu0 %v6436_v13  ;;  %369 = vmatprep.subr.bf16.mxu1 %v6438_v14  ;;  %v6561_v25 = vld [vmem:[#allocation12 + $0x4] ss:$16 sps:$4 sm:$0xff]   ;;  %v6573_v27 = vld [vmem:[#allocation12] ss:$16 sps:$4 sm:$0xff]   ;;  %v6575_v28 = vld [vmem:[#allocation12 + $0x8] ss:$16 sps:$4 sm:$0xff]   ;;  %p6197_p5 = por %p6196_p4, %p6195_p3 }
  0xaa   :  { %v6577_v29 = vld [vmem:[#allocation12 + $0x24] ss:$16 sps:$4 sm:$0xff]   ;;  %v6579_v30 = vld [vmem:[#allocation12 + $0x2c] ss:$16 sps:$4 sm:$0xff]   ;;  %v6584_v31 = vld [vmem:[#allocation12 + $0x20] ss:$16 sps:$4 sm:$0xff]  }
  0xab   :  { %5058 = vmatmul.mubr.msk.bf16.vlgmr.msra.gmra.mrb[0].mxu0 %vm242_vm0, %v151_v15  ;;  %5059 = vmatmul.mubr.msk.bf16.vlgmr.msra.gmra.mrb[0].mxu1 %vm242_vm0, %v151_v15  ;;  %v6588_v32 = vld [vmem:[#allocation12 + $0x28] ss:$16 sps:$4 sm:$0xff]   ;;  %v6590_v33 = vld [vmem:[#allocation12 + $0x44] ss:$16 sps:$4 sm:$0xff]   ;;  %v6593_v34 = vld [vmem:[#allocation12 + $0x4c] ss:$16 sps:$4 sm:$0xff]   ;;  %p6198_p6 = pnand %p6197_p5, %p6191_p2 }
  0xac   :  { %329 = vmatpush1.bf16.msra.mxu0 %v6442_v16  ;;  %370 = vmatpush1.bf16.msra.mxu1 %v6446_v17  ;;  %v6598_v35 = vld [vmem:[#allocation12 + $0x40] ss:$16 sps:$4 sm:$0xff]   ;;  %v6604_v37 = vld [vmem:[#allocation12 + $0x48] ss:$16 sps:$4 sm:$0xff]   ;;  %v6606_v38 = vld [vmem:[#allocation12 + $0x64] ss:$16 sps:$4 sm:$0xff]  }
  0xad   :  { %360 = vmatprep.mubr.bf16.mxu0 %v8000_v0  ;;  %401 = vmatprep.mubr.bf16.mxu1 %v8000_v0  ;;  %v6600_v36 = vld [vmem:[#allocation4] sm:$0xff]  ;;  %v6610_v39 = vld [vmem:[#allocation12 + $0x6c] ss:$16 sps:$4 sm:$0xff]   ;;  %v6618_v42 = vld [vmem:[#allocation12 + $0x68] ss:$16 sps:$4 sm:$0xff]  }
  0xae   :  { %541 = vmatprep.subr.bf16.mxu0 %v6427_v4  ;;  %582 = vmatprep.subr.bf16.mxu1 %v6431_v8  ;;  %vm3133_vm1 = vcmp.gt.s32.totalorder %v6600_v36, 0  ;;  %v6614_v41 = vld [vmem:[#allocation12 + $0x60] ss:$16 sps:$4 sm:$0xff]   ;;  %v6620_v43 = vld [vmem:[#allocation12 + $0x84] ss:$16 sps:$4 sm:$0xff]   ;;  %vm3134_vm2 = vcmp.gt.s32.totalorder %v6600_v36, 7 }
  0xaf   :  { %v3135_v40 = vsel %vm3133_vm1, 1, %v8000_v0  ;;  %v6624_v44 = vld [vmem:[#allocation12 + $0x8c] ss:$16 sps:$4 sm:$0xff]   ;;  %v3142_v45 = vsel %vm3134_vm2, 1, %v8000_v0  ;;  %v6628_v46 = vld [vmem:[#allocation12 + $0x80] ss:$16 sps:$4 sm:$0xff]  }
  0xb0   :  { %3137 = vperm.xlu0 %5510, %v3135_v40   ;;  %v6632_v47 = vld [vmem:[#allocation12 + $0x88] ss:$16 sps:$4 sm:$0xff]   ;;  %v6634_v48 = vld [vmem:[#allocation12 + $0xa4] ss:$16 sps:$4 sm:$0xff]   ;;  %vm3632_vm3 = vcmp.gt.s32.totalorder %v6600_v36, 2  ;;  %vm3881_vm4 = vcmp.gt.s32.totalorder %v6600_v36, 3 }
  0xb1   :  { %v6638_v49 = vld [vmem:[#allocation12 + $0xac] ss:$16 sps:$4 sm:$0xff]   ;;  %v3634_v50 = vsel %vm3632_vm3, 1, %v8000_v0  ;;  %v6642_v51 = vld [vmem:[#allocation12 + $0xa0] ss:$16 sps:$4 sm:$0xff]   ;;  %v3883_v55 = vsel %vm3881_vm4, 1, %v8000_v0 }
  0xb2   :  { %v6646_v52 = vld [vmem:[#allocation12 + $0xa8] ss:$16 sps:$4 sm:$0xff]   ;;  %v6648_v53 = vld [vmem:[#allocation12 + $0xc4] ss:$16 sps:$4 sm:$0xff]   ;;  %v6652_v54 = vld [vmem:[#allocation12 + $0xcc] ss:$16 sps:$4 sm:$0xff]  }
  0xb3   :  { %5060 = vmatmul.mubr.msk.bf16.vlgmr.msra.gmra.mrb[4].mxu0 %vm242_vm0, %v151_v15  ;;  %5061 = vmatmul.mubr.msk.bf16.vlgmr.msra.gmra.mrb[4].mxu1 %vm242_vm0, %v151_v15  ;;  %v6656_v56 = vadd.s32 4294967295, %v6600_v36  ;;  %v6659_v57 = vld [vmem:[#allocation12 + $0xc0] ss:$16 sps:$4 sm:$0xff]   ;;  %v6663_v58 = vld [vmem:[#allocation12 + $0xc8] ss:$16 sps:$4 sm:$0xff]   ;;  %vm3383_vm9 = vcmp.gt.s32.totalorder %v6600_v36, 1 }
  0xb4   :  { %542 = vmatpush1.bf16.msra.mxu0 %v6429_v6  ;;  %583 = vmatpush1.bf16.msra.mxu1 %v6433_v9  ;;  %v6665_v59 = vld [vmem:[#allocation12 + $0xe4] ss:$16 sps:$4 sm:$0xff]   ;;  %v6669_v60 = vld [vmem:[#allocation12 + $0xec] ss:$16 sps:$4 sm:$0xff]   ;;  %v6673_v62 = vld [vmem:[#allocation12 + $0xe0] ss:$16 sps:$4 sm:$0xff]  }
  0xb5   :  { %573 = vmatprep.mubr.bf16.mxu0 %v8000_v0  ;;  %614 = vmatprep.mubr.bf16.mxu1 %v8000_v0  ;;  %vm3150_vm5 = vcmp.eq.s32.totalorder %v6656_v56, 7  ;;  %v6677_v63 = vld [vmem:[#allocation12 + $0xe8] ss:$16 sps:$4 sm:$0xff]   ;;  %v6679_v1 = vld [vmem:[#allocation13 + $0x4] ss:$16 sps:$4 sm:$0xff]   ;;  %vm3648_vm6 = vcmp.eq.s32.totalorder %v6656_v56, 5 }
  0xb6   :  { %623 = vmatprep.subr.bf16.mxu0 %v6436_v13  ;;  %664 = vmatprep.subr.bf16.mxu1 %v6438_v14  ;;  %v3151_v61 = vsel %vm3150_vm5, 1, %v8000_v0  ;;  %v6683_v2 = vld [vmem:[#allocation13 + $0xc] ss:$16 sps:$4 sm:$0xff]   ;;  %v3649_v3 = vsel %vm3648_vm6, 1, %v8000_v0  ;;  %v6691_v5 = vld [vmem:[#allocation13 + $0x8] ss:$16 sps:$4 sm:$0xff]  }
  0xb7   :  { %3144 = vperm.xlu0 %5510, %v3142_v45   ;;  %vm4134_vm7 = vcmp.eq.s32.totalorder %v6656_v56, 3  ;;  %v6697_v7 = vld [vmem:[#allocation13 + $0x2c] ss:$16 sps:$4 sm:$0xff]   ;;  %v6707_v10 = vld [vmem:[#allocation13 + $0x28] ss:$16 sps:$4 sm:$0xff]   ;;  %vm4608_vm8 = vcmp.eq.s32.totalorder %v6656_v56, 1 }
  0xb8   :  { %v6709_v11 = vld [vmem:[#allocation13 + $0x44] ss:$16 sps:$4 sm:$0xff]   ;;  %v6713_v12 = vld [vmem:[#allocation13 + $0x4c] ss:$16 sps:$4 sm:$0xff]   ;;  %v6723_v15 = vld [vmem:[#allocation13 + $0x48] ss:$16 sps:$4 sm:$0xff]  }
  0xb9   :  { %v6752_v40 = vld [vmem:[#allocation13 + $0xac] ss:$16 sps:$4 sm:$0xff]   ;;  %v6755_v45 = vld [vmem:[#allocation13 + $0xa0] ss:$16 sps:$4 sm:$0xff]   ;;  %vm3384_vm10 = vcmp.gt.s32.totalorder %v6600_v36, 6  ;;  %vm3633_vm11 = vcmp.gt.s32.totalorder %v6600_v36, 5 }
  0xba   :  { %8120 = vst [vmem:[#allocation26_spill] sm:$0xff] %v6752_v40  ;;  %8121 = vst [vmem:[#allocation27_spill] sm:$0xff] %v6755_v45  ;;  %vm3882_vm12 = vcmp.gt.s32.totalorder %v6600_v36, 4  ;;  %vm3399_vm13 = vcmp.eq.s32.totalorder %v6656_v56, 6  ;;  %vm3897_vm14 = vcmp.eq.s32.totalorder %v6656_v56, 4  ;;  %vm4371_vm15 = vcmp.eq.s32.totalorder %v6656_v56, 2 }
  0xbb   :  { %5074 = vmatmul.mubr.msk.bf16.vlgmr.msra.gmra.mrb[8].mxu0 %vm242_vm0, %v447_v18  ;;  %5075 = vmatmul.mubr.msk.bf16.vlgmr.msra.gmra.mrb[8].mxu1 %vm242_vm0, %v447_v18 }
  0xbc   :  { %624 = vmatpush1.bf16.msra.mxu0 %v6442_v16  ;;  %665 = vmatpush1.bf16.msra.mxu1 %v6446_v17 }
  0xbd   :  { %655 = vmatprep.mubr.bf16.mxu0 %v8000_v0  ;;  %696 = vmatprep.mubr.bf16.mxu1 %v8000_v0 }
  0xbe   :  { %838 = vmatprep.subr.bf16.mxu0 %v6427_v4  ;;  %879 = vmatprep.subr.bf16.mxu1 %v6431_v8 }
  0xbf   :  { %3636 = vperm.xlu0 %5510, %v3634_v50   ;;  %v6759_v50 = vld [vmem:[#allocation13 + $0xa8] ss:$16 sps:$4 sm:$0xff]  }
  0xc3   :  { %5076 = vmatmul.mubr.msk.bf16.vlgmr.msra.gmra.mrb[12].mxu0 %vm242_vm0, %v447_v18  ;;  %5077 = vmatmul.mubr.msk.bf16.vlgmr.msra.gmra.mrb[12].mxu1 %vm242_vm0, %v447_v18  ;;  %v6731_v18 = vld [vmem:[#allocation13 + $0x60] ss:$16 sps:$4 sm:$0xff]  }
  0xc4   :  { %839 = vmatpush1.bf16.msra.mxu0 %v6429_v6  ;;  %880 = vmatpush1.bf16.msra.mxu1 %v6433_v9 }
  0xc5   :  { %870 = vmatprep.mubr.bf16.mxu0 %v8000_v0  ;;  %911 = vmatprep.mubr.bf16.mxu1 %v8000_v0 }
  0xc6   :  { %920 = vmatprep.subr.bf16.mxu0 %v6436_v13  ;;  %961 = vmatprep.subr.bf16.mxu1 %v6438_v14 }
  0xc7   :  { %3885 = vperm.xlu0 %5510, %v3883_v55   ;;  %v6761_v55 = vld [vmem:[#allocation13 + $0xc4] ss:$16 sps:$4 sm:$0xff]  }
  0xcb   :  { %5090 = vmatmul.mubr.msk.bf16.vlgmr.msra.gmra.mrb[16].mxu0 %vm242_vm0, %v744_v19  ;;  %5091 = vmatmul.mubr.msk.bf16.vlgmr.msra.gmra.mrb[16].mxu1 %vm242_vm0, %v744_v19 }
  0xcc   :  { %921 = vmatpush1.bf16.msra.mxu0 %v6442_v16  ;;  %962 = vmatpush1.bf16.msra.mxu1 %v6446_v17 }
  0xcd   :  { %952 = vmatprep.mubr.bf16.mxu0 %v8000_v0  ;;  %993 = vmatprep.mubr.bf16.mxu1 %v8000_v0 }
  0xce   :  { %1135 = vmatprep.subr.bf16.mxu0 %v6427_v4  ;;  %1176 = vmatprep.subr.bf16.mxu1 %v6431_v8 }
  0xcf   :  { %3153 = vperm.xlu0 %5510, %v3151_v61   ;;  %v6764_v61 = vld [vmem:[#allocation13 + $0xcc] ss:$16 sps:$4 sm:$0xff]  }
  0xd0   :  { %8122 = vst [vmem:[#allocation28_spill] sm:$0xff] %v6764_v61 }
  0xd3   :  { %5092 = vmatmul.mubr.msk.bf16.vlgmr.msra.gmra.mrb[20].mxu0 %vm242_vm0, %v744_v19  ;;  %5093 = vmatmul.mubr.msk.bf16.vlgmr.msra.gmra.mrb[20].mxu1 %vm242_vm0, %v744_v19  ;;  %v6735_v19 = vld [vmem:[#allocation13 + $0x68] ss:$16 sps:$4 sm:$0xff]  }
  0xd4   :  { %1136 = vmatpush1.bf16.msra.mxu0 %v6429_v6  ;;  %1177 = vmatpush1.bf16.msra.mxu1 %v6433_v9 }
  0xd5   :  { %1167 = vmatprep.mubr.bf16.mxu0 %v8000_v0  ;;  %1208 = vmatprep.mubr.bf16.mxu1 %v8000_v0 }
  0xd6   :  { %1217 = vmatprep.subr.bf16.mxu0 %v6436_v13  ;;  %1258 = vmatprep.subr.bf16.mxu1 %v6438_v14 }
  0xd7   :  { %3651 = vperm.xlu0 %5510, %v3649_v3   ;;  %v6767_v3 = vld [vmem:[#allocation13 + $0xc0] ss:$16 sps:$4 sm:$0xff]  }
  0xdb   :  { %5106 = vmatmul.mubr.msk.bf16.vlgmr.msra.gmra.mrb[24].mxu0 %vm242_vm0, %v1041_v20  ;;  %5107 = vmatmul.mubr.msk.bf16.vlgmr.msra.gmra.mrb[24].mxu1 %vm242_vm0, %v1041_v20 }
  0xdc   :  { %1218 = vmatpush1.bf16.msra.mxu0 %v6442_v16  ;;  %1259 = vmatpush1.bf16.msra.mxu1 %v6446_v17 }
  0xdd   :  { %1249 = vmatprep.mubr.bf16.mxu0 %v8000_v0  ;;  %1290 = vmatprep.mubr.bf16.mxu1 %v8000_v0 }
  0xde   :  { %1432 = vmatprep.subr.bf16.mxu0 %v6427_v4  ;;  %1473 = vmatprep.subr.bf16.mxu1 %v6431_v8 }
  0xe3   :  { %5108 = vmatmul.mubr.msk.bf16.vlgmr.msra.gmra.mrb[28].mxu0 %vm242_vm0, %v1041_v20  ;;  %5109 = vmatmul.mubr.msk.bf16.vlgmr.msra.gmra.mrb[28].mxu1 %vm242_vm0, %v1041_v20  ;;  %v6737_v20 = vld [vmem:[#allocation13 + $0x84] ss:$16 sps:$4 sm:$0xff]  }
  0xe4   :  { %1433 = vmatpush1.bf16.msra.mxu0 %v6429_v6  ;;  %1474 = vmatpush1.bf16.msra.mxu1 %v6433_v9 }
  0xe5   :  { %1464 = vmatprep.mubr.bf16.mxu0 %v8000_v0  ;;  %1505 = vmatprep.mubr.bf16.mxu1 %v8000_v0 }
  0xe6   :  { %1514 = vmatprep.subr.bf16.mxu0 %v6436_v13  ;;  %1555 = vmatprep.subr.bf16.mxu1 %v6438_v14 }
  0xeb   :  { %5122 = vmatmul.mubr.msk.bf16.vlgmr.msra.gmra.mrb[32].mxu0 %vm242_vm0, %v1338_v21  ;;  %5123 = vmatmul.mubr.msk.bf16.vlgmr.msra.gmra.mrb[32].mxu1 %vm242_vm0, %v1338_v21 }
  0xec   :  { %1515 = vmatpush1.bf16.msra.mxu0 %v6442_v16  ;;  %1556 = vmatpush1.bf16.msra.mxu1 %v6446_v17 }
  0xed   :  { %1546 = vmatprep.mubr.bf16.mxu0 %v8000_v0  ;;  %1587 = vmatprep.mubr.bf16.mxu1 %v8000_v0 }
  0xee   :  { %1729 = vmatprep.subr.bf16.mxu0 %v6427_v4  ;;  %1770 = vmatprep.subr.bf16.mxu1 %v6431_v8 }
  0xf3   :  { %5124 = vmatmul.mubr.msk.bf16.vlgmr.msra.gmra.mrb[36].mxu0 %vm242_vm0, %v1338_v21  ;;  %5125 = vmatmul.mubr.msk.bf16.vlgmr.msra.gmra.mrb[36].mxu1 %vm242_vm0, %v1338_v21  ;;  %v6740_v21 = vld [vmem:[#allocation13 + $0x8c] ss:$16 sps:$4 sm:$0xff]  }
  0xf4   :  { %1730 = vmatpush1.bf16.msra.mxu0 %v6429_v6  ;;  %1771 = vmatpush1.bf16.msra.mxu1 %v6433_v9 }
  0xf5   :  { %1761 = vmatprep.mubr.bf16.mxu0 %v8000_v0  ;;  %1802 = vmatprep.mubr.bf16.mxu1 %v8000_v0 }
  0xf6   :  { %1811 = vmatprep.subr.bf16.mxu0 %v6436_v13  ;;  %1852 = vmatprep.subr.bf16.mxu1 %v6438_v14 }
  0xfb   :  { %5138 = vmatmul.mubr.msk.bf16.vlgmr.msra.gmra.mrb[40].mxu0 %vm242_vm0, %v1635_v22  ;;  %5139 = vmatmul.mubr.msk.bf16.vlgmr.msra.gmra.mrb[40].mxu1 %vm242_vm0, %v1635_v22 }
  0xfc   :  { %1812 = vmatpush1.bf16.msra.mxu0 %v6442_v16  ;;  %1853 = vmatpush1.bf16.msra.mxu1 %v6446_v17 }
  0xfd   :  { %1843 = vmatprep.mubr.bf16.mxu0 %v8000_v0  ;;  %1884 = vmatprep.mubr.bf16.mxu1 %v8000_v0 }
  0xfe   :  { %2026 = vmatprep.subr.bf16.mxu0 %v6427_v4  ;;  %2067 = vmatprep.subr.bf16.mxu1 %v6431_v8 }
 0x103   :  { %5140 = vmatmul.mubr.msk.bf16.vlgmr.msra.gmra.mrb[44].mxu0 %vm242_vm0, %v1635_v22  ;;  %5141 = vmatmul.mubr.msk.bf16.vlgmr.msra.gmra.mrb[44].mxu1 %vm242_vm0, %v1635_v22  ;;  %v6743_v22 = vld [vmem:[#allocation13 + $0x80] ss:$16 sps:$4 sm:$0xff]  }
 0x104   :  { %2027 = vmatpush1.bf16.msra.mxu0 %v6429_v6  ;;  %2068 = vmatpush1.bf16.msra.mxu1 %v6433_v9 }
 0x105   :  { %2058 = vmatprep.mubr.bf16.mxu0 %v8000_v0  ;;  %2099 = vmatprep.mubr.bf16.mxu1 %v8000_v0 }
 0x106   :  { %2108 = vmatprep.subr.bf16.mxu0 %v6436_v13  ;;  %2149 = vmatprep.subr.bf16.mxu1 %v6438_v14 }
 0x10b   :  { %5154 = vmatmul.mubr.msk.bf16.vlgmr.msra.gmra.mrb[48].mxu0 %vm242_vm0, %v1932_v23  ;;  %5155 = vmatmul.mubr.msk.bf16.vlgmr.msra.gmra.mrb[48].mxu1 %vm242_vm0, %v1932_v23 }
 0x10c   :  { %2109 = vmatpush1.bf16.msra.mxu0 %v6442_v16  ;;  %2150 = vmatpush1.bf16.msra.mxu1 %v6446_v17 }
 0x10d   :  { %2140 = vmatprep.mubr.bf16.mxu0 %v8000_v0  ;;  %2181 = vmatprep.mubr.bf16.mxu1 %v8000_v0 }
 0x10e   :  { %2323 = vmatprep.subr.bf16.mxu0 %v6427_v4  ;;  %2364 = vmatprep.subr.bf16.mxu1 %v6431_v8  ;;  %v6687_v4 = vld [vmem:[#allocation13] ss:$16 sps:$4 sm:$0xff]   ;;  %v4135_v8 = vsel %vm4134_vm7, 1, %v8000_v0 }
 0x10f   :  { %4137 = vperm.xlu0 %5510, %v4135_v8   ;;  %v6771_v8 = vld [vmem:[#allocation13 + $0xc8] ss:$16 sps:$4 sm:$0xff]  }
 0x113   :  { %5156 = vmatmul.mubr.msk.bf16.vlgmr.msra.gmra.mrb[52].mxu0 %vm242_vm0, %v1932_v23  ;;  %5157 = vmatmul.mubr.msk.bf16.vlgmr.msra.gmra.mrb[52].mxu1 %vm242_vm0, %v1932_v23  ;;  %v6747_v23 = vld [vmem:[#allocation13 + $0x88] ss:$16 sps:$4 sm:$0xff]  }
 0x114   :  { %2324 = vmatpush1.bf16.msra.mxu0 %v6429_v6  ;;  %2365 = vmatpush1.bf16.msra.mxu1 %v6433_v9  ;;  %v6693_v6 = vld [vmem:[#allocation13 + $0x24] ss:$16 sps:$4 sm:$0xff]   ;;  %v6703_v9 = vld [vmem:[#allocation13 + $0x20] ss:$16 sps:$4 sm:$0xff]  }
 0x115   :  { %2355 = vmatprep.mubr.bf16.mxu0 %v8000_v0  ;;  %2396 = vmatprep.mubr.bf16.mxu1 %v8000_v0 }
 0x116   :  { %2405 = vmatprep.subr.bf16.mxu0 %v6436_v13  ;;  %2446 = vmatprep.subr.bf16.mxu1 %v6438_v14  ;;  %v4609_v13 = vsel %vm4608_vm8, 1, %v8000_v0  ;;  %v6719_v14 = vld [vmem:[#allocation13 + $0x40] ss:$16 sps:$4 sm:$0xff]  }
 0x117   :  { %4611 = vperm.xlu0 %5510, %v4609_v13   ;;  %v6773_v13 = vld [vmem:[#allocation13 + $0xe4] ss:$16 sps:$4 sm:$0xff]  }
 0x11b   :  { %5170 = vmatmul.mubr.msk.bf16.vlgmr.msra.gmra.mrb[56].mxu0 %vm242_vm0, %v2229_v24  ;;  %5171 = vmatmul.mubr.msk.bf16.vlgmr.msra.gmra.mrb[56].mxu1 %vm242_vm0, %v2229_v24 }
 0x11c   :  { %2406 = vmatpush1.bf16.msra.mxu0 %v6442_v16  ;;  %2447 = vmatpush1.bf16.msra.mxu1 %v6446_v17  ;;  %v6725_v16 = vld [vmem:[#allocation13 + $0x64] ss:$16 sps:$4 sm:$0xff]   ;;  %v6728_v17 = vld [vmem:[#allocation13 + $0x6c] ss:$16 sps:$4 sm:$0xff]  }
 0x11d   :  { %2437 = vmatprep.mubr.bf16.mxu0 %v8000_v0  ;;  %2478 = vmatprep.mubr.bf16.mxu1 %v8000_v0 }
 0x11e   :  { %2723 = vmatprep.subr.bf16.mxu0 %v6561_v25  ;;  %2764 = vmatprep.subr.bf16.mxu1 %v6564_v26 }
 0x123   :  { %5172 = vmatmul.mubr.msk.bf16.vlgmr.msra.gmra.mrb[60].mxu0 %vm242_vm0, %v2229_v24  ;;  %5173 = vmatmul.mubr.msk.bf16.vlgmr.msra.gmra.mrb[60].mxu1 %vm242_vm0, %v2229_v24  ;;  %v6749_v24 = vld [vmem:[#allocation13 + $0xa4] ss:$16 sps:$4 sm:$0xff]   ;;  %vm4843_vm0 = vcmp.eq.s32.totalorder %v6656_v56, 0 }
 0x124   :  { %2724 = vmatpush1.bf16.msra.mxu0 %v6573_v27  ;;  %2765 = vmatpush1.bf16.msra.mxu1 %v6575_v28 }
 0x125   :  { %2725 = vmatprep.subr.bf16.mxu0 %v6577_v29  ;;  %2766 = vmatprep.subr.bf16.mxu1 %v6579_v30 }
 0x126   :  { %2755 = vmatprep.mubr.bf16.mxu0 %v8000_v0  ;;  %2796 = vmatprep.mubr.bf16.mxu1 %v8000_v0 }
 0x128   :  { %2726 = vmatpush1.bf16.msra.mxu0 %v6584_v31  ;;  %2767 = vmatpush1.bf16.msra.mxu1 %v6588_v32 }
 0x129   :  { %2727 = vmatprep.subr.bf16.mxu0 %v6590_v33  ;;  %2768 = vmatprep.subr.bf16.mxu1 %v6593_v34 }
 0x12c   :  { %2728 = vmatpush1.bf16.msra.mxu0 %v6598_v35  ;;  %2769 = vmatpush1.bf16.msra.mxu1 %v6604_v37 }
 0x12d   :  { %2729 = vmatprep.subr.bf16.mxu0 %v6606_v38  ;;  %2770 = vmatprep.subr.bf16.mxu1 %v6610_v39 }
 0x130   :  { %2730 = vmatpush1.bf16.msra.mxu0 %v6614_v41  ;;  %2771 = vmatpush1.bf16.msra.mxu1 %v6618_v42 }
 0x131   :  { %2731 = vmatprep.subr.bf16.mxu0 %v6620_v43  ;;  %2772 = vmatprep.subr.bf16.mxu1 %v6624_v44 }
 0x134   :  { %2732 = vmatpush1.bf16.msra.mxu0 %v6628_v46  ;;  %2773 = vmatpush1.bf16.msra.mxu1 %v6632_v47 }
 0x135   :  { %2733 = vmatprep.subr.bf16.mxu0 %v6634_v48  ;;  %2774 = vmatprep.subr.bf16.mxu1 %v6638_v49 }
 0x138   :  { %2734 = vmatpush1.bf16.msra.mxu0 %v6642_v51  ;;  %2775 = vmatpush1.bf16.msra.mxu1 %v6646_v52 }
 0x139   :  { %2735 = vmatprep.subr.bf16.mxu0 %v6648_v53  ;;  %2776 = vmatprep.subr.bf16.mxu1 %v6652_v54 }
 0x13c   :  { %2736 = vmatpush1.bf16.msra.mxu0 %v6659_v57  ;;  %2777 = vmatpush1.bf16.msra.mxu1 %v6663_v58 }
 0x13d   :  { %2737 = vmatprep.subr.bf16.mxu0 %v6665_v59  ;;  %2778 = vmatprep.subr.bf16.mxu1 %v6669_v60 }
 0x140   :  { %2738 = vmatpush1.bf16.msra.mxu0 %v6673_v62  ;;  %2779 = vmatpush1.bf16.msra.mxu1 %v6677_v63 }
 0x141   :  { %3003 = vmatprep.subr.bf16.mxu0 %v6679_v1  ;;  %3044 = vmatprep.subr.bf16.mxu1 %v6683_v2 }
 0x143   :  { %2756 = vmatmul.mubr.bf16.vlgmr.msra.gmra.mrb[64].mxu0 %v8000_v0  ;;  %2797 = vmatmul.mubr.bf16.vlgmr.msra.gmra.mrb[64].mxu1 %v8000_v0 }
 0x144   :  { %3004 = vmatpush1.bf16.msra.mxu0 %v6687_v4  ;;  %3045 = vmatpush1.bf16.msra.mxu1 %v6691_v5 }
 0x145   :  { %3005 = vmatprep.subr.bf16.mxu0 %v6693_v6  ;;  %3046 = vmatprep.subr.bf16.mxu1 %v6697_v7 }
 0x146   :  { %3035 = vmatprep.mubr.bf16.mxu0 %v8000_v0  ;;  %3076 = vmatprep.mubr.bf16.mxu1 %v8000_v0  ;;  %v6776_v0 = vld [vmem:[#allocation13 + $0xec] ss:$16 sps:$4 sm:$0xff]  }
 0x148   :  { %3006 = vmatpush1.bf16.msra.mxu0 %v6703_v9  ;;  %3047 = vmatpush1.bf16.msra.mxu1 %v6707_v10 }
 0x149   :  { %3007 = vmatprep.subr.bf16.mxu0 %v6709_v11  ;;  %3048 = vmatprep.subr.bf16.mxu1 %v6713_v12 }
 0x14c   :  { %3008 = vmatpush1.bf16.msra.mxu0 %v6719_v14  ;;  %3049 = vmatpush1.bf16.msra.mxu1 %v6723_v15 }
 0x14d   :  { %3009 = vmatprep.subr.bf16.mxu0 %v6725_v16  ;;  %3050 = vmatprep.subr.bf16.mxu1 %v6728_v17 }
 0x150   :  { %3010 = vmatpush1.bf16.msra.mxu0 %v6731_v18  ;;  %3051 = vmatpush1.bf16.msra.mxu1 %v6735_v19 }
 0x151   :  { %3011 = vmatprep.subr.bf16.mxu0 %v6737_v20  ;;  %3052 = vmatprep.subr.bf16.mxu1 %v6740_v21 }
 0x154   :  { %3012 = vmatpush1.bf16.msra.mxu0 %v6743_v22  ;;  %3053 = vmatpush1.bf16.msra.mxu1 %v6747_v23 }
 0x155   :  { %3013 = vmatprep.subr.bf16.mxu0 %v6749_v24  ;;  %3054 = vmatprep.subr.bf16.mxu1 %v6752_v40  ;;  %v6779_v40 = vld [vmem:[#allocation13 + $0xe0] ss:$16 sps:$4 sm:$0xff]  }
 0x158   :  { %3014 = vmatpush1.bf16.msra.mxu0 %v6755_v45  ;;  %3055 = vmatpush1.bf16.msra.mxu1 %v6759_v50  ;;  %v6783_v45 = vld [vmem:[#allocation13 + $0xe8] ss:$16 sps:$4 sm:$0xff]  }
 0x159   :  { %3015 = vmatprep.subr.bf16.mxu0 %v6761_v55  ;;  %3056 = vmatprep.subr.bf16.mxu1 %v6764_v61  ;;  %v8123_v61 = vmov 0  }
 0x15c   :  { %3016 = vmatpush1.bf16.msra.mxu0 %v6767_v3  ;;  %3057 = vmatpush1.bf16.msra.mxu1 %v6771_v8 }
 0x15d   :  { %3017 = vmatprep.subr.bf16.mxu0 %v6773_v13  ;;  %3058 = vmatprep.subr.bf16.mxu1 %v6776_v0 }
 0x160   :  { %3018 = vmatpush1.bf16.msra.mxu0 %v6779_v40  ;;  %3059 = vmatpush1.bf16.msra.mxu1 %v6783_v45 }
 0x161   :  { %3164 = vmatprep.subr.bf16.mxu0 %v6561_v25  ;;  %3205 = vmatprep.subr.bf16.mxu1 %v6564_v26  ;;  %v162_v25 = vlaneseq }
 0x163   :  { %3036 = vmatmul.mubr.bf16.vlgmr.msra.gmra.mrb[68].mxu0 %v8123_v61  ;;  %3077 = vmatmul.mubr.bf16.vlgmr.msra.gmra.mrb[68].mxu1 %v8123_v61  ;;  %v163_v26 = vshrl.u32 %v162_v25, 7 }
 0x164   :  { %3165 = vmatpush1.bf16.msra.mxu0 %v6573_v27  ;;  %3206 = vmatpush1.bf16.msra.mxu1 %v6575_v28  ;;  %v160_v28 = vld [vmem:[#allocation10] sm:$0xff] }
 0x165   :  { %3166 = vmatprep.subr.bf16.mxu0 %v6577_v29  ;;  %3207 = vmatprep.subr.bf16.mxu1 %v6579_v30  ;;  %v164_v27 = vsub.s32 0, %v163_v26  ;;  %v168_v29 = vsub.s32 1, %v163_v26  ;;  %v172_v30 = vsub.s32 2, %v163_v26 }
 0x166   :  { %3196 = vmatprep.mubr.bf16.mxu0 %v8123_v61  ;;  %3237 = vmatprep.mubr.bf16.mxu1 %v8123_v61 }
 0x168   :  { %3167 = vmatpush1.bf16.msra.mxu0 %v6584_v31  ;;  %3208 = vmatpush1.bf16.msra.mxu1 %v6588_v32  ;;  %v176_v31 = vsub.s32 3, %v163_v26  ;;  %v6818_v32 = vrot.slane %v160_v28, %v164_v27 }
 0x169   :  { %3168 = vmatprep.subr.bf16.mxu0 %v6590_v33  ;;  %3209 = vmatprep.subr.bf16.mxu1 %v6593_v34  ;;  %v6820_v33 = vrot.slane %v160_v28, %v168_v29  ;;  %v6822_v34 = vrot.slane %v160_v28, %v172_v30 }
 0x16c   :  { %3169 = vmatpush1.bf16.msra.mxu0 %v6598_v35  ;;  %3210 = vmatpush1.bf16.msra.mxu1 %v6604_v37  ;;  %v6825_v35 = vrot.slane %v160_v28, %v176_v31 }
 0x16d   :  { %3170 = vmatprep.subr.bf16.mxu0 %v6606_v38  ;;  %3211 = vmatprep.subr.bf16.mxu1 %v6610_v39 }
 0x170   :  { %3171 = vmatpush1.bf16.msra.mxu0 %v6614_v41  ;;  %3212 = vmatpush1.bf16.msra.mxu1 %v6618_v42  ;;  %v180_v41 = vsub.s32 4, %v163_v26 }
 0x171   :  { %3172 = vmatprep.subr.bf16.mxu0 %v6620_v43  ;;  %3213 = vmatprep.subr.bf16.mxu1 %v6624_v44 }
 0x174   :  { %3173 = vmatpush1.bf16.msra.mxu0 %v6628_v46  ;;  %3214 = vmatpush1.bf16.msra.mxu1 %v6632_v47  ;;  %v184_v46 = vsub.s32 5, %v163_v26 }
 0x175   :  { %3174 = vmatprep.subr.bf16.mxu0 %v6634_v48  ;;  %3215 = vmatprep.subr.bf16.mxu1 %v6638_v49  ;;  %v188_v49 = vsub.s32 6, %v163_v26 }
 0x176   :  { %v6844_v25 = vrot.slane %v160_v28, %v184_v46 }
 0x178   :  { %3175 = vmatpush1.bf16.msra.mxu0 %v6642_v51  ;;  %3216 = vmatpush1.bf16.msra.mxu1 %v6646_v52 }
 0x179   :  { %3176 = vmatprep.subr.bf16.mxu0 %v6648_v53  ;;  %3217 = vmatprep.subr.bf16.mxu1 %v6652_v54  ;;  %v192_v54 = vsub.s32 7, %v163_v26 }
 0x17b   :  { %v6848_v27 = vrot.slane %v160_v28, %v192_v54 }
 0x17c   :  { %3177 = vmatpush1.bf16.msra.mxu0 %v6659_v57  ;;  %3218 = vmatpush1.bf16.msra.mxu1 %v6663_v58 }
 0x17d   :  { %3178 = vmatprep.subr.bf16.mxu0 %v6665_v59  ;;  %3219 = vmatprep.subr.bf16.mxu1 %v6669_v60  ;;  %v6840_v59 = vrot.slane %v160_v28, %v180_v41 }
 0x17e   :  { %v280_v37 = vpop.f32.mrb[0].mxu0  ;;  %v321_v42 = vpop.f32.mrb[0].mxu1 }
 0x17f   :  { %v281_v38 = vadd.f32 %v280_v37, %v6818_v32  ;;  %v282_v39 = vpop.f32.mrb[1].mxu0  ;;  %v322_v47 = vadd.f32 %v321_v42, %v6822_v34  ;;  %v323_v48 = vpop.f32.mrb[1].mxu1 }
 0x180   :  { %v283_v43 = vadd.f32 %v282_v39, %v6820_v33  ;;  %v284_v44 = vpop.f32.mrb[2].mxu0  ;;  %3179 = vmatpush1.bf16.msra.mxu0 %v6673_v62  ;;  %v324_v52 = vadd.f32 %v323_v48, %v6825_v35  ;;  %v325_v53 = vpop.f32.mrb[2].mxu1  ;;  %3220 = vmatpush1.bf16.msra.mxu1 %v6677_v63  ;;  %v6846_v62 = vrot.slane %v160_v28, %v188_v49 }
 0x181   :  { %v285_v51 = vpop.f32.mrb[3].mxu0  ;;  %3253 = vmatprep.subr.bf16.mxu0 %v6679_v1  ;;  %v326_v58 = vpop.f32.mrb[3].mxu1  ;;  %3294 = vmatprep.subr.bf16.mxu1 %v6683_v2 }
 0x182   :  { %v6837_v57 = vpack.c.bf16 %v283_v43, %v281_v38  ;;  %v6842_v60 = vpack.c.bf16 %v324_v52, %v322_v47 }
 0x186   :  { %v362_v26 = vpop.f32.mrb[4].mxu0  ;;  %v403_v1 = vpop.f32.mrb[4].mxu1 }
 0x187   :  { %v363_v63 = vadd.f32 %v362_v26, %v6840_v59  ;;  %v364_v29 = vpop.f32.mrb[5].mxu0  ;;  %v404_v2 = vadd.f32 %v403_v1, %v6846_v62  ;;  %v405_v37 = vpop.f32.mrb[5].mxu1 }
 0x188   :  { %v365_v30 = vadd.f32 %v364_v29, %v6844_v25  ;;  %v366_v31 = vpop.f32.mrb[6].mxu0  ;;  %v406_v39 = vadd.f32 %v405_v37, %v6848_v27  ;;  %v407_v41 = vpop.f32.mrb[6].mxu1 }
 0x189   :  { %v367_v38 = vpop.f32.mrb[7].mxu0  ;;  %v408_v43 = vpop.f32.mrb[7].mxu1 }
 0x18a   :  { %v6854_v42 = vpack.c.bf16 %v365_v30, %v363_v63  ;;  %v6856_v28 = vpack.c.bf16 %v406_v39, %v404_v2 }
 0x18c   :  { %8124 = vst [vmem:[#allocation29_spill] sm:$0xff] %v6854_v42  ;;  %8125 = vst [vmem:[#allocation30_spill] sm:$0xff] %v6856_v28 }
 0x18e   :  { %v575_v44 = vpop.f32.mrb[8].mxu0  ;;  %v616_v48 = vpop.f32.mrb[8].mxu1 }
 0x18f   :  { %v576_v46 = vadd.f32 %v575_v44, %v6818_v32  ;;  %v577_v47 = vpop.f32.mrb[9].mxu0  ;;  %v617_v52 = vadd.f32 %v616_v48, %v6822_v34  ;;  %v618_v53 = vpop.f32.mrb[9].mxu1 }
 0x190   :  { %v578_v49 = vadd.f32 %v577_v47, %v6820_v33  ;;  %v579_v51 = vpop.f32.mrb[10].mxu0  ;;  %v619_v58 = vadd.f32 %v618_v53, %v6825_v35  ;;  %v620_v26 = vpop.f32.mrb[10].mxu1 }
 0x191   :  { %v580_v54 = vpop.f32.mrb[11].mxu0  ;;  %v621_v29 = vpop.f32.mrb[11].mxu1 }
 0x192   :  { %v6862_v63 = vpack.c.bf16 %v578_v49, %v576_v46  ;;  %v6864_v1 = vpack.c.bf16 %v619_v58, %v617_v52 }
 0x196   :  { %v657_v30 = vpop.f32.mrb[12].mxu0  ;;  %v698_v37 = vpop.f32.mrb[12].mxu1 }
 0x197   :  { %v658_v31 = vadd.f32 %v657_v30, %v6840_v59  ;;  %v659_v2 = vpop.f32.mrb[13].mxu0  ;;  %v699_v41 = vadd.f32 %v698_v37, %v6846_v62  ;;  %v700_v43 = vpop.f32.mrb[13].mxu1 }
 0x198   :  { %v660_v38 = vadd.f32 %v659_v2, %v6844_v25  ;;  %v661_v39 = vpop.f32.mrb[14].mxu0  ;;  %v701_v47 = vadd.f32 %v700_v43, %v6848_v27  ;;  %v702_v48 = vpop.f32.mrb[14].mxu1 }
 0x199   :  { %v662_v44 = vpop.f32.mrb[15].mxu0  ;;  %v703_v49 = vpop.f32.mrb[15].mxu1 }
 0x19a   :  { %v6870_v46 = vpack.c.bf16 %v660_v38, %v658_v31  ;;  %v6872_v51 = vpack.c.bf16 %v701_v47, %v699_v41 }
 0x19c   :  { %8126 = vst [vmem:[#allocation31_spill] sm:$0xff] %v6870_v46  ;;  %8127 = vst [vmem:[#allocation32_spill] sm:$0xff] %v6872_v51 }
 0x19e   :  { %v872_v52 = vpop.f32.mrb[16].mxu0  ;;  %v913_v58 = vpop.f32.mrb[16].mxu1 }
 0x19f   :  { %v873_v53 = vadd.f32 %v872_v52, %v6818_v32  ;;  %v874_v54 = vpop.f32.mrb[17].mxu0  ;;  %v914_v30 = vadd.f32 %v913_v58, %v6822_v34  ;;  %v915_v2 = vpop.f32.mrb[17].mxu1 }
 0x1a0   :  { %v875_v26 = vadd.f32 %v874_v54, %v6820_v33  ;;  %v876_v29 = vpop.f32.mrb[18].mxu0  ;;  %v916_v39 = vadd.f32 %v915_v2, %v6825_v35  ;;  %v917_v43 = vpop.f32.mrb[18].mxu1 }
 0x1a1   :  { %v877_v37 = vpop.f32.mrb[19].mxu0  ;;  %v918_v38 = vpop.f32.mrb[19].mxu1 }
 0x1a2   :  { %v6878_v31 = vpack.c.bf16 %v875_v26, %v873_v53  ;;  %v6880_v41 = vpack.c.bf16 %v916_v39, %v914_v30 }
 0x1a4   :  { %8128 = vst [vmem:[#allocation33_spill] sm:$0xff] %v6878_v31  ;;  %8129 = vst [vmem:[#allocation34_spill] sm:$0xff] %v6880_v41 }
 0x1a6   :  { %v954_v44 = vpop.f32.mrb[20].mxu0  ;;  %v995_v49 = vpop.f32.mrb[20].mxu1 }
 0x1a7   :  { %v955_v47 = vadd.f32 %v954_v44, %v6840_v59  ;;  %v956_v48 = vpop.f32.mrb[21].mxu0  ;;  %v996_v58 = vadd.f32 %v995_v49, %v6846_v62  ;;  %v997_v29 = vpop.f32.mrb[21].mxu1 }
 0x1a8   :  { %v957_v52 = vadd.f32 %v956_v48, %v6844_v25  ;;  %v958_v54 = vpop.f32.mrb[22].mxu0  ;;  %v998_v2 = vadd.f32 %v997_v29, %v6848_v27  ;;  %v999_v43 = vpop.f32.mrb[22].mxu1 }
 0x1a9   :  { %v959_v37 = vpop.f32.mrb[23].mxu0  ;;  %v1000_v26 = vpop.f32.mrb[23].mxu1 }
 0x1aa   :  { %v6886_v53 = vpack.c.bf16 %v957_v52, %v955_v47  ;;  %v6888_v30 = vpack.c.bf16 %v998_v2, %v996_v58 }
 0x1ac   :  { %8130 = vst [vmem:[#allocation35_spill] sm:$0xff] %v6886_v53  ;;  %8131 = vst [vmem:[#allocation36_spill] sm:$0xff] %v6888_v30 }
 0x1ae   :  { %v1169_v39 = vpop.f32.mrb[24].mxu0  ;;  %v1210_v28 = vpop.f32.mrb[24].mxu1 }
 0x1af   :  { %v1170_v38 = vadd.f32 %v1169_v39, %v6818_v32  ;;  %v1171_v44 = vpop.f32.mrb[25].mxu0  ;;  %v1211_v49 = vadd.f32 %v1210_v28, %v6822_v34  ;;  %v1212_v42 = vpop.f32.mrb[25].mxu1 }
 0x1b0   :  { %v1172_v48 = vadd.f32 %v1171_v44, %v6820_v33  ;;  %v1173_v54 = vpop.f32.mrb[26].mxu0  ;;  %v1213_v29 = vadd.f32 %v1212_v42, %v6825_v35  ;;  %v1214_v43 = vpop.f32.mrb[26].mxu1 }
 0x1b1   :  { %v1174_v37 = vpop.f32.mrb[27].mxu0  ;;  %v1215_v52 = vpop.f32.mrb[27].mxu1 }
 0x1b2   :  { %v6894_v47 = vpack.c.bf16 %v1172_v48, %v1170_v38  ;;  %v6896_v58 = vpack.c.bf16 %v1213_v29, %v1211_v49 }
 0x1b4   :  { %8132 = vst [vmem:[#allocation37_spill] sm:$0xff] %v6894_v47  ;;  %8133 = vst [vmem:[#allocation38_spill] sm:$0xff] %v6896_v58 }
 0x1b6   :  { %v1251_v2 = vpop.f32.mrb[28].mxu0  ;;  %v1292_v51 = vpop.f32.mrb[28].mxu1 }
 0x1b7   :  { %v1252_v26 = vadd.f32 %v1251_v2, %v6840_v59  ;;  %v1253_v39 = vpop.f32.mrb[29].mxu0  ;;  %v1293_v28 = vadd.f32 %v1292_v51, %v6846_v62  ;;  %v1294_v46 = vpop.f32.mrb[29].mxu1 }
 0x1b8   :  { %v1254_v44 = vadd.f32 %v1253_v39, %v6844_v25  ;;  %v1255_v54 = vpop.f32.mrb[30].mxu0  ;;  %v1295_v42 = vadd.f32 %v1294_v46, %v6848_v27  ;;  %v1296_v43 = vpop.f32.mrb[30].mxu1 }
 0x1b9   :  { %v1256_v37 = vpop.f32.mrb[31].mxu0  ;;  %v1297_v48 = vpop.f32.mrb[31].mxu1 }
 0x1ba   :  { %v6902_v38 = vpack.c.bf16 %v1254_v44, %v1252_v26  ;;  %v6904_v49 = vpack.c.bf16 %v1295_v42, %v1293_v28 }
 0x1bc   :  { %8134 = vst [vmem:[#allocation39_spill] sm:$0xff] %v6902_v38  ;;  %8135 = vst [vmem:[#allocation40_spill] sm:$0xff] %v6904_v49 }
 0x1be   :  { %v1466_v29 = vpop.f32.mrb[32].mxu0  ;;  %v1507_v30 = vpop.f32.mrb[32].mxu1 }
 0x1bf   :  { %v1467_v52 = vadd.f32 %v1466_v29, %v6818_v32  ;;  %v1468_v2 = vpop.f32.mrb[33].mxu0  ;;  %v1508_v51 = vadd.f32 %v1507_v30, %v6822_v34  ;;  %v1509_v53 = vpop.f32.mrb[33].mxu1 }
 0x1c0   :  { %v1469_v39 = vadd.f32 %v1468_v2, %v6820_v33  ;;  %v1470_v54 = vpop.f32.mrb[34].mxu0  ;;  %v1510_v46 = vadd.f32 %v1509_v53, %v6825_v35  ;;  %v1511_v43 = vpop.f32.mrb[34].mxu1 }
 0x1c1   :  { %v1471_v37 = vpop.f32.mrb[35].mxu0  ;;  %v1512_v44 = vpop.f32.mrb[35].mxu1 }
 0x1c2   :  { %v6910_v26 = vpack.c.bf16 %v1469_v39, %v1467_v52  ;;  %v6912_v28 = vpack.c.bf16 %v1510_v46, %v1508_v51 }
 0x1c4   :  { %8136 = vst [vmem:[#allocation41_spill] sm:$0xff] %v6910_v26  ;;  %8137 = vst [vmem:[#allocation42_spill] sm:$0xff] %v6912_v28 }
 0x1c6   :  { %v1548_v42 = vpop.f32.mrb[36].mxu0  ;;  %v1589_v49 = vpop.f32.mrb[36].mxu1 }
 0x1c7   :  { %v1549_v48 = vadd.f32 %v1548_v42, %v6840_v59  ;;  %v1550_v29 = vpop.f32.mrb[37].mxu0  ;;  %v1590_v30 = vadd.f32 %v1589_v49, %v6846_v62  ;;  %v1591_v38 = vpop.f32.mrb[37].mxu1 }
 0x1c8   :  { %v1551_v2 = vadd.f32 %v1550_v29, %v6844_v25  ;;  %v1552_v54 = vpop.f32.mrb[38].mxu0  ;;  %v1592_v53 = vadd.f32 %v1591_v38, %v6848_v27  ;;  %v1593_v43 = vpop.f32.mrb[38].mxu1 }
 0x1c9   :  { %v1553_v37 = vpop.f32.mrb[39].mxu0  ;;  %v1594_v39 = vpop.f32.mrb[39].mxu1 }
 0x1ca   :  { %v6918_v52 = vpack.c.bf16 %v1551_v2, %v1549_v48  ;;  %v6920_v51 = vpack.c.bf16 %v1592_v53, %v1590_v30 }
 0x1cc   :  { %8138 = vst [vmem:[#allocation43_spill] sm:$0xff] %v6918_v52  ;;  %8139 = vst [vmem:[#allocation44_spill] sm:$0xff] %v6920_v51 }
 0x1ce   :  { %v1763_v46 = vpop.f32.mrb[40].mxu0  ;;  %v1804_v28 = vpop.f32.mrb[40].mxu1 }
 0x1cf   :  { %v1764_v44 = vadd.f32 %v1763_v46, %v6818_v32  ;;  %v1765_v42 = vpop.f32.mrb[41].mxu0  ;;  %v1805_v49 = vadd.f32 %v1804_v28, %v6822_v34  ;;  %v1806_v26 = vpop.f32.mrb[41].mxu1 }
 0x1d0   :  { %v1766_v29 = vadd.f32 %v1765_v42, %v6820_v33  ;;  %v1767_v54 = vpop.f32.mrb[42].mxu0  ;;  %v1807_v38 = vadd.f32 %v1806_v26, %v6825_v35  ;;  %v1808_v43 = vpop.f32.mrb[42].mxu1 }
 0x1d1   :  { %v1768_v37 = vpop.f32.mrb[43].mxu0  ;;  %v1809_v2 = vpop.f32.mrb[43].mxu1 }
 0x1d2   :  { %v6926_v48 = vpack.c.bf16 %v1766_v29, %v1764_v44  ;;  %v6928_v30 = vpack.c.bf16 %v1807_v38, %v1805_v49 }
 0x1d4   :  { %8140 = vst [vmem:[#allocation45_spill] sm:$0xff] %v6926_v48  ;;  %8141 = vst [vmem:[#allocation46_spill] sm:$0xff] %v6928_v30 }
 0x1d6   :  { %v1845_v53 = vpop.f32.mrb[44].mxu0  ;;  %v1886_v51 = vpop.f32.mrb[44].mxu1 }
 0x1d7   :  { %v1846_v39 = vadd.f32 %v1845_v53, %v6840_v59  ;;  %v1847_v46 = vpop.f32.mrb[45].mxu0  ;;  %v1887_v28 = vadd.f32 %v1886_v51, %v6846_v62  ;;  %v1888_v52 = vpop.f32.mrb[45].mxu1 }
 0x1d8   :  { %v1848_v42 = vadd.f32 %v1847_v46, %v6844_v25  ;;  %v1849_v54 = vpop.f32.mrb[46].mxu0  ;;  %v1889_v26 = vadd.f32 %v1888_v52, %v6848_v27  ;;  %v1890_v43 = vpop.f32.mrb[46].mxu1 }
 0x1d9   :  { %v1850_v37 = vpop.f32.mrb[47].mxu0  ;;  %v1891_v29 = vpop.f32.mrb[47].mxu1 }
 0x1da   :  { %v6934_v44 = vpack.c.bf16 %v1848_v42, %v1846_v39  ;;  %v6936_v49 = vpack.c.bf16 %v1889_v26, %v1887_v28 }
 0x1dc   :  { %8142 = vst [vmem:[#allocation47_spill] sm:$0xff] %v6934_v44  ;;  %8143 = vst [vmem:[#allocation48_spill] sm:$0xff] %v6936_v49 }
 0x1de   :  { %v2060_v38 = vpop.f32.mrb[48].mxu0  ;;  %v2101_v30 = vpop.f32.mrb[48].mxu1 }
 0x1df   :  { %v2061_v2 = vadd.f32 %v2060_v38, %v6818_v32  ;;  %v2062_v53 = vpop.f32.mrb[49].mxu0  ;;  %v2102_v51 = vadd.f32 %v2101_v30, %v6822_v34  ;;  %v2103_v48 = vpop.f32.mrb[49].mxu1 }
 0x1e0   :  { %v2063_v46 = vadd.f32 %v2062_v53, %v6820_v33  ;;  %v2064_v54 = vpop.f32.mrb[50].mxu0  ;;  %v2104_v52 = vadd.f32 %v2103_v48, %v6825_v35  ;;  %v2105_v43 = vpop.f32.mrb[50].mxu1 }
 0x1e1   :  { %v2065_v37 = vpop.f32.mrb[51].mxu0  ;;  %v2106_v42 = vpop.f32.mrb[51].mxu1 }
 0x1e2   :  { %v6942_v39 = vpack.c.bf16 %v2063_v46, %v2061_v2  ;;  %v6944_v28 = vpack.c.bf16 %v2104_v52, %v2102_v51  ;;  %v3385_v2 = vsel %vm3383_vm9, 1, %v8123_v61  ;;  %v3392_v42 = vsel %vm3384_vm10, 1, %v8123_v61 }
 0x1e3   :  { %3387 = vperm.xlu1 %5511, %v3385_v2  }
 0x1e4   :  { %8144 = vst [vmem:[#allocation49_spill] sm:$0xff] %v6942_v39  ;;  %8145 = vst [vmem:[#allocation50_spill] sm:$0xff] %v6944_v28 }
 0x1e6   :  { %v2142_v26 = vpop.f32.mrb[52].mxu0  ;;  %v2183_v58 = vpop.f32.mrb[52].mxu1 }
 0x1e7   :  { %v2143_v29 = vadd.f32 %v2142_v26, %v6840_v59  ;;  %v2144_v38 = vpop.f32.mrb[53].mxu0  ;;  %v2184_v48 = vadd.f32 %v2183_v58, %v6846_v62  ;;  %v2185_v54 = vpop.f32.mrb[53].mxu1  ;;  %3394 = vperm.xlu1 %5511, %v3392_v42   ;;  %v3641_v58 = vsel %vm3633_vm11, 1, %v8123_v61  ;;  %vm6243_vm11 = vmmov 0  }
 0x1e8   :  { %v2145_v30 = vadd.f32 %v2144_v38, %v6844_v25  ;;  %v2146_v53 = vpop.f32.mrb[54].mxu0  ;;  %v2186_v51 = vadd.f32 %v2185_v54, %v6848_v27  ;;  %v2187_v37 = vpop.f32.mrb[54].mxu1 }
 0x1e9   :  { %v2147_v46 = vpop.f32.mrb[55].mxu0  ;;  %v2188_v43 = vpop.f32.mrb[55].mxu1 }
 0x1ea   :  { %v6953_v52 = vpack.c.bf16 %v2145_v30, %v2143_v29  ;;  %v6956_v26 = vpack.c.bf16 %v2186_v51, %v2184_v48 }
 0x1eb   :  { %3643 = vperm.xlu1 %5511, %v3641_v58  }
 0x1ee   :  { %v2357_v38 = vpop.f32.mrb[56].mxu0  ;;  %v2398_v28 = vpop.f32.mrb[56].mxu1 }
 0x1ef   :  { %v2358_v53 = vadd.f32 %v2357_v38, %v6818_v32  ;;  %v2359_v46 = vpop.f32.mrb[57].mxu0  ;;  %v2399_v54 = vadd.f32 %v2398_v28, %v6822_v34  ;;  %v2400_v2 = vpop.f32.mrb[57].mxu1  ;;  %v3890_v32 = vsel %vm3882_vm12, 1, %v8123_v61 }
 0x1f0   :  { %v2360_v29 = vadd.f32 %v2359_v46, %v6820_v33  ;;  %v2361_v30 = vpop.f32.mrb[58].mxu0  ;;  %v2401_v51 = vadd.f32 %v2400_v2, %v6825_v35  ;;  %v2402_v37 = vpop.f32.mrb[58].mxu1  ;;  %3892 = vperm.xlu1 %5511, %v3890_v32   ;;  %v3400_v33 = vsel %vm3399_vm13, 1, %v8123_v61  ;;  %v2561_v32 = vunpack.c.l.bf16 %v6842_v60 }
 0x1f1   :  { %v2362_v48 = vpop.f32.mrb[59].mxu0  ;;  %v2403_v42 = vpop.f32.mrb[59].mxu1  ;;  %v3898_v37 = vsel %vm3897_vm14, 1, %v8123_v61 }
 0x1f2   :  { %v6965_v43 = vpack.c.bf16 %v2360_v29, %v2358_v53  ;;  %v6968_v38 = vpack.c.bf16 %v2401_v51, %v2399_v54  ;;  %v4372_v42 = vsel %vm4371_vm15, 1, %v8123_v61 }
 0x1f4   :  { %8146 = vst [vmem:[#allocation51_spill] sm:$0xff] %v6965_v43  ;;  %8147 = vst [vmem:[#allocation52_spill] sm:$0xff] %v6968_v38  ;;  %3402 = vperm.xlu1 %5511, %v3400_v33  }
 0x1f6   :  { %v2439_v36 = vpop.f32.mrb[60].mxu0  ;;  %v2480_v46 = vpop.f32.mrb[60].mxu1 }
 0x1f7   :  { %v2440_v34 = vadd.f32 %v2439_v36, %v6840_v59  ;;  %v2441_v28 = vpop.f32.mrb[61].mxu0  ;;  %v2481_v53 = vadd.f32 %v2480_v46, %v6846_v62  ;;  %v2482_v29 = vpop.f32.mrb[61].mxu1  ;;  %v2559_v62 = vunpack.c.l.bf16 %v6837_v57  ;;  %v2560_v36 = vunpack.c.h.bf16 %v6837_v57 }
 0x1f8   :  { %v2442_v35 = vadd.f32 %v2441_v28, %v6844_v25  ;;  %v2443_v58 = vpop.f32.mrb[62].mxu0  ;;  %v2483_v54 = vadd.f32 %v2482_v29, %v6848_v27  ;;  %v2484_v2 = vpop.f32.mrb[62].mxu1  ;;  %3900 = vperm.xlu1 %5511, %v3898_v37   ;;  %v4844_v25 = vsel %vm4843_vm0, 1, %v8123_v61  ;;  %v2562_v46 = vunpack.c.h.bf16 %v6842_v60 }
 0x1f9   :  { %v2444_v30 = vpop.f32.mrb[63].mxu0  ;;  %v2485_v51 = vpop.f32.mrb[63].mxu1 }
 0x1fa   :  { %v5334_v48 = vpack.c.bf16 %v2442_v35, %v2440_v34  ;;  %v5335_v59 = vpack.c.bf16 %v2483_v54, %v2481_v53 }
 0x1fc   :  { %4374 = vperm.xlu1 %5511, %v4372_v42  }
 0x200   :  { %4846 = vperm.xlu1 %5511, %v4844_v25  }
 0x216   :  { %v2757_v27 = vpop.f32.mrb[64].mxu0  ;;  %v2798_v34 = vpop.f32.mrb[64].mxu1 }
 0x217   :  { %v2758_v33 = vadd.f32 %v2757_v27, %v2559_v62  ;;  %v2759_v28 = vpop.f32.mrb[65].mxu0  ;;  %v2799_v35 = vadd.f32 %v2798_v34, %v2561_v32  ;;  %v2800_v53 = vpop.f32.mrb[65].mxu1 }
 0x218   :  { %v2760_v58 = vadd.f32 %v2759_v28, %v2560_v36  ;;  %v2761_v56 = vpop.f32.mrb[66].mxu0  ;;  %v2801_v30 = vadd.f32 %v2800_v53, %v2562_v46  ;;  %v2802_v2 = vpop.f32.mrb[66].mxu1 }
 0x219   :  { %v5242_v29 = vmul.f32 -1.442695, %v2758_v33  ;;  %v2762_v54 = vpop.f32.mrb[67].mxu0  ;;  %v2803_v37 = vpop.f32.mrb[67].mxu1 }
 0x21a   :  { %v5243_v51 = vmul.f32 -1.442695, %v2760_v58  ;;  %v5244_v42 = vmul.f32 -1.442695, %v2801_v30  ;;  %v2839_v58 = vunpack.c.l.bf16 %v5334_v48  ;;  %v2840_v30 = vunpack.c.h.bf16 %v5334_v48 }
 0x21b   :  { %5608 = vpow2.f32 %v5242_v29  ;;  %v2841_v29 = vunpack.c.l.bf16 %v5335_v59 }
 0x21c   :  { %5610 = vpow2.f32 %v5243_v51  ;;  %v2842_v51 = vunpack.c.h.bf16 %v5335_v59 }
 0x21d   :  { %5612 = vpow2.f32 %v5244_v42 }
 0x21e   :  { %5614 = vtanh.f32 %v2799_v35 }
 0x225   :  { %v5609_v25 = vpop.eup %5608 }
 0x226   :  { %v5611_v57 = vpop.eup %5610  ;;  %v3088_v62 = vadd.f32 1.0, %v5609_v25 }
 0x227   :  { %v3094_v27 = vadd.f32 1.0, %v5611_v57  ;;  %v5613_v60 = vpop.eup %5612 }
 0x228   :  { %5616 = vrcp.f32 %v3088_v62  ;;  %v5615_v32 = vpop.eup %5614  ;;  %v3101_v34 = vadd.f32 1.0, %v5613_v60 }
 0x229   :  { %5618 = vrcp.f32 %v3094_v27 }
 0x22a   :  { %5620 = vrcp.f32 %v3101_v34 }
 0x232   :  { %v5617_v36 = vpop.eup %5616 }
 0x233   :  { %v5619_v33 = vpop.eup %5618  ;;  %v3124_v28 = vmul.f32 %v5617_v36, %v5615_v32 }
 0x234   :  { %v3123_v46 = vmul.f32 0.0, %v5619_v33  ;;  %v5621_v48 = vpop.eup %5620 }
 0x236   :  { %v6986_v53 = vadd.f32 %v3124_v28, %v3123_v46  ;;  %v3037_v56 = vpop.f32.mrb[68].mxu0  ;;  %v3078_v2 = vpop.f32.mrb[68].mxu1 }
 0x237   :  { %v3038_v54 = vadd.f32 %v3037_v56, %v2839_v58  ;;  %v3039_v35 = vpop.f32.mrb[69].mxu0  ;;  %v3079_v37 = vadd.f32 %v3078_v2, %v2841_v29  ;;  %v3080_v25 = vpop.f32.mrb[69].mxu1 }
 0x238   :  { %5622 = vtanh.f32 %v6986_v53  ;;  %v3040_v42 = vadd.f32 %v3039_v35, %v2840_v30  ;;  %v3041_v57 = vpop.f32.mrb[70].mxu0  ;;  %v3081_v27 = vadd.f32 %v3080_v25, %v2842_v51  ;;  %v3082_v32 = vpop.f32.mrb[70].mxu1  ;;  %v7085_v51 = vld [vmem:[#allocation12 + $0x6c] ss:$16 sps:$4 sm:$0xff]   ;;  %v7094_v25 = vld [vmem:[#allocation12 + $0x84] ss:$16 sps:$4 sm:$0xff]  }
 0x239   :  { %v5245_v62 = vmul.f32 -1.442695, %v3038_v54  ;;  %v3042_v60 = vpop.f32.mrb[71].mxu0  ;;  %v3083_v33 = vpop.f32.mrb[71].mxu1  ;;  %8160 = vst [vmem:[#allocation59_spill] sm:$0xff] %v7085_v51  ;;  %8163 = vst [vmem:[#allocation62_spill] sm:$0xff] %v7094_v25 }
 0x23a   :  { %v5246_v36 = vmul.f32 -1.442695, %v3040_v42  ;;  %v6989_v28 = vpop.permute.xlu0 %3137  ;;  %v5247_v46 = vmul.f32 -1.442695, %v3081_v27  ;;  %v7091_v42 = vld [vmem:[#allocation12 + $0x68] ss:$16 sps:$4 sm:$0xff]  }
 0x23b   :  { %5624 = vpow2.f32 %v5245_v62  ;;  %8148 = vst [vmem:[#allocation53_spill] sm:$0xff] %v6989_v28  ;;  %vm3139_vm1 = vcmp.eq.s32.totalorder %v6989_v28, 1  ;;  %8162 = vst [vmem:[#allocation61_spill] sm:$0xff] %v7091_v42  ;;  %v7097_v57 = vld [vmem:[#allocation12 + $0x8c] ss:$16 sps:$4 sm:$0xff]  }
 0x23c   :  { %5626 = vpow2.f32 %v5246_v36  ;;  %vm5249_vm2 = vmpackc.low %vm3139_vm1, %vm3139_vm1  ;;  %8164 = vst [vmem:[#allocation63_spill] sm:$0xff] %v7097_v57  ;;  %v7100_v62 = vld [vmem:[#allocation12 + $0x80] ss:$16 sps:$4 sm:$0xff]   ;;  %v7103_v27 = vld [vmem:[#allocation12 + $0x88] ss:$16 sps:$4 sm:$0xff]  }
 0x23d   :  { %5628 = vpow2.f32 %v5247_v46  ;;  %8165 = vst [vmem:[#allocation64_spill] sm:$0xff] %v7100_v62  ;;  %8166 = vst [vmem:[#allocation65_spill] sm:$0xff] %v7103_v27  ;;  %v7106_v60 = vld [vmem:[#allocation12 + $0xa4] ss:$16 sps:$4 sm:$0xff]   ;;  %v7109_v32 = vld [vmem:[#allocation12 + $0xac] ss:$16 sps:$4 sm:$0xff]  }
 0x23e   :  { %5630 = vtanh.f32 %v3079_v37  ;;  %v7088_v37 = vld [vmem:[#allocation12 + $0x60] ss:$16 sps:$4 sm:$0xff]   ;;  %8167 = vst [vmem:[#allocation66_spill] sm:$0xff] %v7106_v60  ;;  %8168 = vst [vmem:[#allocation67_spill] sm:$0xff] %v7109_v32  ;;  %v7115_v33 = vld [vmem:[#allocation12 + $0xa8] ss:$16 sps:$4 sm:$0xff]  }
 0x23f   :  { %8161 = vst [vmem:[#allocation60_spill] sm:$0xff] %v7088_v37  ;;  %v7112_v36 = vld [vmem:[#allocation12 + $0xa0] ss:$16 sps:$4 sm:$0xff]   ;;  %8170 = vst [vmem:[#allocation69_spill] sm:$0xff] %v7115_v33  ;;  %v7224_v28 = vld [vmem:[#allocation13 + $0x84] ss:$16 sps:$4 sm:$0xff]  }
 0x240   :  { %8169 = vst [vmem:[#allocation68_spill] sm:$0xff] %v7112_v36  ;;  %v7124_v46 = vld [vmem:[#allocation12 + $0xc0] ss:$16 sps:$4 sm:$0xff]  }
 0x241   :  { %8173 = vst [vmem:[#allocation72_spill] sm:$0xff] %v7124_v46 }
 0x242   :  { %v5623_v34 = vpop.eup %5622 }
 0x243   :  { %v6991_v59 = vmul.f32 %v5623_v34, %v5621_v48  ;;  %v7118_v48 = vld [vmem:[#allocation12 + $0xc4] ss:$16 sps:$4 sm:$0xff]   ;;  %v7121_v34 = vld [vmem:[#allocation12 + $0xcc] ss:$16 sps:$4 sm:$0xff]  }
 0x244   :  { %8171 = vst [vmem:[#allocation70_spill] sm:$0xff] %v7118_v48  ;;  %8172 = vst [vmem:[#allocation71_spill] sm:$0xff] %v7121_v34 }
 0x245   :  { %v5625_v58 = vpop.eup %5624  ;;  %v5250_v56 = vpack.c.bf16 %v6991_v59, %v6991_v59 }
 0x246   :  { %v5627_v29 = vpop.eup %5626  ;;  %v3107_v30 = vadd.f32 1.0, %v5625_v58  ;;  %v7127_v58 = vld [vmem:[#allocation12 + $0xc8] ss:$16 sps:$4 sm:$0xff]  }
 0x247   :  { %v3113_v54 = vadd.f32 1.0, %v5627_v29  ;;  %5251 = vmatmul.mubr.msk.bf16.vlgmr.msra.gmra.mrb[72].mxu0 %vm5249_vm2, %v5250_v56  ;;  %5254 = vmatmul.mubr.msk.bf16.vlgmr.msra.gmra.mrb[72].mxu1 %vm5249_vm2, %v5250_v56  ;;  %8174 = vst [vmem:[#allocation73_spill] sm:$0xff] %v7127_v58  ;;  %v7130_v56 = vld [vmem:[#allocation12 + $0xe4] ss:$16 sps:$4 sm:$0xff]   ;;  %v7133_v29 = vld [vmem:[#allocation12 + $0xec] ss:$16 sps:$4 sm:$0xff]  }
 0x248   :  { %5632 = vrcp.f32 %v3107_v30  ;;  %3254 = vmatpush1.bf16.msra.mxu0 %v6687_v4  ;;  %3295 = vmatpush1.bf16.msra.mxu1 %v6691_v5  ;;  %v5629_v4 = vpop.eup %5628  ;;  %8175 = vst [vmem:[#allocation74_spill] sm:$0xff] %v7130_v56  ;;  %8176 = vst [vmem:[#allocation75_spill] sm:$0xff] %v7133_v29  ;;  %v7136_v30 = vld [vmem:[#allocation12 + $0xe0] ss:$16 sps:$4 sm:$0xff]  }
 0x249   :  { %5634 = vrcp.f32 %v3113_v54  ;;  %3255 = vmatprep.subr.bf16.mxu0 %v6693_v6  ;;  %3296 = vmatprep.subr.bf16.mxu1 %v6697_v7  ;;  %v5631_v5 = vpop.eup %5630  ;;  %8177 = vst [vmem:[#allocation76_spill] sm:$0xff] %v7136_v30  ;;  %v7139_v54 = vld [vmem:[#allocation12 + $0xe8] ss:$16 sps:$4 sm:$0xff]  }
 0x24a   :  { %3285 = vmatprep.mubr.bf16.mxu0 %v8123_v61  ;;  %3326 = vmatprep.mubr.bf16.mxu1 %v8123_v61  ;;  %8178 = vst [vmem:[#allocation77_spill] sm:$0xff] %v7139_v54 }
 0x24c   :  { %3256 = vmatpush1.bf16.msra.mxu0 %v6703_v9  ;;  %3297 = vmatpush1.bf16.msra.mxu1 %v6707_v10  ;;  %v3120_v9 = vadd.f32 1.0, %v5629_v4  ;;  %v7142_v4 = vld [vmem:[#allocation13 + $0x4] ss:$16 sps:$4 sm:$0xff]  }
 0x24d   :  { %3257 = vmatprep.subr.bf16.mxu0 %v6709_v11  ;;  %3298 = vmatprep.subr.bf16.mxu1 %v6713_v12  ;;  %v8149_v11 = vld [vmem:[#allocation26_spill] sm:$0xff]  ;;  %v8150_v12 = vld [vmem:[#allocation27_spill] sm:$0xff]  ;;  %8179 = vst [vmem:[#allocation78_spill] sm:$0xff] %v7142_v4 }
 0x24e   :  { %5636 = vrcp.f32 %v3120_v9 }
 0x250   :  { %3258 = vmatpush1.bf16.msra.mxu0 %v6719_v14  ;;  %3299 = vmatpush1.bf16.msra.mxu1 %v6723_v15  ;;  %v8151_v14 = vld [vmem:[#allocation28_spill] sm:$0xff] }
 0x251   :  { %3259 = vmatprep.subr.bf16.mxu0 %v6725_v16  ;;  %3300 = vmatprep.subr.bf16.mxu1 %v6728_v17  ;;  %v7032_v17 = vpop.permute.xlu0 %3144 }
 0x252   :  { %v5633_v6 = vpop.eup %5632  ;;  %8152 = vst [vmem:[#allocation26_spill] sm:$0xff] %v7032_v17  ;;  %vm3146_vm3 = vcmp.eq.s32.totalorder %v7032_v17, 1 }
 0x253   :  { %v5635_v7 = vpop.eup %5634  ;;  %v3127_v2 = vmul.f32 %v5633_v6, %v5631_v5  ;;  %vm5255_vm4 = vmpackc.low %vm3146_vm3, %vm3146_vm3  ;;  %v7145_v5 = vld [vmem:[#allocation13 + $0xc] ss:$16 sps:$4 sm:$0xff]   ;;  %v3160_v6 = vunpack.c.l.bf16 %v6862_v63 }
 0x254   :  { %v3126_v35 = vmul.f32 0.0, %v5635_v7  ;;  %3260 = vmatpush1.bf16.msra.mxu0 %v6731_v18  ;;  %3301 = vmatpush1.bf16.msra.mxu1 %v6735_v19  ;;  %8180 = vst [vmem:[#allocation79_spill] sm:$0xff] %v7145_v5  ;;  %v3162_v7 = vunpack.c.l.bf16 %v6864_v1 }
 0x255   :  { %3261 = vmatprep.subr.bf16.mxu0 %v6737_v20  ;;  %3302 = vmatprep.subr.bf16.mxu1 %v6740_v21  ;;  %v7041_v20 = vld [vmem:[#allocation12 + $0x4] ss:$16 sps:$4 sm:$0xff]   ;;  %v7044_v21 = vld [vmem:[#allocation12 + $0xc] ss:$16 sps:$4 sm:$0xff]  }
 0x256   :  { %v7017_v10 = vadd.f32 %v3127_v2, %v3126_v35  ;;  %v3161_v35 = vunpack.c.h.bf16 %v6862_v63 }
 0x258   :  { %5638 = vtanh.f32 %v7017_v10  ;;  %3262 = vmatpush1.bf16.msra.mxu0 %v6743_v22  ;;  %3303 = vmatpush1.bf16.msra.mxu1 %v6747_v23  ;;  %v5637_v15 = vpop.eup %5636  ;;  %v7053_v22 = vld [vmem:[#allocation12 + $0x8] ss:$16 sps:$4 sm:$0xff]   ;;  %v7056_v23 = vld [vmem:[#allocation12 + $0x24] ss:$16 sps:$4 sm:$0xff]  }
 0x259   :  { %3263 = vmatprep.subr.bf16.mxu0 %v6749_v24  ;;  %3304 = vmatprep.subr.bf16.mxu1 %v8149_v11  ;;  %v7059_v24 = vld [vmem:[#allocation12 + $0x2c] ss:$16 sps:$4 sm:$0xff]   ;;  %v3163_v11 = vunpack.c.h.bf16 %v6864_v1 }
 0x25c   :  { %3264 = vmatpush1.bf16.msra.mxu0 %v8150_v12  ;;  %3305 = vmatpush1.bf16.msra.mxu1 %v6759_v50  ;;  %v7070_v50 = vld [vmem:[#allocation12 + $0x44] ss:$16 sps:$4 sm:$0xff]  }
 0x25d   :  { %3265 = vmatprep.subr.bf16.mxu0 %v6761_v55  ;;  %3306 = vmatprep.subr.bf16.mxu1 %v8151_v14  ;;  %8155 = vst [vmem:[#allocation54_spill] sm:$0xff] %v7070_v50  ;;  %v7073_v55 = vld [vmem:[#allocation12 + $0x4c] ss:$16 sps:$4 sm:$0xff]  }
 0x25e   :  { %8156 = vst [vmem:[#allocation55_spill] sm:$0xff] %v7073_v55 }
 0x260   :  { %3266 = vmatpush1.bf16.msra.mxu0 %v6767_v3  ;;  %3307 = vmatpush1.bf16.msra.mxu1 %v6771_v8  ;;  %v7076_v3 = vld [vmem:[#allocation12 + $0x40] ss:$16 sps:$4 sm:$0xff]   ;;  %v7079_v8 = vld [vmem:[#allocation12 + $0x48] ss:$16 sps:$4 sm:$0xff]  }
 0x261   :  { %3267 = vmatprep.subr.bf16.mxu0 %v6773_v13  ;;  %3308 = vmatprep.subr.bf16.mxu1 %v6776_v0  ;;  %v7050_v0 = vld [vmem:[#allocation12] ss:$16 sps:$4 sm:$0xff]   ;;  %8157 = vst [vmem:[#allocation56_spill] sm:$0xff] %v7076_v3  ;;  %8158 = vst [vmem:[#allocation57_spill] sm:$0xff] %v7079_v8  ;;  %v7082_v13 = vld [vmem:[#allocation12 + $0x64] ss:$16 sps:$4 sm:$0xff]  }
 0x262   :  { %v5639_v16 = vpop.eup %5638  ;;  %8159 = vst [vmem:[#allocation58_spill] sm:$0xff] %v7082_v13 }
 0x263   :  { %v7035_v18 = vmul.f32 %v5639_v16, %v5637_v15 }
 0x264   :  { %3268 = vmatpush1.bf16.msra.mxu0 %v6779_v40  ;;  %3309 = vmatpush1.bf16.msra.mxu1 %v6783_v45  ;;  %v7064_v40 = vld [vmem:[#allocation12 + $0x20] ss:$16 sps:$4 sm:$0xff]   ;;  %v7067_v45 = vld [vmem:[#allocation12 + $0x28] ss:$16 sps:$4 sm:$0xff]  }
 0x265   :  { %v5256_v19 = vpack.c.bf16 %v7035_v18, %v7035_v18  ;;  %3413 = vmatprep.subr.bf16.mxu0 %v7041_v20  ;;  %3454 = vmatprep.subr.bf16.mxu1 %v7044_v21  ;;  %8153 = vst [vmem:[#allocation27_spill] sm:$0xff] %v7064_v40  ;;  %8154 = vst [vmem:[#allocation28_spill] sm:$0xff] %v7067_v45 }
 0x267   :  { %5257 = vmatmul.mubr.msk.bf16.vlgmr.msra.gmra.mrb[76].mxu0 %vm5255_vm4, %v5256_v19  ;;  %5260 = vmatmul.mubr.msk.bf16.vlgmr.msra.gmra.mrb[76].mxu1 %vm5255_vm4, %v5256_v19 }
 0x268   :  { %3414 = vmatpush1.bf16.msra.mxu0 %v7050_v0  ;;  %3455 = vmatpush1.bf16.msra.mxu1 %v7053_v22 }
 0x269   :  { %3415 = vmatprep.subr.bf16.mxu0 %v7056_v23  ;;  %3456 = vmatprep.subr.bf16.mxu1 %v7059_v24 }
 0x26a   :  { %3445 = vmatprep.mubr.bf16.mxu0 %v8123_v61  ;;  %3486 = vmatprep.mubr.bf16.mxu1 %v8123_v61 }
 0x26c   :  { %3416 = vmatpush1.bf16.msra.mxu0 %v7064_v40  ;;  %3457 = vmatpush1.bf16.msra.mxu1 %v7067_v45 }
 0x26d   :  { %3417 = vmatprep.subr.bf16.mxu0 %v7070_v50  ;;  %3458 = vmatprep.subr.bf16.mxu1 %v7073_v55 }
 0x270   :  { %3418 = vmatpush1.bf16.msra.mxu0 %v7076_v3  ;;  %3459 = vmatpush1.bf16.msra.mxu1 %v7079_v8 }
 0x271   :  { %3419 = vmatprep.subr.bf16.mxu0 %v7082_v13  ;;  %3460 = vmatprep.subr.bf16.mxu1 %v7085_v51 }
 0x274   :  { %3420 = vmatpush1.bf16.msra.mxu0 %v7088_v37  ;;  %3461 = vmatpush1.bf16.msra.mxu1 %v7091_v42 }
 0x275   :  { %3421 = vmatprep.subr.bf16.mxu0 %v7094_v25  ;;  %3462 = vmatprep.subr.bf16.mxu1 %v7097_v57 }
 0x278   :  { %3422 = vmatpush1.bf16.msra.mxu0 %v7100_v62  ;;  %3463 = vmatpush1.bf16.msra.mxu1 %v7103_v27 }
 0x279   :  { %3423 = vmatprep.subr.bf16.mxu0 %v7106_v60  ;;  %3464 = vmatprep.subr.bf16.mxu1 %v7109_v32 }
 0x27c   :  { %3424 = vmatpush1.bf16.msra.mxu0 %v7112_v36  ;;  %3465 = vmatpush1.bf16.msra.mxu1 %v7115_v33 }
 0x27d   :  { %3425 = vmatprep.subr.bf16.mxu0 %v7118_v48  ;;  %3466 = vmatprep.subr.bf16.mxu1 %v7121_v34 }
 0x280   :  { %3426 = vmatpush1.bf16.msra.mxu0 %v7124_v46  ;;  %3467 = vmatpush1.bf16.msra.mxu1 %v7127_v58 }
 0x281   :  { %3427 = vmatprep.subr.bf16.mxu0 %v7130_v56  ;;  %3468 = vmatprep.subr.bf16.mxu1 %v7133_v29 }
 0x284   :  { %3428 = vmatpush1.bf16.msra.mxu0 %v7136_v30  ;;  %3469 = vmatpush1.bf16.msra.mxu1 %v7139_v54 }
 0x285   :  { %3502 = vmatprep.subr.bf16.mxu0 %v7142_v4  ;;  %3543 = vmatprep.subr.bf16.mxu1 %v7145_v5 }
 0x31a   :  { %v3198_v2 = vpop.f32.mrb[72].mxu0  ;;  %v3239_v9 = vpop.f32.mrb[72].mxu1 }
 0x31b   :  { %v3199_v12 = vadd.f32 %v3198_v2, %v3160_v6  ;;  %v3240_v14 = vadd.f32 %v3239_v9, %v3162_v7  ;;  %v3200_v15 = vpop.f32.mrb[73].mxu0  ;;  %v3241_v16 = vpop.f32.mrb[73].mxu1 }
 0x31c   :  { %v3201_v19 = vadd.f32 %v3200_v15, %v3161_v35  ;;  %v3242_v38 = vadd.f32 %v3241_v16, %v3163_v11  ;;  %v3202_v43 = vpop.f32.mrb[74].mxu0  ;;  %v3243_v39 = vpop.f32.mrb[74].mxu1  ;;  %v3250_v35 = vunpack.c.h.bf16 %v6953_v52  ;;  %v3252_v11 = vunpack.c.h.bf16 %v6956_v26 }
 0x31d   :  { %v5261_v47 = vmul.f32 -1.442695, %v3199_v12  ;;  %v3203_v49 = vpop.f32.mrb[75].mxu0  ;;  %v3244_v44 = vpop.f32.mrb[75].mxu1 }
 0x31e   :  { %v5262_v41 = vmul.f32 -1.442695, %v3201_v19  ;;  %v5263_v31 = vmul.f32 -1.442695, %v3242_v38  ;;  %v3141_v44 = vsel %vm3139_vm1, %v6986_v53, 0.0  ;;  %v3251_v38 = vunpack.c.l.bf16 %v6956_v26 }
 0x31f   :  { %5640 = vpow2.f32 %v5261_v47 }
 0x320   :  { %5642 = vpow2.f32 %v5262_v41  ;;  %v7155_v41 = vpop.permute.xlu1 %3387 }
 0x321   :  { %5644 = vpow2.f32 %v5263_v31  ;;  %8181 = vst [vmem:[#allocation80_spill] sm:$0xff] %v7155_v41  ;;  %vm3389_vm5 = vcmp.eq.s32.totalorder %v7155_v41, 1  ;;  %v3249_v31 = vunpack.c.l.bf16 %v6953_v52  ;;  %v7227_v41 = vld [vmem:[#allocation13 + $0x8c] ss:$16 sps:$4 sm:$0xff]  }
 0x322   :  { %5646 = vtanh.f32 %v3240_v14 }
 0x329   :  { %v5641_v5 = vpop.eup %5640 }
 0x32a   :  { %v5643_v4 = vpop.eup %5642  ;;  %v3338_v63 = vadd.f32 1.0, %v5641_v5 }
 0x32b   :  { %v3344_v1 = vadd.f32 1.0, %v5643_v4  ;;  %v5645_v6 = vpop.eup %5644 }
 0x32c   :  { %5648 = vrcp.f32 %v3338_v63  ;;  %v5647_v7 = vpop.eup %5646  ;;  %v3351_v49 = vadd.f32 1.0, %v5645_v6 }
 0x32d   :  { %5650 = vrcp.f32 %v3344_v1 }
 0x32e   :  { %5652 = vrcp.f32 %v3351_v49 }
 0x336   :  { %v5649_v2 = vpop.eup %5648 }
 0x337   :  { %v5651_v43 = vpop.eup %5650  ;;  %v3374_v47 = vmul.f32 %v5649_v2, %v5647_v7 }
 0x338   :  { %v3373_v39 = vmul.f32 %v5651_v43, %v3141_v44  ;;  %v5653_v26 = vpop.eup %5652 }
 0x33a   :  { %v3375_v4 = vadd.f32 %v3374_v47, %v3373_v39  ;;  %v3287_v5 = vpop.f32.mrb[76].mxu0  ;;  %v3328_v9 = vpop.f32.mrb[76].mxu1 }
 0x33b   :  { %v3288_v53 = vadd.f32 %v3287_v5, %v3249_v31  ;;  %v3329_v12 = vadd.f32 %v3328_v9, %v3251_v38  ;;  %v3289_v14 = vpop.f32.mrb[77].mxu0  ;;  %v3330_v15 = vpop.f32.mrb[77].mxu1  ;;  %v3140_v31 = vsel %vm3139_vm1, %v6991_v59, 0.0  ;;  %v7178_v59 = vld [vmem:[#allocation13 + $0x8] ss:$16 sps:$4 sm:$0xff]  }
 0x33c   :  { %5654 = vtanh.f32 %v3375_v4  ;;  %v7164_v16 = vsel %vm3389_vm5, %v3375_v4, %v3141_v44  ;;  %v3290_v19 = vadd.f32 %v3289_v14, %v3250_v35  ;;  %v3331_v63 = vadd.f32 %v3330_v15, %v3252_v11  ;;  %v3291_v1 = vpop.f32.mrb[78].mxu0  ;;  %v3332_v6 = vpop.f32.mrb[78].mxu1  ;;  %v7175_v11 = vld [vmem:[#allocation13] ss:$16 sps:$4 sm:$0xff]   ;;  %v7184_v14 = vld [vmem:[#allocation13 + $0x2c] ss:$16 sps:$4 sm:$0xff]  }
 0x33d   :  { %v5264_v7 = vmul.f32 -1.442695, %v3288_v53  ;;  %v3292_v2 = vpop.f32.mrb[79].mxu0  ;;  %v3333_v43 = vpop.f32.mrb[79].mxu1  ;;  %v7181_v53 = vld [vmem:[#allocation13 + $0x24] ss:$16 sps:$4 sm:$0xff]  }
 0x33e   :  { %v5265_v52 = vmul.f32 -1.442695, %v3290_v19  ;;  %v5266_v47 = vmul.f32 -1.442695, %v3331_v63  ;;  %v7192_v15 = vld [vmem:[#allocation13 + $0x28] ss:$16 sps:$4 sm:$0xff]  }
 0x33f   :  { %5656 = vpow2.f32 %v5264_v7  ;;  %v7195_v19 = vld [vmem:[#allocation13 + $0x44] ss:$16 sps:$4 sm:$0xff]   ;;  %v7198_v63 = vld [vmem:[#allocation13 + $0x4c] ss:$16 sps:$4 sm:$0xff]   ;;  %v7201_v7 = vld [vmem:[#allocation13 + $0x40] ss:$16 sps:$4 sm:$0xff]  }
 0x340   :  { %5658 = vpow2.f32 %v5265_v52  ;;  %v7204_v2 = vld [vmem:[#allocation13 + $0x48] ss:$16 sps:$4 sm:$0xff]   ;;  %v7207_v52 = vld [vmem:[#allocation13 + $0x64] ss:$16 sps:$4 sm:$0xff]  }
 0x341   :  { %5660 = vpow2.f32 %v5266_v47  ;;  %v3148_v47 = vsel %vm3146_vm3, %v7017_v10, 0.0 }
 0x342   :  { %5662 = vtanh.f32 %v3329_v12  ;;  %v7189_v12 = vld [vmem:[#allocation13 + $0x20] ss:$16 sps:$4 sm:$0xff]  }
 0x346   :  { %v5655_v49 = vpop.eup %5654 }
 0x347   :  { %v3380_v39 = vmul.f32 %v5655_v49, %v5653_v26  ;;  %v7210_v26 = vld [vmem:[#allocation13 + $0x6c] ss:$16 sps:$4 sm:$0xff]  }
 0x349   :  { %v5657_v44 = vpop.eup %5656  ;;  %v7171_v38 = vsel %vm3389_vm5, %v3380_v39, %v3140_v31 }
 0x34a   :  { %v5659_v4 = vpop.eup %5658  ;;  %v3406_v5 = vpack.c.bf16 %v7171_v38, %v7171_v38  ;;  %v3357_v9 = vadd.f32 1.0, %v5657_v44 }
 0x34b   :  { %v3363_v35 = vadd.f32 1.0, %v5659_v4  ;;  %v5661_v1 = vpop.eup %5660  ;;  %v7216_v4 = vld [vmem:[#allocation13 + $0x60] ss:$16 sps:$4 sm:$0xff]  }
 0x34c   :  { %5664 = vrcp.f32 %v3357_v9  ;;  %3446 = vmatmul.mubr.bf16.vlgmr.msra.gmra.mrb[80].mxu0 %v3406_v5  ;;  %3487 = vmatmul.mubr.bf16.vlgmr.msra.gmra.mrb[80].mxu1 %v3406_v5  ;;  %v5663_v6 = vpop.eup %5662  ;;  %v3370_v31 = vadd.f32 1.0, %v5661_v1  ;;  %v7219_v5 = vld [vmem:[#allocation13 + $0x68] ss:$16 sps:$4 sm:$0xff]   ;;  %v7222_v9 = vpop.permute.xlu1 %3394  ;;  %v7235_v1 = vld [vmem:[#allocation13 + $0x80] ss:$16 sps:$4 sm:$0xff]  }
 0x34d   :  { %5666 = vrcp.f32 %v3363_v35  ;;  %3503 = vmatpush1.bf16.msra.mxu0 %v7175_v11  ;;  %3544 = vmatpush1.bf16.msra.mxu1 %v7178_v59  ;;  %8182 = vst [vmem:[#allocation81_spill] sm:$0xff] %v7222_v9  ;;  %vm3396_vm6 = vcmp.eq.s32.totalorder %v7222_v9, 1 }
 0x34e   :  { %3504 = vmatprep.subr.bf16.mxu0 %v7181_v53  ;;  %3545 = vmatprep.subr.bf16.mxu1 %v7184_v14  ;;  %5668 = vrcp.f32 %v3370_v31  ;;  %v7253_v31 = vld [vmem:[#allocation13 + $0xc4] ss:$16 sps:$4 sm:$0xff]  }
 0x34f   :  { %3534 = vmatprep.mubr.bf16.mxu0 %v8123_v61  ;;  %3575 = vmatprep.mubr.bf16.mxu1 %v8123_v61  ;;  %8188 = vst [vmem:[#allocation87_spill] sm:$0xff] %v7253_v31 }
 0x351   :  { %3505 = vmatpush1.bf16.msra.mxu0 %v7189_v12  ;;  %3546 = vmatpush1.bf16.msra.mxu1 %v7192_v15 }
 0x352   :  { %3506 = vmatprep.subr.bf16.mxu0 %v7195_v19  ;;  %3547 = vmatprep.subr.bf16.mxu1 %v7198_v63 }
 0x355   :  { %3507 = vmatpush1.bf16.msra.mxu0 %v7201_v7  ;;  %3548 = vmatpush1.bf16.msra.mxu1 %v7204_v2 }
 0x356   :  { %v5665_v43 = vpop.eup %5664  ;;  %3508 = vmatprep.subr.bf16.mxu0 %v7207_v52  ;;  %3549 = vmatprep.subr.bf16.mxu1 %v7210_v26 }
 0x357   :  { %v5667_v49 = vpop.eup %5666  ;;  %v3377_v39 = vmul.f32 %v5665_v43, %v5663_v6  ;;  %v7238_v6 = vld [vmem:[#allocation13 + $0x88] ss:$16 sps:$4 sm:$0xff]   ;;  %v7241_v43 = vld [vmem:[#allocation13 + $0xa4] ss:$16 sps:$4 sm:$0xff]  }
 0x358   :  { %v3376_v44 = vmul.f32 %v5667_v49, %v3148_v47  ;;  %8183 = vst [vmem:[#allocation82_spill] sm:$0xff] %v7238_v6  ;;  %8184 = vst [vmem:[#allocation83_spill] sm:$0xff] %v7241_v43  ;;  %v7244_v49 = vld [vmem:[#allocation13 + $0xac] ss:$16 sps:$4 sm:$0xff]  }
 0x359   :  { %3509 = vmatpush1.bf16.msra.mxu0 %v7216_v4  ;;  %3550 = vmatpush1.bf16.msra.mxu1 %v7219_v5  ;;  %8185 = vst [vmem:[#allocation84_spill] sm:$0xff] %v7244_v49 }
 0x35a   :  { %v3378_v35 = vadd.f32 %v3377_v39, %v3376_v44  ;;  %3510 = vmatprep.subr.bf16.mxu0 %v7224_v28  ;;  %3551 = vmatprep.subr.bf16.mxu1 %v7227_v41  ;;  %v7247_v39 = vld [vmem:[#allocation13 + $0xa0] ss:$16 sps:$4 sm:$0xff]   ;;  %v7256_v44 = vld [vmem:[#allocation13 + $0xcc] ss:$16 sps:$4 sm:$0xff]  }
 0x35b   :  { %8186 = vst [vmem:[#allocation85_spill] sm:$0xff] %v7247_v39  ;;  %8189 = vst [vmem:[#allocation88_spill] sm:$0xff] %v7256_v44 }
 0x35c   :  { %5670 = vtanh.f32 %v3378_v35  ;;  %v7233_v10 = vsel %vm3396_vm6, %v3378_v35, %v3148_v47  ;;  %v7250_v47 = vld [vmem:[#allocation13 + $0xa8] ss:$16 sps:$4 sm:$0xff]   ;;  %v5669_v35 = vpop.eup %5668 }
 0x35d   :  { %3511 = vmatpush1.bf16.msra.mxu0 %v7235_v1  ;;  %3552 = vmatpush1.bf16.msra.mxu1 %v7238_v6  ;;  %8187 = vst [vmem:[#allocation86_spill] sm:$0xff] %v7250_v47  ;;  %v7265_v6 = vld [vmem:[#allocation13 + $0xe4] ss:$16 sps:$4 sm:$0xff]  }
 0x35e   :  { %3512 = vmatprep.subr.bf16.mxu0 %v7241_v43  ;;  %3553 = vmatprep.subr.bf16.mxu1 %v7244_v49  ;;  %v7259_v43 = vld [vmem:[#allocation13 + $0xc0] ss:$16 sps:$4 sm:$0xff]   ;;  %v7262_v49 = vld [vmem:[#allocation13 + $0xc8] ss:$16 sps:$4 sm:$0xff]   ;;  %8192 = vst [vmem:[#allocation91_spill] sm:$0xff] %v7265_v6 }
 0x35f   :  { %8190 = vst [vmem:[#allocation89_spill] sm:$0xff] %v7259_v43  ;;  %8191 = vst [vmem:[#allocation90_spill] sm:$0xff] %v7262_v49 }
 0x361   :  { %3513 = vmatpush1.bf16.msra.mxu0 %v7247_v39  ;;  %3554 = vmatpush1.bf16.msra.mxu1 %v7250_v47  ;;  %v7268_v47 = vld [vmem:[#allocation13 + $0xec] ss:$16 sps:$4 sm:$0xff]  }
 0x362   :  { %3514 = vmatprep.subr.bf16.mxu0 %v7253_v31  ;;  %3555 = vmatprep.subr.bf16.mxu1 %v7256_v44  ;;  %v7274_v44 = vsel %vm3146_vm3, %v7035_v18, 0.0  ;;  %v8195_v18 = vld [vmem:[#allocation78_spill] sm:$0xff] }
 0x363   :  { %8193 = vst [vmem:[#allocation92_spill] sm:$0xff] %v7274_v44 }
 0x365   :  { %3515 = vmatpush1.bf16.msra.mxu0 %v7259_v43  ;;  %3556 = vmatpush1.bf16.msra.mxu1 %v7262_v49  ;;  %v7281_v49 = vld [vmem:[#allocation13 + $0xe0] ss:$16 sps:$4 sm:$0xff]  }
 0x366   :  { %v5671_v39 = vpop.eup %5670  ;;  %3516 = vmatprep.subr.bf16.mxu0 %v7265_v6  ;;  %3557 = vmatprep.subr.bf16.mxu1 %v7268_v47  ;;  %v7284_v6 = vld [vmem:[#allocation13 + $0xe8] ss:$16 sps:$4 sm:$0xff]  }
 0x367   :  { %v3382_v31 = vmul.f32 %v5671_v39, %v5669_v35  ;;  %v8197_v35 = vld [vmem:[#allocation33_spill] sm:$0xff] }
 0x369   :  { %v7279_v43 = vsel %vm3396_vm6, %v3382_v31, %v7274_v44  ;;  %3517 = vmatpush1.bf16.msra.mxu0 %v7281_v49  ;;  %3558 = vmatpush1.bf16.msra.mxu1 %v7284_v6  ;;  %v8196_v31 = vld [vmem:[#allocation79_spill] sm:$0xff]  ;;  %v8198_v44 = vld [vmem:[#allocation34_spill] sm:$0xff] }
 0x36a   :  { %8194 = vst [vmem:[#allocation93_spill] sm:$0xff] %v7279_v43  ;;  %v3495_v39 = vpack.c.bf16 %v7279_v43, %v7279_v43  ;;  %3662 = vmatprep.subr.bf16.mxu0 %v7041_v20  ;;  %3703 = vmatprep.subr.bf16.mxu1 %v7044_v21  ;;  %v3411_v17 = vunpack.c.l.bf16 %v8198_v44 }
 0x36c   :  { %3535 = vmatmul.mubr.bf16.vlgmr.msra.gmra.mrb[84].mxu0 %v3495_v39  ;;  %3576 = vmatmul.mubr.bf16.vlgmr.msra.gmra.mrb[84].mxu1 %v3495_v39  ;;  %v3409_v39 = vunpack.c.l.bf16 %v8197_v35 }
 0x36d   :  { %3663 = vmatpush1.bf16.msra.mxu0 %v7050_v0  ;;  %3704 = vmatpush1.bf16.msra.mxu1 %v7053_v22 }
 0x36e   :  { %3664 = vmatprep.subr.bf16.mxu0 %v7056_v23  ;;  %3705 = vmatprep.subr.bf16.mxu1 %v7059_v24 }
 0x36f   :  { %3694 = vmatprep.mubr.bf16.mxu0 %v8123_v61  ;;  %3735 = vmatprep.mubr.bf16.mxu1 %v8123_v61 }
 0x371   :  { %3665 = vmatpush1.bf16.msra.mxu0 %v7064_v40  ;;  %3706 = vmatpush1.bf16.msra.mxu1 %v7067_v45 }
 0x372   :  { %3666 = vmatprep.subr.bf16.mxu0 %v7070_v50  ;;  %3707 = vmatprep.subr.bf16.mxu1 %v7073_v55 }
 0x375   :  { %3667 = vmatpush1.bf16.msra.mxu0 %v7076_v3  ;;  %3708 = vmatpush1.bf16.msra.mxu1 %v7079_v8 }
 0x376   :  { %3668 = vmatprep.subr.bf16.mxu0 %v7082_v13  ;;  %3709 = vmatprep.subr.bf16.mxu1 %v7085_v51 }
 0x379   :  { %3669 = vmatpush1.bf16.msra.mxu0 %v7088_v37  ;;  %3710 = vmatpush1.bf16.msra.mxu1 %v7091_v42 }
 0x37a   :  { %3670 = vmatprep.subr.bf16.mxu0 %v7094_v25  ;;  %3711 = vmatprep.subr.bf16.mxu1 %v7097_v57 }
 0x37d   :  { %3671 = vmatpush1.bf16.msra.mxu0 %v7100_v62  ;;  %3712 = vmatpush1.bf16.msra.mxu1 %v7103_v27 }
 0x37e   :  { %3672 = vmatprep.subr.bf16.mxu0 %v7106_v60  ;;  %3713 = vmatprep.subr.bf16.mxu1 %v7109_v32 }
 0x381   :  { %3673 = vmatpush1.bf16.msra.mxu0 %v7112_v36  ;;  %3714 = vmatpush1.bf16.msra.mxu1 %v7115_v33 }
 0x382   :  { %3674 = vmatprep.subr.bf16.mxu0 %v7118_v48  ;;  %3715 = vmatprep.subr.bf16.mxu1 %v7121_v34 }
 0x385   :  { %3675 = vmatpush1.bf16.msra.mxu0 %v7124_v46  ;;  %3716 = vmatpush1.bf16.msra.mxu1 %v7127_v58  ;;  %v3410_v58 = vunpack.c.h.bf16 %v8197_v35 }
 0x386   :  { %3676 = vmatprep.subr.bf16.mxu0 %v7130_v56  ;;  %3717 = vmatprep.subr.bf16.mxu1 %v7133_v29  ;;  %v3412_v56 = vunpack.c.h.bf16 %v8198_v44 }
 0x389   :  { %3677 = vmatpush1.bf16.msra.mxu0 %v7136_v30  ;;  %3718 = vmatpush1.bf16.msra.mxu1 %v7139_v54 }
 0x38a   :  { %3751 = vmatprep.subr.bf16.mxu0 %v8195_v18  ;;  %3792 = vmatprep.subr.bf16.mxu1 %v8196_v31 }
 0x41f   :  { %v3447_v9 = vpop.f32.mrb[80].mxu0  ;;  %v3488_v46 = vpop.f32.mrb[80].mxu1 }
 0x420   :  { %v3448_v34 = vadd.f32 %v3447_v9, %v3409_v39  ;;  %v3489_v29 = vadd.f32 %v3488_v46, %v3411_v17  ;;  %v3449_v48 = vpop.f32.mrb[81].mxu0  ;;  %v3490_v30 = vpop.f32.mrb[81].mxu1 }
 0x421   :  { %v3450_v33 = vadd.f32 %v3449_v48, %v3410_v58  ;;  %v3491_v54 = vadd.f32 %v3490_v30, %v3412_v56  ;;  %v3451_v36 = vpop.f32.mrb[82].mxu0  ;;  %v3492_v18 = vpop.f32.mrb[82].mxu1  ;;  %v8201_v56 = vld [vmem:[#allocation48_spill] sm:$0xff] }
 0x422   :  { %v5267_v32 = vmul.f32 -1.442695, %v3448_v34  ;;  %v3452_v31 = vpop.f32.mrb[83].mxu0  ;;  %v3493_v60 = vpop.f32.mrb[83].mxu1  ;;  %v3500_v30 = vunpack.c.l.bf16 %v8201_v56 }
 0x423   :  { %v5268_v27 = vmul.f32 -1.442695, %v3450_v33  ;;  %v5269_v62 = vmul.f32 -1.442695, %v3491_v54  ;;  %v7330_v33 = vpop.permute.xlu0 %3636  ;;  %v3501_v54 = vunpack.c.h.bf16 %v8201_v56 }
 0x424   :  { %5672 = vpow2.f32 %v5267_v32  ;;  %8199 = vst [vmem:[#allocation33_spill] sm:$0xff] %v7330_v33  ;;  %vm3638_vm7 = vcmp.eq.s32.totalorder %v7330_v33, 1  ;;  %v8225_v33 = vld [vmem:[#allocation73_spill] sm:$0xff] }
 0x425   :  { %5674 = vpow2.f32 %v5268_v27  ;;  %v8200_v27 = vld [vmem:[#allocation47_spill] sm:$0xff] }
 0x426   :  { %5676 = vpow2.f32 %v5269_v62  ;;  %v3498_v32 = vunpack.c.l.bf16 %v8200_v27 }
 0x427   :  { %5678 = vtanh.f32 %v3489_v29 }
 0x42e   :  { %v5673_v57 = vpop.eup %5672 }
 0x42f   :  { %v5675_v25 = vpop.eup %5674  ;;  %v3587_v35 = vadd.f32 1.0, %v5673_v57 }
 0x430   :  { %v3593_v9 = vadd.f32 1.0, %v5675_v25  ;;  %v5677_v17 = vpop.eup %5676  ;;  %v3499_v25 = vunpack.c.h.bf16 %v8200_v27 }
 0x431   :  { %5680 = vrcp.f32 %v3587_v35  ;;  %v5679_v48 = vpop.eup %5678  ;;  %v3600_v34 = vadd.f32 1.0, %v5677_v17 }
 0x432   :  { %5682 = vrcp.f32 %v3593_v9 }
 0x433   :  { %5684 = vrcp.f32 %v3600_v34 }
 0x43b   :  { %v5681_v46 = vpop.eup %5680 }
 0x43c   :  { %v5683_v36 = vpop.eup %5682  ;;  %v3623_v58 = vmul.f32 %v5681_v46, %v5679_v48 }
 0x43d   :  { %v3622_v60 = vmul.f32 %v5683_v36, %v7164_v16  ;;  %v5685_v34 = vpop.eup %5684 }
 0x43f   :  { %v3624_v57 = vadd.f32 %v3623_v58, %v3622_v60  ;;  %v3536_v62 = vpop.f32.mrb[84].mxu0  ;;  %v3577_v29 = vpop.f32.mrb[84].mxu1 }
 0x440   :  { %v3537_v44 = vadd.f32 %v3536_v62, %v3498_v32  ;;  %v3578_v18 = vadd.f32 %v3577_v29, %v3500_v30  ;;  %v3538_v31 = vpop.f32.mrb[85].mxu0  ;;  %v3579_v39 = vpop.f32.mrb[85].mxu1 }
 0x441   :  { %5686 = vtanh.f32 %v3624_v57  ;;  %v3539_v35 = vadd.f32 %v3538_v31, %v3499_v25  ;;  %v3580_v9 = vadd.f32 %v3579_v39, %v3501_v54  ;;  %v3540_v17 = vpop.f32.mrb[86].mxu0  ;;  %v3581_v48 = vpop.f32.mrb[86].mxu1  ;;  %v7340_v46 = vsel %vm3638_vm7, %v3624_v57, %v7164_v16 }
 0x442   :  { %v5270_v36 = vmul.f32 -1.442695, %v3537_v44  ;;  %v3541_v58 = vpop.f32.mrb[87].mxu0  ;;  %v3582_v60 = vpop.f32.mrb[87].mxu1 }
 0x443   :  { %v5271_v27 = vmul.f32 -1.442695, %v3539_v35  ;;  %v5272_v56 = vmul.f32 -1.442695, %v3580_v9  ;;  %v7366_v17 = vpop.permute.xlu1 %3643  ;;  %v8203_v58 = vld [vmem:[#allocation82_spill] sm:$0xff]  ;;  %v8204_v60 = vld [vmem:[#allocation83_spill] sm:$0xff] }
 0x444   :  { %5688 = vpow2.f32 %v5270_v36  ;;  %8202 = vst [vmem:[#allocation34_spill] sm:$0xff] %v7366_v17  ;;  %vm3645_vm8 = vcmp.eq.s32.totalorder %v7366_v17, 1  ;;  %v8226_v17 = vld [vmem:[#allocation74_spill] sm:$0xff] }
 0x445   :  { %5690 = vpow2.f32 %v5271_v27  ;;  %v8205_v27 = vld [vmem:[#allocation84_spill] sm:$0xff] }
 0x446   :  { %5692 = vpow2.f32 %v5272_v56  ;;  %v8208_v56 = vld [vmem:[#allocation87_spill] sm:$0xff] }
 0x447   :  { %5694 = vtanh.f32 %v3578_v18 }
 0x44b   :  { %v5687_v32 = vpop.eup %5686 }
 0x44c   :  { %v3629_v30 = vmul.f32 %v5687_v32, %v5685_v34  ;;  %v8206_v34 = vld [vmem:[#allocation85_spill] sm:$0xff]  ;;  %v8207_v32 = vld [vmem:[#allocation86_spill] sm:$0xff] }
 0x44e   :  { %v5689_v62 = vpop.eup %5688  ;;  %v7345_v29 = vsel %vm3638_vm7, %v3629_v30, %v7171_v38  ;;  %v8209_v30 = vld [vmem:[#allocation88_spill] sm:$0xff] }
 0x44f   :  { %v5691_v25 = vpop.eup %5690  ;;  %v3606_v54 = vadd.f32 1.0, %v5689_v62  ;;  %v3655_v16 = vpack.c.bf16 %v7345_v29, %v7345_v29 }
 0x450   :  { %v3612_v57 = vadd.f32 1.0, %v5691_v25  ;;  %v5693_v38 = vpop.eup %5692  ;;  %v8210_v25 = vld [vmem:[#allocation89_spill] sm:$0xff] }
 0x451   :  { %5696 = vrcp.f32 %v3606_v54  ;;  %3695 = vmatmul.mubr.bf16.vlgmr.msra.gmra.mrb[88].mxu0 %v3655_v16  ;;  %3736 = vmatmul.mubr.bf16.vlgmr.msra.gmra.mrb[88].mxu1 %v3655_v16  ;;  %v5695_v44 = vpop.eup %5694  ;;  %v3619_v35 = vadd.f32 1.0, %v5693_v38  ;;  %v8212_v16 = vld [vmem:[#allocation91_spill] sm:$0xff] }
 0x452   :  { %5698 = vrcp.f32 %v3612_v57  ;;  %3752 = vmatpush1.bf16.msra.mxu0 %v7175_v11  ;;  %3793 = vmatpush1.bf16.msra.mxu1 %v7178_v59 }
 0x453   :  { %3753 = vmatprep.subr.bf16.mxu0 %v7181_v53  ;;  %3794 = vmatprep.subr.bf16.mxu1 %v7184_v14  ;;  %5700 = vrcp.f32 %v3619_v35  ;;  %v8217_v35 = vld [vmem:[#allocation65_spill] sm:$0xff] }
 0x454   :  { %3783 = vmatprep.mubr.bf16.mxu0 %v8123_v61  ;;  %3824 = vmatprep.mubr.bf16.mxu1 %v8123_v61 }
 0x456   :  { %3754 = vmatpush1.bf16.msra.mxu0 %v7189_v12  ;;  %3795 = vmatpush1.bf16.msra.mxu1 %v7192_v15 }
 0x457   :  { %3755 = vmatprep.subr.bf16.mxu0 %v7195_v19  ;;  %3796 = vmatprep.subr.bf16.mxu1 %v7198_v63 }
 0x45a   :  { %3756 = vmatpush1.bf16.msra.mxu0 %v7201_v7  ;;  %3797 = vmatpush1.bf16.msra.mxu1 %v7204_v2 }
 0x45b   :  { %v5697_v18 = vpop.eup %5696  ;;  %3757 = vmatprep.subr.bf16.mxu0 %v7207_v52  ;;  %3798 = vmatprep.subr.bf16.mxu1 %v7210_v26 }
 0x45c   :  { %v5699_v31 = vpop.eup %5698  ;;  %v3626_v39 = vmul.f32 %v5697_v18, %v5695_v44  ;;  %v8214_v18 = vld [vmem:[#allocation62_spill] sm:$0xff] }
 0x45d   :  { %v3625_v9 = vmul.f32 %v5699_v31, %v7233_v10  ;;  %v5701_v62 = vpop.eup %5700  ;;  %v8215_v31 = vld [vmem:[#allocation63_spill] sm:$0xff] }
 0x45e   :  { %3758 = vmatpush1.bf16.msra.mxu0 %v7216_v4  ;;  %3799 = vmatpush1.bf16.msra.mxu1 %v7219_v5 }
 0x45f   :  { %v3627_v48 = vadd.f32 %v3626_v39, %v3625_v9  ;;  %3759 = vmatprep.subr.bf16.mxu0 %v7224_v28  ;;  %3800 = vmatprep.subr.bf16.mxu1 %v7227_v41  ;;  %v8216_v39 = vld [vmem:[#allocation64_spill] sm:$0xff]  ;;  %v8218_v9 = vld [vmem:[#allocation66_spill] sm:$0xff] }
 0x461   :  { %5702 = vtanh.f32 %v3627_v48  ;;  %v7374_v36 = vsel %vm3645_vm8, %v3627_v48, %v7233_v10  ;;  %v8211_v10 = vld [vmem:[#allocation90_spill] sm:$0xff]  ;;  %v8219_v48 = vld [vmem:[#allocation67_spill] sm:$0xff] }
 0x462   :  { %3760 = vmatpush1.bf16.msra.mxu0 %v7235_v1  ;;  %3801 = vmatpush1.bf16.msra.mxu1 %v8203_v58 }
 0x463   :  { %3761 = vmatprep.subr.bf16.mxu0 %v8204_v60  ;;  %3802 = vmatprep.subr.bf16.mxu1 %v8205_v27 }
 0x466   :  { %3762 = vmatpush1.bf16.msra.mxu0 %v8206_v34  ;;  %3803 = vmatpush1.bf16.msra.mxu1 %v8207_v32 }
 0x467   :  { %3763 = vmatprep.subr.bf16.mxu0 %v8208_v56  ;;  %3804 = vmatprep.subr.bf16.mxu1 %v8209_v30 }
 0x46a   :  { %3764 = vmatpush1.bf16.msra.mxu0 %v8210_v25  ;;  %3805 = vmatpush1.bf16.msra.mxu1 %v8211_v10 }
 0x46b   :  { %v5703_v54 = vpop.eup %5702  ;;  %3765 = vmatprep.subr.bf16.mxu0 %v8212_v16  ;;  %3806 = vmatprep.subr.bf16.mxu1 %v7268_v47 }
 0x46c   :  { %v3631_v57 = vmul.f32 %v5703_v54, %v5701_v62  ;;  %v8220_v62 = vld [vmem:[#allocation68_spill] sm:$0xff]  ;;  %v8221_v54 = vld [vmem:[#allocation69_spill] sm:$0xff] }
 0x46e   :  { %3766 = vmatpush1.bf16.msra.mxu0 %v7281_v49  ;;  %3807 = vmatpush1.bf16.msra.mxu1 %v7284_v6  ;;  %v7393_v38 = vsel %vm3645_vm8, %v3631_v57, %v7279_v43  ;;  %v8222_v57 = vld [vmem:[#allocation70_spill] sm:$0xff]  ;;  %v8224_v43 = vld [vmem:[#allocation72_spill] sm:$0xff] }
 0x46f   :  { %8213 = vst [vmem:[#allocation47_spill] sm:$0xff] %v7393_v38  ;;  %v3744_v44 = vpack.c.bf16 %v7393_v38, %v7393_v38  ;;  %3911 = vmatprep.subr.bf16.mxu0 %v7041_v20  ;;  %3952 = vmatprep.subr.bf16.mxu1 %v7044_v21 }
 0x471   :  { %3784 = vmatmul.mubr.bf16.vlgmr.msra.gmra.mrb[92].mxu0 %v3744_v44  ;;  %3825 = vmatmul.mubr.bf16.vlgmr.msra.gmra.mrb[92].mxu1 %v3744_v44  ;;  %v8223_v44 = vld [vmem:[#allocation71_spill] sm:$0xff] }
 0x472   :  { %3912 = vmatpush1.bf16.msra.mxu0 %v7050_v0  ;;  %3953 = vmatpush1.bf16.msra.mxu1 %v7053_v22 }
 0x473   :  { %3913 = vmatprep.subr.bf16.mxu0 %v7056_v23  ;;  %3954 = vmatprep.subr.bf16.mxu1 %v7059_v24 }
 0x474   :  { %3943 = vmatprep.mubr.bf16.mxu0 %v8123_v61  ;;  %3984 = vmatprep.mubr.bf16.mxu1 %v8123_v61 }
 0x476   :  { %3914 = vmatpush1.bf16.msra.mxu0 %v7064_v40  ;;  %3955 = vmatpush1.bf16.msra.mxu1 %v7067_v45 }
 0x477   :  { %3915 = vmatprep.subr.bf16.mxu0 %v7070_v50  ;;  %3956 = vmatprep.subr.bf16.mxu1 %v7073_v55 }
 0x47a   :  { %3916 = vmatpush1.bf16.msra.mxu0 %v7076_v3  ;;  %3957 = vmatpush1.bf16.msra.mxu1 %v7079_v8 }
 0x47b   :  { %3917 = vmatprep.subr.bf16.mxu0 %v7082_v13  ;;  %3958 = vmatprep.subr.bf16.mxu1 %v7085_v51 }
 0x47e   :  { %3918 = vmatpush1.bf16.msra.mxu0 %v7088_v37  ;;  %3959 = vmatpush1.bf16.msra.mxu1 %v7091_v42 }
 0x47f   :  { %3919 = vmatprep.subr.bf16.mxu0 %v8214_v18  ;;  %3960 = vmatprep.subr.bf16.mxu1 %v8215_v31  ;;  %v8233_v31 = vld [vmem:[#allocation38_spill] sm:$0xff] }
 0x482   :  { %3920 = vmatpush1.bf16.msra.mxu0 %v8216_v39  ;;  %3961 = vmatpush1.bf16.msra.mxu1 %v8217_v35  ;;  %v8227_v39 = vld [vmem:[#allocation75_spill] sm:$0xff]  ;;  %v8228_v35 = vld [vmem:[#allocation76_spill] sm:$0xff] }
 0x483   :  { %3921 = vmatprep.subr.bf16.mxu0 %v8218_v9  ;;  %3962 = vmatprep.subr.bf16.mxu1 %v8219_v48  ;;  %v8229_v9 = vld [vmem:[#allocation77_spill] sm:$0xff]  ;;  %v8230_v48 = vld [vmem:[#allocation78_spill] sm:$0xff] }
 0x486   :  { %3922 = vmatpush1.bf16.msra.mxu0 %v8220_v62  ;;  %3963 = vmatpush1.bf16.msra.mxu1 %v8221_v54  ;;  %v8231_v62 = vld [vmem:[#allocation79_spill] sm:$0xff]  ;;  %v8232_v54 = vld [vmem:[#allocation37_spill] sm:$0xff] }
 0x487   :  { %3923 = vmatprep.subr.bf16.mxu0 %v8222_v57  ;;  %3964 = vmatprep.subr.bf16.mxu1 %v8223_v44  ;;  %v3658_v57 = vunpack.c.l.bf16 %v8232_v54  ;;  %v3660_v44 = vunpack.c.l.bf16 %v8233_v31 }
 0x48a   :  { %3924 = vmatpush1.bf16.msra.mxu0 %v8224_v43  ;;  %3965 = vmatpush1.bf16.msra.mxu1 %v8225_v33  ;;  %v3659_v33 = vunpack.c.h.bf16 %v8232_v54 }
 0x48b   :  { %3925 = vmatprep.subr.bf16.mxu0 %v8226_v17  ;;  %3966 = vmatprep.subr.bf16.mxu1 %v8227_v39  ;;  %v3661_v17 = vunpack.c.h.bf16 %v8233_v31  ;;  %v8235_v31 = vld [vmem:[#allocation44_spill] sm:$0xff] }
 0x48e   :  { %3926 = vmatpush1.bf16.msra.mxu0 %v8228_v35  ;;  %3967 = vmatpush1.bf16.msra.mxu1 %v8229_v9 }
 0x48f   :  { %4000 = vmatprep.subr.bf16.mxu0 %v8230_v48  ;;  %4041 = vmatprep.subr.bf16.mxu1 %v8231_v62 }
 0x524   :  { %v3696_v18 = vpop.f32.mrb[88].mxu0  ;;  %v3737_v43 = vpop.f32.mrb[88].mxu1 }
 0x525   :  { %v3697_v42 = vadd.f32 %v3696_v18, %v3658_v57  ;;  %v3738_v39 = vadd.f32 %v3737_v43, %v3660_v44  ;;  %v3698_v37 = vpop.f32.mrb[89].mxu0  ;;  %v3739_v35 = vpop.f32.mrb[89].mxu1 }
 0x526   :  { %v3699_v51 = vadd.f32 %v3698_v37, %v3659_v33  ;;  %v3740_v9 = vadd.f32 %v3739_v35, %v3661_v17  ;;  %v3700_v13 = vpop.f32.mrb[90].mxu0  ;;  %v3741_v48 = vpop.f32.mrb[90].mxu1  ;;  %v3749_v35 = vunpack.c.l.bf16 %v8235_v31 }
 0x527   :  { %v5273_v8 = vmul.f32 -1.442695, %v3697_v42  ;;  %v3701_v62 = vpop.f32.mrb[91].mxu0  ;;  %v3742_v3 = vpop.f32.mrb[91].mxu1 }
 0x528   :  { %v5274_v55 = vmul.f32 -1.442695, %v3699_v51  ;;  %v5275_v50 = vmul.f32 -1.442695, %v3740_v9  ;;  %v7438_v51 = vpop.permute.xlu0 %3885  ;;  %v3750_v9 = vunpack.c.h.bf16 %v8235_v31 }
 0x529   :  { %5704 = vpow2.f32 %v5273_v8  ;;  %vm3887_vm9 = vcmp.eq.s32.totalorder %v7438_v51, 1  ;;  %v7660_v51 = vld [vmem:[#allocation12 + $0x8c] ss:$16 sps:$4 sm:$0xff]  }
 0x52a   :  { %5706 = vpow2.f32 %v5274_v55  ;;  %v8234_v55 = vld [vmem:[#allocation43_spill] sm:$0xff] }
 0x52b   :  { %5708 = vpow2.f32 %v5275_v50  ;;  %v3747_v8 = vunpack.c.l.bf16 %v8234_v55 }
 0x52c   :  { %5710 = vtanh.f32 %v3738_v39 }
 0x533   :  { %v5705_v45 = vpop.eup %5704 }
 0x534   :  { %v5707_v40 = vpop.eup %5706  ;;  %v3836_v54 = vadd.f32 1.0, %v5705_v45 }
 0x535   :  { %v3842_v18 = vadd.f32 1.0, %v5707_v40  ;;  %v5709_v43 = vpop.eup %5708  ;;  %v3748_v40 = vunpack.c.h.bf16 %v8234_v55 }
 0x536   :  { %5712 = vrcp.f32 %v3836_v54  ;;  %v5711_v37 = vpop.eup %5710  ;;  %v3849_v42 = vadd.f32 1.0, %v5709_v43 }
 0x537   :  { %5714 = vrcp.f32 %v3842_v18 }
 0x538   :  { %5716 = vrcp.f32 %v3849_v42 }
 0x540   :  { %v5713_v33 = vpop.eup %5712 }
 0x541   :  { %v5715_v13 = vpop.eup %5714  ;;  %v3872_v17 = vmul.f32 %v5713_v33, %v5711_v37 }
 0x542   :  { %v3871_v3 = vmul.f32 %v5715_v13, %v7340_v46  ;;  %v5717_v42 = vpop.eup %5716 }
 0x544   :  { %v3873_v45 = vadd.f32 %v3872_v17, %v3871_v3  ;;  %v3785_v50 = vpop.f32.mrb[92].mxu0  ;;  %v3826_v39 = vpop.f32.mrb[92].mxu1 }
 0x545   :  { %v3786_v48 = vadd.f32 %v3785_v50, %v3747_v8  ;;  %v3827_v62 = vadd.f32 %v3826_v39, %v3749_v35  ;;  %v3787_v57 = vpop.f32.mrb[93].mxu0  ;;  %v3828_v44 = vpop.f32.mrb[93].mxu1 }
 0x546   :  { %5718 = vtanh.f32 %v3873_v45  ;;  %v3788_v54 = vadd.f32 %v3787_v57, %v3748_v40  ;;  %v3829_v18 = vadd.f32 %v3828_v44, %v3750_v9  ;;  %v3789_v43 = vpop.f32.mrb[94].mxu0  ;;  %v3830_v37 = vpop.f32.mrb[94].mxu1  ;;  %v7448_v33 = vsel %vm3887_vm9, %v3873_v45, %v7340_v46 }
 0x547   :  { %v5276_v13 = vmul.f32 -1.442695, %v3786_v48  ;;  %v3790_v17 = vpop.f32.mrb[95].mxu0  ;;  %v3831_v3 = vpop.f32.mrb[95].mxu1 }
 0x548   :  { %v5277_v55 = vmul.f32 -1.442695, %v3788_v54  ;;  %v5278_v31 = vmul.f32 -1.442695, %v3829_v18  ;;  %v7474_v43 = vpop.permute.xlu1 %3892 }
 0x549   :  { %5720 = vpow2.f32 %v5276_v13  ;;  %vm3894_vm10 = vcmp.eq.s32.totalorder %v7474_v43, 1  ;;  %v7663_v43 = vld [vmem:[#allocation12 + $0x80] ss:$16 sps:$4 sm:$0xff]  }
 0x54a   :  { %5722 = vpow2.f32 %v5277_v55 }
 0x54b   :  { %5724 = vpow2.f32 %v5278_v31  ;;  %v8238_v31 = vld [vmem:[#allocation28_spill] sm:$0xff] }
 0x54c   :  { %5726 = vtanh.f32 %v3827_v62 }
 0x550   :  { %v5719_v8 = vpop.eup %5718 }
 0x551   :  { %v3878_v35 = vmul.f32 %v5719_v8, %v5717_v42  ;;  %v8237_v8 = vld [vmem:[#allocation27_spill] sm:$0xff] }
 0x553   :  { %v5721_v50 = vpop.eup %5720  ;;  %v7453_v39 = vsel %vm3887_vm9, %v3878_v35, %v7345_v29  ;;  %v8241_v35 = vld [vmem:[#allocation56_spill] sm:$0xff] }
 0x554   :  { %v5723_v40 = vpop.eup %5722  ;;  %v3855_v9 = vadd.f32 1.0, %v5721_v50  ;;  %v3904_v46 = vpack.c.bf16 %v7453_v39, %v7453_v39  ;;  %v8246_v50 = vld [vmem:[#allocation61_spill] sm:$0xff] }
 0x555   :  { %v3861_v45 = vadd.f32 1.0, %v5723_v40  ;;  %v5725_v29 = vpop.eup %5724  ;;  %v8247_v40 = vld [vmem:[#allocation62_spill] sm:$0xff] }
 0x556   :  { %5728 = vrcp.f32 %v3855_v9  ;;  %3944 = vmatmul.mubr.bf16.vlgmr.msra.gmra.mrb[96].mxu0 %v3904_v46  ;;  %3985 = vmatmul.mubr.bf16.vlgmr.msra.gmra.mrb[96].mxu1 %v3904_v46  ;;  %v5727_v48 = vpop.eup %5726  ;;  %v3868_v54 = vadd.f32 1.0, %v5725_v29  ;;  %v8248_v9 = vld [vmem:[#allocation63_spill] sm:$0xff]  ;;  %v8249_v46 = vld [vmem:[#allocation64_spill] sm:$0xff]  ;;  %v8251_v29 = vld [vmem:[#allocation66_spill] sm:$0xff] }
 0x557   :  { %5730 = vrcp.f32 %v3861_v45  ;;  %4001 = vmatpush1.bf16.msra.mxu0 %v7175_v11  ;;  %4042 = vmatpush1.bf16.msra.mxu1 %v7178_v59  ;;  %v8250_v45 = vld [vmem:[#allocation65_spill] sm:$0xff] }
 0x558   :  { %4002 = vmatprep.subr.bf16.mxu0 %v7181_v53  ;;  %4043 = vmatprep.subr.bf16.mxu1 %v7184_v14  ;;  %5732 = vrcp.f32 %v3868_v54  ;;  %v8256_v54 = vld [vmem:[#allocation71_spill] sm:$0xff] }
 0x559   :  { %4032 = vmatprep.mubr.bf16.mxu0 %v8123_v61  ;;  %4073 = vmatprep.mubr.bf16.mxu1 %v8123_v61 }
 0x55b   :  { %4003 = vmatpush1.bf16.msra.mxu0 %v7189_v12  ;;  %4044 = vmatpush1.bf16.msra.mxu1 %v7192_v15 }
 0x55c   :  { %4004 = vmatprep.subr.bf16.mxu0 %v7195_v19  ;;  %4045 = vmatprep.subr.bf16.mxu1 %v7198_v63 }
 0x55f   :  { %4005 = vmatpush1.bf16.msra.mxu0 %v7201_v7  ;;  %4046 = vmatpush1.bf16.msra.mxu1 %v7204_v2 }
 0x560   :  { %v5729_v62 = vpop.eup %5728  ;;  %4006 = vmatprep.subr.bf16.mxu0 %v7207_v52  ;;  %4047 = vmatprep.subr.bf16.mxu1 %v7210_v26 }
 0x561   :  { %v5731_v57 = vpop.eup %5730  ;;  %v3875_v44 = vmul.f32 %v5729_v62, %v5727_v48  ;;  %v8252_v48 = vld [vmem:[#allocation67_spill] sm:$0xff]  ;;  %v8253_v62 = vld [vmem:[#allocation68_spill] sm:$0xff] }
 0x562   :  { %v3874_v18 = vmul.f32 %v5731_v57, %v7374_v36  ;;  %v5733_v17 = vpop.eup %5732  ;;  %v8254_v57 = vld [vmem:[#allocation69_spill] sm:$0xff] }
 0x563   :  { %4007 = vmatpush1.bf16.msra.mxu0 %v7216_v4  ;;  %4048 = vmatpush1.bf16.msra.mxu1 %v7219_v5 }
 0x564   :  { %v3876_v37 = vadd.f32 %v3875_v44, %v3874_v18  ;;  %4008 = vmatprep.subr.bf16.mxu0 %v7224_v28  ;;  %4049 = vmatprep.subr.bf16.mxu1 %v7227_v41  ;;  %v8255_v44 = vld [vmem:[#allocation70_spill] sm:$0xff]  ;;  %v8257_v18 = vld [vmem:[#allocation72_spill] sm:$0xff] }
 0x566   :  { %5734 = vtanh.f32 %v3876_v37  ;;  %v7482_v13 = vsel %vm3894_vm10, %v3876_v37, %v7374_v36  ;;  %v8258_v37 = vld [vmem:[#allocation73_spill] sm:$0xff] }
 0x567   :  { %4009 = vmatpush1.bf16.msra.mxu0 %v7235_v1  ;;  %4050 = vmatpush1.bf16.msra.mxu1 %v8203_v58 }
 0x568   :  { %4010 = vmatprep.subr.bf16.mxu0 %v8204_v60  ;;  %4051 = vmatprep.subr.bf16.mxu1 %v8205_v27 }
 0x56b   :  { %4011 = vmatpush1.bf16.msra.mxu0 %v8206_v34  ;;  %4052 = vmatpush1.bf16.msra.mxu1 %v8207_v32 }
 0x56c   :  { %4012 = vmatprep.subr.bf16.mxu0 %v8208_v56  ;;  %4053 = vmatprep.subr.bf16.mxu1 %v8209_v30 }
 0x56f   :  { %4013 = vmatpush1.bf16.msra.mxu0 %v8210_v25  ;;  %4054 = vmatpush1.bf16.msra.mxu1 %v8211_v10 }
 0x570   :  { %v5735_v36 = vpop.eup %5734  ;;  %4014 = vmatprep.subr.bf16.mxu0 %v8212_v16  ;;  %4055 = vmatprep.subr.bf16.mxu1 %v7268_v47 }
 0x571   :  { %v3880_v3 = vmul.f32 %v5735_v36, %v5733_v17  ;;  %v8259_v17 = vld [vmem:[#allocation74_spill] sm:$0xff]  ;;  %v8260_v36 = vld [vmem:[#allocation75_spill] sm:$0xff] }
 0x573   :  { %4015 = vmatpush1.bf16.msra.mxu0 %v7281_v49  ;;  %4056 = vmatpush1.bf16.msra.mxu1 %v7284_v6  ;;  %v7501_v55 = vsel %vm3894_vm10, %v3880_v3, %v7393_v38  ;;  %v8261_v3 = vld [vmem:[#allocation76_spill] sm:$0xff] }
 0x574   :  { %8236 = vst [vmem:[#allocation48_spill] sm:$0xff] %v7501_v55  ;;  %v3993_v42 = vpack.c.bf16 %v7501_v55, %v7501_v55  ;;  %4148 = vmatprep.subr.bf16.mxu0 %v7041_v20  ;;  %4189 = vmatprep.subr.bf16.mxu1 %v7044_v21  ;;  %v8239_v20 = vld [vmem:[#allocation54_spill] sm:$0xff]  ;;  %v8240_v21 = vld [vmem:[#allocation55_spill] sm:$0xff] }
 0x575   :  { %v7809_v38 = vld [vmem:[#allocation13 + $0xcc] ss:$16 sps:$4 sm:$0xff]  }
 0x576   :  { %4033 = vmatmul.mubr.bf16.vlgmr.msra.gmra.mrb[100].mxu0 %v3993_v42  ;;  %4074 = vmatmul.mubr.bf16.vlgmr.msra.gmra.mrb[100].mxu1 %v3993_v42  ;;  %v8262_v42 = vld [vmem:[#allocation77_spill] sm:$0xff]  ;;  %8283 = vst [vmem:[#allocation90_spill] sm:$0xff] %v7809_v38 }
 0x577   :  { %4149 = vmatpush1.bf16.msra.mxu0 %v7050_v0  ;;  %4190 = vmatpush1.bf16.msra.mxu1 %v7053_v22  ;;  %v8242_v0 = vld [vmem:[#allocation57_spill] sm:$0xff]  ;;  %v8243_v22 = vld [vmem:[#allocation58_spill] sm:$0xff] }
 0x578   :  { %4150 = vmatprep.subr.bf16.mxu0 %v7056_v23  ;;  %4191 = vmatprep.subr.bf16.mxu1 %v7059_v24  ;;  %v8244_v23 = vld [vmem:[#allocation59_spill] sm:$0xff]  ;;  %v8245_v24 = vld [vmem:[#allocation60_spill] sm:$0xff] }
 0x579   :  { %4180 = vmatprep.mubr.bf16.mxu0 %v8123_v61  ;;  %4221 = vmatprep.mubr.bf16.mxu1 %v8123_v61 }
 0x57b   :  { %4151 = vmatpush1.bf16.msra.mxu0 %v8237_v8  ;;  %4192 = vmatpush1.bf16.msra.mxu1 %v8238_v31  ;;  %v8263_v8 = vld [vmem:[#allocation78_spill] sm:$0xff]  ;;  %v8264_v31 = vld [vmem:[#allocation79_spill] sm:$0xff] }
 0x57c   :  { %4152 = vmatprep.subr.bf16.mxu0 %v8239_v20  ;;  %4193 = vmatprep.subr.bf16.mxu1 %v8240_v21  ;;  %v8265_v20 = vld [vmem:[#allocation41_spill] sm:$0xff] }
 0x57d   :  { %v3907_v21 = vunpack.c.l.bf16 %v8265_v20 }
 0x57f   :  { %4153 = vmatpush1.bf16.msra.mxu0 %v8241_v35  ;;  %4194 = vmatpush1.bf16.msra.mxu1 %v8242_v0  ;;  %v8266_v35 = vld [vmem:[#allocation42_spill] sm:$0xff] }
 0x580   :  { %4154 = vmatprep.subr.bf16.mxu0 %v8243_v22  ;;  %4195 = vmatprep.subr.bf16.mxu1 %v8244_v23  ;;  %v3909_v0 = vunpack.c.l.bf16 %v8266_v35 }
 0x583   :  { %4155 = vmatpush1.bf16.msra.mxu0 %v8245_v24  ;;  %4196 = vmatpush1.bf16.msra.mxu1 %v8246_v50  ;;  %v3908_v24 = vunpack.c.h.bf16 %v8265_v20  ;;  %v3910_v50 = vunpack.c.h.bf16 %v8266_v35 }
 0x584   :  { %4156 = vmatprep.subr.bf16.mxu0 %v8247_v40  ;;  %4197 = vmatprep.subr.bf16.mxu1 %v8248_v9 }
 0x587   :  { %4157 = vmatpush1.bf16.msra.mxu0 %v8249_v46  ;;  %4198 = vmatpush1.bf16.msra.mxu1 %v8250_v45 }
 0x588   :  { %4158 = vmatprep.subr.bf16.mxu0 %v8251_v29  ;;  %4199 = vmatprep.subr.bf16.mxu1 %v8252_v48 }
 0x58b   :  { %4159 = vmatpush1.bf16.msra.mxu0 %v8253_v62  ;;  %4200 = vmatpush1.bf16.msra.mxu1 %v8254_v57 }
 0x58c   :  { %4160 = vmatprep.subr.bf16.mxu0 %v8255_v44  ;;  %4201 = vmatprep.subr.bf16.mxu1 %v8256_v54 }
 0x58f   :  { %4161 = vmatpush1.bf16.msra.mxu0 %v8257_v18  ;;  %4202 = vmatpush1.bf16.msra.mxu1 %v8258_v37 }
 0x590   :  { %4162 = vmatprep.subr.bf16.mxu0 %v8259_v17  ;;  %4203 = vmatprep.subr.bf16.mxu1 %v8260_v36 }
 0x593   :  { %4163 = vmatpush1.bf16.msra.mxu0 %v8261_v3  ;;  %4204 = vmatpush1.bf16.msra.mxu1 %v8262_v42 }
 0x594   :  { %4237 = vmatprep.subr.bf16.mxu0 %v8263_v8  ;;  %4278 = vmatprep.subr.bf16.mxu1 %v8264_v31 }
 0x629   :  { %v3945_v22 = vpop.f32.mrb[96].mxu0  ;;  %v3986_v23 = vpop.f32.mrb[96].mxu1 }
 0x62a   :  { %v3946_v40 = vadd.f32 %v3945_v22, %v3907_v21  ;;  %v3987_v9 = vadd.f32 %v3986_v23, %v3909_v0  ;;  %v3947_v46 = vpop.f32.mrb[97].mxu0  ;;  %v3988_v45 = vpop.f32.mrb[97].mxu1 }
 0x62b   :  { %v3948_v29 = vadd.f32 %v3947_v46, %v3908_v24  ;;  %v3989_v48 = vadd.f32 %v3988_v45, %v3910_v50  ;;  %v3949_v62 = vpop.f32.mrb[98].mxu0  ;;  %v3990_v57 = vpop.f32.mrb[98].mxu1  ;;  %v8267_v24 = vld [vmem:[#allocation39_spill] sm:$0xff] }
 0x62c   :  { %v5279_v44 = vmul.f32 -1.442695, %v3946_v40  ;;  %v3950_v54 = vpop.f32.mrb[99].mxu0  ;;  %v3991_v18 = vpop.f32.mrb[99].mxu1  ;;  %v3996_v50 = vunpack.c.l.bf16 %v8267_v24  ;;  %v8268_v40 = vld [vmem:[#allocation40_spill] sm:$0xff] }
 0x62d   :  { %v5280_v37 = vmul.f32 -1.442695, %v3948_v29  ;;  %v5281_v17 = vmul.f32 -1.442695, %v3989_v48  ;;  %v3998_v46 = vunpack.c.l.bf16 %v8268_v40  ;;  %v3999_v62 = vunpack.c.h.bf16 %v8268_v40 }
 0x62e   :  { %5736 = vpow2.f32 %v5279_v44 }
 0x62f   :  { %5738 = vpow2.f32 %v5280_v37 }
 0x630   :  { %5740 = vpow2.f32 %v5281_v17 }
 0x631   :  { %5742 = vtanh.f32 %v3987_v9  ;;  %v3997_v9 = vunpack.c.h.bf16 %v8267_v24 }
 0x638   :  { %v5737_v36 = vpop.eup %5736 }
 0x639   :  { %v5739_v3 = vpop.eup %5738  ;;  %v4085_v42 = vadd.f32 1.0, %v5737_v36 }
 0x63a   :  { %v4091_v8 = vadd.f32 1.0, %v5739_v3  ;;  %v5741_v31 = vpop.eup %5740 }
 0x63b   :  { %5744 = vrcp.f32 %v4085_v42  ;;  %v5743_v20 = vpop.eup %5742  ;;  %v4098_v22 = vadd.f32 1.0, %v5741_v31 }
 0x63c   :  { %5746 = vrcp.f32 %v4091_v8 }
 0x63d   :  { %5748 = vrcp.f32 %v4098_v22 }
 0x645   :  { %v5745_v21 = vpop.eup %5744 }
 0x646   :  { %v5747_v35 = vpop.eup %5746  ;;  %v4121_v0 = vmul.f32 %v5745_v21, %v5743_v20 }
 0x647   :  { %v4120_v23 = vmul.f32 %v5747_v35, %v7448_v33  ;;  %v5749_v35 = vpop.eup %5748 }
 0x649   :  { %v4122_v45 = vadd.f32 %v4121_v0, %v4120_v23  ;;  %v4034_v29 = vpop.f32.mrb[100].mxu0  ;;  %v4075_v48 = vpop.f32.mrb[100].mxu1 }
 0x64a   :  { %v4035_v57 = vadd.f32 %v4034_v29, %v3996_v50  ;;  %v4076_v44 = vadd.f32 %v4075_v48, %v3998_v46  ;;  %v4036_v54 = vpop.f32.mrb[101].mxu0  ;;  %v4077_v18 = vpop.f32.mrb[101].mxu1  ;;  %v7669_v29 = vld [vmem:[#allocation12 + $0xa4] ss:$16 sps:$4 sm:$0xff]   ;;  %v7672_v48 = vld [vmem:[#allocation12 + $0xac] ss:$16 sps:$4 sm:$0xff]  }
 0x64b   :  { %5750 = vtanh.f32 %v4122_v45  ;;  %v4037_v37 = vadd.f32 %v4036_v54, %v3997_v9  ;;  %v4078_v17 = vadd.f32 %v4077_v18, %v3999_v62  ;;  %v4038_v36 = vpop.f32.mrb[102].mxu0  ;;  %v4079_v3 = vpop.f32.mrb[102].mxu1  ;;  %v7553_v42 = vsel %vm3894_vm10, %v4122_v45, %v7448_v33  ;;  %v7675_v9 = vld [vmem:[#allocation12 + $0xa0] ss:$16 sps:$4 sm:$0xff]   ;;  %v7678_v62 = vld [vmem:[#allocation12 + $0xa8] ss:$16 sps:$4 sm:$0xff]  }
 0x64c   :  { %v5282_v8 = vmul.f32 -1.442695, %v4035_v57  ;;  %v4039_v31 = vpop.f32.mrb[103].mxu0  ;;  %v4080_v20 = vpop.f32.mrb[103].mxu1  ;;  %v7681_v57 = vld [vmem:[#allocation12 + $0xc4] ss:$16 sps:$4 sm:$0xff]  }
 0x64d   :  { %v5283_v21 = vmul.f32 -1.442695, %v4037_v37  ;;  %v5284_v22 = vmul.f32 -1.442695, %v4078_v17  ;;  %v7687_v54 = vld [vmem:[#allocation12 + $0xc0] ss:$16 sps:$4 sm:$0xff]  }
 0x64e   :  { %5752 = vpow2.f32 %v5282_v8  ;;  %v7690_v18 = vld [vmem:[#allocation12 + $0xc8] ss:$16 sps:$4 sm:$0xff]   ;;  %v7693_v37 = vld [vmem:[#allocation12 + $0xe4] ss:$16 sps:$4 sm:$0xff]   ;;  %v7696_v17 = vld [vmem:[#allocation12 + $0xec] ss:$16 sps:$4 sm:$0xff]  }
 0x64f   :  { %5754 = vpow2.f32 %v5283_v21  ;;  %v7699_v36 = vld [vmem:[#allocation12 + $0xe0] ss:$16 sps:$4 sm:$0xff]   ;;  %v7702_v3 = vld [vmem:[#allocation12 + $0xe8] ss:$16 sps:$4 sm:$0xff]   ;;  %v7705_v8 = vld [vmem:[#allocation13 + $0x4] ss:$16 sps:$4 sm:$0xff]  }
 0x650   :  { %5756 = vpow2.f32 %v5284_v22  ;;  %v7708_v31 = vld [vmem:[#allocation13 + $0xc] ss:$16 sps:$4 sm:$0xff]   ;;  %v8269_v20 = vld [vmem:[#allocation45_spill] sm:$0xff] }
 0x651   :  { %5758 = vtanh.f32 %v4076_v44  ;;  %v7684_v44 = vld [vmem:[#allocation12 + $0xcc] ss:$16 sps:$4 sm:$0xff]   ;;  %v4144_v21 = vunpack.c.l.bf16 %v8269_v20 }
 0x655   :  { %v5751_v0 = vpop.eup %5750 }
 0x656   :  { %v4127_v23 = vmul.f32 %v5751_v0, %v5749_v35  ;;  %v8270_v35 = vld [vmem:[#allocation46_spill] sm:$0xff] }
 0x657   :  { %v4146_v0 = vunpack.c.l.bf16 %v8270_v35 }
 0x658   :  { %v5753_v24 = vpop.eup %5752  ;;  %v7558_v50 = vsel %vm3894_vm10, %v4127_v23, %v7453_v39 }
 0x659   :  { %v5755_v40 = vpop.eup %5754  ;;  %v4104_v46 = vadd.f32 1.0, %v5753_v24  ;;  %v4141_v33 = vpack.c.bf16 %v7558_v50, %v7558_v50  ;;  %v4145_v24 = vunpack.c.h.bf16 %v8269_v20 }
 0x65a   :  { %v4110_v45 = vadd.f32 1.0, %v5755_v40  ;;  %v5757_v39 = vpop.eup %5756  ;;  %v4147_v40 = vunpack.c.h.bf16 %v8270_v35 }
 0x65b   :  { %5760 = vrcp.f32 %v4104_v46  ;;  %4181 = vmatmul.mubr.bf16.vlgmr.msra.gmra.mrb[104].mxu0 %v4141_v33  ;;  %4222 = vmatmul.mubr.bf16.vlgmr.msra.gmra.mrb[104].mxu1 %v4141_v33 }
 0x65c   :  { %5762 = vrcp.f32 %v4110_v45  ;;  %4238 = vmatpush1.bf16.msra.mxu0 %v7175_v11  ;;  %4279 = vmatpush1.bf16.msra.mxu1 %v7178_v59  ;;  %v5759_v11 = vpop.eup %5758 }
 0x65d   :  { %4239 = vmatprep.subr.bf16.mxu0 %v7181_v53  ;;  %4280 = vmatprep.subr.bf16.mxu1 %v7184_v14 }
 0x65e   :  { %4269 = vmatprep.mubr.bf16.mxu0 %v8123_v61  ;;  %4310 = vmatprep.mubr.bf16.mxu1 %v8123_v61 }
 0x660   :  { %4240 = vmatpush1.bf16.msra.mxu0 %v7189_v12  ;;  %4281 = vmatpush1.bf16.msra.mxu1 %v7192_v15  ;;  %v4117_v12 = vadd.f32 1.0, %v5757_v39 }
 0x661   :  { %4241 = vmatprep.subr.bf16.mxu0 %v7195_v19  ;;  %4282 = vmatprep.subr.bf16.mxu1 %v7198_v63 }
 0x662   :  { %5764 = vrcp.f32 %v4117_v12 }
 0x664   :  { %4242 = vmatpush1.bf16.msra.mxu0 %v7201_v7  ;;  %4283 = vmatpush1.bf16.msra.mxu1 %v7204_v2 }
 0x665   :  { %v5761_v59 = vpop.eup %5760  ;;  %4243 = vmatprep.subr.bf16.mxu0 %v7207_v52  ;;  %4284 = vmatprep.subr.bf16.mxu1 %v7210_v26  ;;  %v7607_v26 = vld [vmem:[#allocation12 + $0x4] ss:$16 sps:$4 sm:$0xff]  }
 0x666   :  { %v5763_v53 = vpop.eup %5762  ;;  %v4124_v14 = vmul.f32 %v5761_v59, %v5759_v11 }
 0x667   :  { %v4123_v15 = vmul.f32 %v5763_v53, %v7482_v13 }
 0x668   :  { %4244 = vmatpush1.bf16.msra.mxu0 %v7216_v4  ;;  %4285 = vmatpush1.bf16.msra.mxu1 %v7219_v5  ;;  %v7610_v4 = vld [vmem:[#allocation12 + $0xc] ss:$16 sps:$4 sm:$0xff]   ;;  %v7613_v5 = vld [vmem:[#allocation12] ss:$16 sps:$4 sm:$0xff]  }
 0x669   :  { %v4125_v19 = vadd.f32 %v4124_v14, %v4123_v15  ;;  %4245 = vmatprep.subr.bf16.mxu0 %v7224_v28  ;;  %4286 = vmatprep.subr.bf16.mxu1 %v7227_v41 }
 0x66b   :  { %5766 = vtanh.f32 %v4125_v19  ;;  %v7584_v63 = vsel %vm3887_vm9, %v4125_v19, %v7482_v13  ;;  %v7666_v13 = vld [vmem:[#allocation12 + $0x88] ss:$16 sps:$4 sm:$0xff]  }
 0x66c   :  { %4246 = vmatpush1.bf16.msra.mxu0 %v7235_v1  ;;  %4287 = vmatpush1.bf16.msra.mxu1 %v8203_v58  ;;  %v5765_v28 = vpop.eup %5764  ;;  %v7616_v1 = vld [vmem:[#allocation12 + $0x8] ss:$16 sps:$4 sm:$0xff]  }
 0x66d   :  { %4247 = vmatprep.subr.bf16.mxu0 %v8204_v60  ;;  %4288 = vmatprep.subr.bf16.mxu1 %v8205_v27  ;;  %v7630_v58 = vld [vmem:[#allocation12 + $0x28] ss:$16 sps:$4 sm:$0xff]   ;;  %v7633_v60 = vld [vmem:[#allocation12 + $0x44] ss:$16 sps:$4 sm:$0xff]   ;;  %v7636_v27 = vld [vmem:[#allocation12 + $0x4c] ss:$16 sps:$4 sm:$0xff]  }
 0x670   :  { %4248 = vmatpush1.bf16.msra.mxu0 %v8206_v34  ;;  %4289 = vmatpush1.bf16.msra.mxu1 %v8207_v32  ;;  %v7639_v34 = vld [vmem:[#allocation12 + $0x40] ss:$16 sps:$4 sm:$0xff]   ;;  %v7642_v32 = vld [vmem:[#allocation12 + $0x48] ss:$16 sps:$4 sm:$0xff]  }
 0x671   :  { %4249 = vmatprep.subr.bf16.mxu0 %v8208_v56  ;;  %4290 = vmatprep.subr.bf16.mxu1 %v8209_v30  ;;  %v7645_v56 = vld [vmem:[#allocation12 + $0x64] ss:$16 sps:$4 sm:$0xff]   ;;  %v7648_v30 = vld [vmem:[#allocation12 + $0x6c] ss:$16 sps:$4 sm:$0xff]  }
 0x674   :  { %4250 = vmatpush1.bf16.msra.mxu0 %v8210_v25  ;;  %4291 = vmatpush1.bf16.msra.mxu1 %v8211_v10  ;;  %v7651_v25 = vld [vmem:[#allocation12 + $0x60] ss:$16 sps:$4 sm:$0xff]   ;;  %v7654_v10 = vld [vmem:[#allocation12 + $0x68] ss:$16 sps:$4 sm:$0xff]  }
 0x675   :  { %v5767_v41 = vpop.eup %5766  ;;  %4251 = vmatprep.subr.bf16.mxu0 %v8212_v16  ;;  %4292 = vmatprep.subr.bf16.mxu1 %v7268_v47  ;;  %v7627_v47 = vld [vmem:[#allocation12 + $0x20] ss:$16 sps:$4 sm:$0xff]   ;;  %v7657_v16 = vld [vmem:[#allocation12 + $0x84] ss:$16 sps:$4 sm:$0xff]  }
 0x676   :  { %v4129_v7 = vmul.f32 %v5767_v41, %v5765_v28 }
 0x678   :  { %4252 = vmatpush1.bf16.msra.mxu0 %v7281_v49  ;;  %4293 = vmatpush1.bf16.msra.mxu1 %v7284_v6  ;;  %v7603_v2 = vsel %vm3887_vm9, %v4129_v7, %v7501_v55  ;;  %v7619_v6 = vld [vmem:[#allocation12 + $0x24] ss:$16 sps:$4 sm:$0xff]   ;;  %v7622_v49 = vld [vmem:[#allocation12 + $0x2c] ss:$16 sps:$4 sm:$0xff]  }
 0x679   :  { %v4230_v52 = vpack.c.bf16 %v7603_v2, %v7603_v2  ;;  %4385 = vmatprep.subr.bf16.mxu0 %v7607_v26  ;;  %4426 = vmatprep.subr.bf16.mxu1 %v7610_v4  ;;  %v7780_v55 = vld [vmem:[#allocation13 + $0x8c] ss:$16 sps:$4 sm:$0xff]  }
 0x67a   :  { %8274 = vst [vmem:[#allocation82_spill] sm:$0xff] %v7780_v55 }
 0x67b   :  { %4270 = vmatmul.mubr.bf16.vlgmr.msra.gmra.mrb[108].mxu0 %v4230_v52  ;;  %4311 = vmatmul.mubr.bf16.vlgmr.msra.gmra.mrb[108].mxu1 %v4230_v52 }
 0x67c   :  { %4386 = vmatpush1.bf16.msra.mxu0 %v7613_v5  ;;  %4427 = vmatpush1.bf16.msra.mxu1 %v7616_v1 }
 0x67d   :  { %4387 = vmatprep.subr.bf16.mxu0 %v7619_v6  ;;  %4428 = vmatprep.subr.bf16.mxu1 %v7622_v49 }
 0x67e   :  { %4417 = vmatprep.mubr.bf16.mxu0 %v8123_v61  ;;  %4458 = vmatprep.mubr.bf16.mxu1 %v8123_v61 }
 0x680   :  { %4388 = vmatpush1.bf16.msra.mxu0 %v7627_v47  ;;  %4429 = vmatpush1.bf16.msra.mxu1 %v7630_v58 }
 0x681   :  { %4389 = vmatprep.subr.bf16.mxu0 %v7633_v60  ;;  %4430 = vmatprep.subr.bf16.mxu1 %v7636_v27 }
 0x684   :  { %4390 = vmatpush1.bf16.msra.mxu0 %v7639_v34  ;;  %4431 = vmatpush1.bf16.msra.mxu1 %v7642_v32 }
 0x685   :  { %4391 = vmatprep.subr.bf16.mxu0 %v7645_v56  ;;  %4432 = vmatprep.subr.bf16.mxu1 %v7648_v30 }
 0x688   :  { %4392 = vmatpush1.bf16.msra.mxu0 %v7651_v25  ;;  %4433 = vmatpush1.bf16.msra.mxu1 %v7654_v10 }
 0x689   :  { %4393 = vmatprep.subr.bf16.mxu0 %v7657_v16  ;;  %4434 = vmatprep.subr.bf16.mxu1 %v7660_v51 }
 0x68c   :  { %4394 = vmatpush1.bf16.msra.mxu0 %v7663_v43  ;;  %4435 = vmatpush1.bf16.msra.mxu1 %v7666_v13 }
 0x68d   :  { %4395 = vmatprep.subr.bf16.mxu0 %v7669_v29  ;;  %4436 = vmatprep.subr.bf16.mxu1 %v7672_v48 }
 0x690   :  { %4396 = vmatpush1.bf16.msra.mxu0 %v7675_v9  ;;  %4437 = vmatpush1.bf16.msra.mxu1 %v7678_v62 }
 0x691   :  { %4397 = vmatprep.subr.bf16.mxu0 %v7681_v57  ;;  %4438 = vmatprep.subr.bf16.mxu1 %v7684_v44 }
 0x694   :  { %4398 = vmatpush1.bf16.msra.mxu0 %v7687_v54  ;;  %4439 = vmatpush1.bf16.msra.mxu1 %v7690_v18 }
 0x695   :  { %4399 = vmatprep.subr.bf16.mxu0 %v7693_v37  ;;  %4440 = vmatprep.subr.bf16.mxu1 %v7696_v17 }
 0x698   :  { %4400 = vmatpush1.bf16.msra.mxu0 %v7699_v36  ;;  %4441 = vmatpush1.bf16.msra.mxu1 %v7702_v3 }
 0x699   :  { %4474 = vmatprep.subr.bf16.mxu0 %v7705_v8  ;;  %4515 = vmatprep.subr.bf16.mxu1 %v7708_v31 }
 0x72e   :  { %v4182_v22 = vpop.f32.mrb[104].mxu0  ;;  %v4223_v23 = vpop.f32.mrb[104].mxu1 }
 0x72f   :  { %v4183_v46 = vadd.f32 %v4182_v22, %v4144_v21  ;;  %v4224_v33 = vadd.f32 %v4223_v23, %v4146_v0  ;;  %v4184_v45 = vpop.f32.mrb[105].mxu0  ;;  %v4225_v39 = vpop.f32.mrb[105].mxu1 }
 0x730   :  { %v4185_v11 = vadd.f32 %v4184_v45, %v4145_v24  ;;  %v4226_v59 = vadd.f32 %v4225_v39, %v4147_v40  ;;  %v4186_v53 = vpop.f32.mrb[106].mxu0  ;;  %v4227_v14 = vpop.f32.mrb[106].mxu1  ;;  %v8271_v45 = vld [vmem:[#allocation35_spill] sm:$0xff] }
 0x731   :  { %v5285_v12 = vmul.f32 -1.442695, %v4183_v46  ;;  %v4187_v15 = vpop.f32.mrb[107].mxu0  ;;  %v4228_v19 = vpop.f32.mrb[107].mxu1  ;;  %v4233_v39 = vunpack.c.l.bf16 %v8271_v45 }
 0x732   :  { %v5286_v28 = vmul.f32 -1.442695, %v4185_v11  ;;  %v5287_v41 = vmul.f32 -1.442695, %v4226_v59  ;;  %v8272_v11 = vld [vmem:[#allocation36_spill] sm:$0xff] }
 0x733   :  { %5768 = vpow2.f32 %v5285_v12  ;;  %v4235_v59 = vunpack.c.l.bf16 %v8272_v11  ;;  %v4236_v15 = vunpack.c.h.bf16 %v8272_v11 }
 0x734   :  { %5770 = vpow2.f32 %v5286_v28 }
 0x735   :  { %5772 = vpow2.f32 %v5287_v41 }
 0x736   :  { %5774 = vtanh.f32 %v4224_v33  ;;  %v4234_v33 = vunpack.c.h.bf16 %v8271_v45 }
 0x73d   :  { %v5769_v7 = vpop.eup %5768 }
 0x73e   :  { %v5771_v52 = vpop.eup %5770  ;;  %v4322_v20 = vadd.f32 1.0, %v5769_v7 }
 0x73f   :  { %v4328_v21 = vadd.f32 1.0, %v5771_v52  ;;  %v5773_v35 = vpop.eup %5772 }
 0x740   :  { %5776 = vrcp.f32 %v4322_v20  ;;  %v5775_v0 = vpop.eup %5774  ;;  %v4335_v40 = vadd.f32 1.0, %v5773_v35 }
 0x741   :  { %5778 = vrcp.f32 %v4328_v21 }
 0x742   :  { %5780 = vrcp.f32 %v4335_v40 }
 0x74a   :  { %v5777_v22 = vpop.eup %5776 }
 0x74b   :  { %v5779_v23 = vpop.eup %5778  ;;  %v4358_v24 = vmul.f32 %v5777_v22, %v5775_v0 }
 0x74c   :  { %v4357_v46 = vmul.f32 %v5779_v23, %v7553_v42  ;;  %v5781_v40 = vpop.eup %5780 }
 0x74e   :  { %v4359_v53 = vadd.f32 %v4358_v24, %v4357_v46  ;;  %v4271_v14 = vpop.f32.mrb[108].mxu0  ;;  %v4312_v12 = vpop.f32.mrb[108].mxu1 }
 0x74f   :  { %v4272_v19 = vadd.f32 %v4271_v14, %v4233_v39  ;;  %v4313_v28 = vadd.f32 %v4312_v12, %v4235_v59  ;;  %v4273_v41 = vpop.f32.mrb[109].mxu0  ;;  %v4314_v7 = vpop.f32.mrb[109].mxu1 }
 0x750   :  { %5782 = vtanh.f32 %v4359_v53  ;;  %v4274_v52 = vadd.f32 %v4273_v41, %v4234_v33  ;;  %v4315_v20 = vadd.f32 %v4314_v7, %v4236_v15  ;;  %v4275_v21 = vpop.f32.mrb[110].mxu0  ;;  %v4316_v35 = vpop.f32.mrb[110].mxu1  ;;  %v7723_v22 = vsel %vm3645_vm8, %v4359_v53, %v7553_v42  ;;  %v7735_v41 = vld [vmem:[#allocation13 + $0x8] ss:$16 sps:$4 sm:$0xff]   ;;  %v7741_v7 = vld [vmem:[#allocation13 + $0x2c] ss:$16 sps:$4 sm:$0xff]  }
 0x751   :  { %v5288_v23 = vmul.f32 -1.442695, %v4272_v19  ;;  %v4276_v24 = vpop.f32.mrb[111].mxu0  ;;  %v4317_v46 = vpop.f32.mrb[111].mxu1  ;;  %v7732_v19 = vld [vmem:[#allocation13] ss:$16 sps:$4 sm:$0xff]  }
 0x752   :  { %v5289_v45 = vmul.f32 -1.442695, %v4274_v52  ;;  %v5290_v11 = vmul.f32 -1.442695, %v4315_v20  ;;  %v7749_v52 = vld [vmem:[#allocation13 + $0x28] ss:$16 sps:$4 sm:$0xff]  }
 0x753   :  { %5784 = vpow2.f32 %v5288_v23  ;;  %v7752_v20 = vld [vmem:[#allocation13 + $0x44] ss:$16 sps:$4 sm:$0xff]   ;;  %v7755_v21 = vld [vmem:[#allocation13 + $0x4c] ss:$16 sps:$4 sm:$0xff]   ;;  %v7758_v23 = vld [vmem:[#allocation13 + $0x40] ss:$16 sps:$4 sm:$0xff]  }
 0x754   :  { %5786 = vpow2.f32 %v5289_v45  ;;  %v7761_v24 = vld [vmem:[#allocation13 + $0x48] ss:$16 sps:$4 sm:$0xff]   ;;  %v7764_v45 = vld [vmem:[#allocation13 + $0x64] ss:$16 sps:$4 sm:$0xff]  }
 0x755   :  { %5788 = vpow2.f32 %v5290_v11 }
 0x756   :  { %5790 = vtanh.f32 %v4313_v28  ;;  %v7746_v28 = vld [vmem:[#allocation13 + $0x20] ss:$16 sps:$4 sm:$0xff]  }
 0x75a   :  { %v5783_v39 = vpop.eup %5782 }
 0x75b   :  { %v4364_v59 = vmul.f32 %v5783_v39, %v5781_v40  ;;  %v7767_v40 = vld [vmem:[#allocation13 + $0x6c] ss:$16 sps:$4 sm:$0xff]  }
 0x75d   :  { %v5785_v14 = vpop.eup %5784  ;;  %v7728_v12 = vsel %vm3645_vm8, %v4364_v59, %v7558_v50  ;;  %v7738_v50 = vld [vmem:[#allocation13 + $0x24] ss:$16 sps:$4 sm:$0xff]  }
 0x75e   :  { %v5787_v33 = vpop.eup %5786  ;;  %v4341_v15 = vadd.f32 1.0, %v5785_v14  ;;  %v4378_v42 = vpack.c.bf16 %v7728_v12, %v7728_v12 }
 0x75f   :  { %v4347_v53 = vadd.f32 1.0, %v5787_v33  ;;  %v5789_v35 = vpop.eup %5788  ;;  %v7771_v33 = vld [vmem:[#allocation13 + $0x60] ss:$16 sps:$4 sm:$0xff]  }
 0x760   :  { %5792 = vrcp.f32 %v4341_v15  ;;  %4418 = vmatmul.mubr.bf16.vlgmr.msra.gmra.mrb[112].mxu0 %v4378_v42  ;;  %4459 = vmatmul.mubr.bf16.vlgmr.msra.gmra.mrb[112].mxu1 %v4378_v42  ;;  %v5791_v0 = vpop.eup %5790  ;;  %v4354_v59 = vadd.f32 1.0, %v5789_v35  ;;  %v7774_v15 = vld [vmem:[#allocation13 + $0x68] ss:$16 sps:$4 sm:$0xff]  }
 0x761   :  { %5794 = vrcp.f32 %v4347_v53  ;;  %4475 = vmatpush1.bf16.msra.mxu0 %v7732_v19  ;;  %4516 = vmatpush1.bf16.msra.mxu1 %v7735_v41  ;;  %v7777_v53 = vld [vmem:[#allocation13 + $0x84] ss:$16 sps:$4 sm:$0xff]   ;;  %v8289_v35 = vld [vmem:[#allocation32_spill] sm:$0xff] }
 0x762   :  { %4476 = vmatprep.subr.bf16.mxu0 %v7738_v50  ;;  %4517 = vmatprep.subr.bf16.mxu1 %v7741_v7  ;;  %5796 = vrcp.f32 %v4354_v59  ;;  %v7800_v59 = vld [vmem:[#allocation13 + $0xa0] ss:$16 sps:$4 sm:$0xff]  }
 0x763   :  { %4506 = vmatprep.mubr.bf16.mxu0 %v8123_v61  ;;  %4547 = vmatprep.mubr.bf16.mxu1 %v8123_v61  ;;  %8280 = vst [vmem:[#allocation87_spill] sm:$0xff] %v7800_v59 }
 0x765   :  { %4477 = vmatpush1.bf16.msra.mxu0 %v7746_v28  ;;  %4518 = vmatpush1.bf16.msra.mxu1 %v7749_v52 }
 0x766   :  { %4478 = vmatprep.subr.bf16.mxu0 %v7752_v20  ;;  %4519 = vmatprep.subr.bf16.mxu1 %v7755_v21 }
 0x769   :  { %4479 = vmatpush1.bf16.msra.mxu0 %v7758_v23  ;;  %4520 = vmatpush1.bf16.msra.mxu1 %v7761_v24 }
 0x76a   :  { %v5793_v46 = vpop.eup %5792  ;;  %4480 = vmatprep.subr.bf16.mxu0 %v7764_v45  ;;  %4521 = vmatprep.subr.bf16.mxu1 %v7767_v40 }
 0x76b   :  { %v5795_v39 = vpop.eup %5794  ;;  %v4361_v11 = vmul.f32 %v5793_v46, %v5791_v0  ;;  %v7788_v46 = vld [vmem:[#allocation13 + $0x80] ss:$16 sps:$4 sm:$0xff]  }
 0x76c   :  { %v4360_v14 = vmul.f32 %v5795_v39, %v7584_v63  ;;  %8276 = vst [vmem:[#allocation83_spill] sm:$0xff] %v7788_v46  ;;  %v7791_v39 = vld [vmem:[#allocation13 + $0x88] ss:$16 sps:$4 sm:$0xff]  }
 0x76d   :  { %4481 = vmatpush1.bf16.msra.mxu0 %v7771_v33  ;;  %4522 = vmatpush1.bf16.msra.mxu1 %v7774_v15  ;;  %8277 = vst [vmem:[#allocation84_spill] sm:$0xff] %v7791_v39 }
 0x76e   :  { %v4362_v42 = vadd.f32 %v4361_v11, %v4360_v14  ;;  %4482 = vmatprep.subr.bf16.mxu0 %v7777_v53  ;;  %4523 = vmatprep.subr.bf16.mxu1 %v7780_v55  ;;  %v7794_v11 = vld [vmem:[#allocation13 + $0xa4] ss:$16 sps:$4 sm:$0xff]   ;;  %v7797_v14 = vld [vmem:[#allocation13 + $0xac] ss:$16 sps:$4 sm:$0xff]   ;;  %v7827_v55 = vld [vmem:[#allocation13 + $0xe8] ss:$16 sps:$4 sm:$0xff]  }
 0x76f   :  { %8278 = vst [vmem:[#allocation85_spill] sm:$0xff] %v7794_v11  ;;  %8279 = vst [vmem:[#allocation86_spill] sm:$0xff] %v7797_v14 }
 0x770   :  { %5798 = vtanh.f32 %v4362_v42  ;;  %v7786_v0 = vsel %vm3638_vm7, %v4362_v42, %v7584_v63  ;;  %v7803_v63 = vld [vmem:[#allocation13 + $0xa8] ss:$16 sps:$4 sm:$0xff]   ;;  %v7806_v42 = vld [vmem:[#allocation13 + $0xc4] ss:$16 sps:$4 sm:$0xff]  }
 0x771   :  { %4483 = vmatpush1.bf16.msra.mxu0 %v7788_v46  ;;  %4524 = vmatpush1.bf16.msra.mxu1 %v7791_v39  ;;  %8281 = vst [vmem:[#allocation88_spill] sm:$0xff] %v7803_v63  ;;  %8282 = vst [vmem:[#allocation89_spill] sm:$0xff] %v7806_v42  ;;  %v7812_v39 = vld [vmem:[#allocation13 + $0xc0] ss:$16 sps:$4 sm:$0xff]   ;;  %v7818_v46 = vld [vmem:[#allocation13 + $0xe4] ss:$16 sps:$4 sm:$0xff]  }
 0x772   :  { %4484 = vmatprep.subr.bf16.mxu0 %v7794_v11  ;;  %4525 = vmatprep.subr.bf16.mxu1 %v7797_v14  ;;  %v5797_v11 = vpop.eup %5796  ;;  %v7815_v14 = vld [vmem:[#allocation13 + $0xc8] ss:$16 sps:$4 sm:$0xff]   ;;  %8285 = vst [vmem:[#allocation37_spill] sm:$0xff] %v7818_v46 }
 0x773   :  { %8284 = vst [vmem:[#allocation91_spill] sm:$0xff] %v7815_v14 }
 0x775   :  { %4485 = vmatpush1.bf16.msra.mxu0 %v7800_v59  ;;  %4526 = vmatpush1.bf16.msra.mxu1 %v7803_v63  ;;  %v7821_v63 = vld [vmem:[#allocation13 + $0xec] ss:$16 sps:$4 sm:$0xff]  }
 0x776   :  { %4486 = vmatprep.subr.bf16.mxu0 %v7806_v42  ;;  %4527 = vmatprep.subr.bf16.mxu1 %v7809_v38  ;;  %v7824_v38 = vld [vmem:[#allocation13 + $0xe0] ss:$16 sps:$4 sm:$0xff]  }
 0x779   :  { %4487 = vmatpush1.bf16.msra.mxu0 %v7812_v39  ;;  %4528 = vmatpush1.bf16.msra.mxu1 %v7815_v14 }
 0x77a   :  { %v5799_v59 = vpop.eup %5798  ;;  %4488 = vmatprep.subr.bf16.mxu0 %v7818_v46  ;;  %4529 = vmatprep.subr.bf16.mxu1 %v7821_v63 }
 0x77b   :  { %v4366_v42 = vmul.f32 %v5799_v59, %v5797_v11 }
 0x77d   :  { %4489 = vmatpush1.bf16.msra.mxu0 %v7824_v38  ;;  %4530 = vmatpush1.bf16.msra.mxu1 %v7827_v55  ;;  %v7833_v14 = vsel %vm3638_vm7, %v4366_v42, %v7603_v2 }
 0x77e   :  { %v4467_v46 = vpack.c.bf16 %v7833_v14, %v7833_v14  ;;  %4622 = vmatprep.subr.bf16.mxu0 %v7607_v26  ;;  %4663 = vmatprep.subr.bf16.mxu1 %v7610_v4  ;;  %v8286_v26 = vld [vmem:[#allocation49_spill] sm:$0xff] }
 0x77f   :  { %v4381_v4 = vunpack.c.l.bf16 %v8286_v26 }
 0x780   :  { %4507 = vmatmul.mubr.bf16.vlgmr.msra.gmra.mrb[116].mxu0 %v4467_v46  ;;  %4548 = vmatmul.mubr.bf16.vlgmr.msra.gmra.mrb[116].mxu1 %v4467_v46  ;;  %v4472_v46 = vunpack.c.l.bf16 %v8289_v35 }
 0x781   :  { %4623 = vmatpush1.bf16.msra.mxu0 %v7613_v5  ;;  %4664 = vmatpush1.bf16.msra.mxu1 %v7616_v1  ;;  %v8287_v5 = vld [vmem:[#allocation50_spill] sm:$0xff] }
 0x782   :  { %4624 = vmatprep.subr.bf16.mxu0 %v7619_v6  ;;  %4665 = vmatprep.subr.bf16.mxu1 %v7622_v49  ;;  %v4383_v1 = vunpack.c.l.bf16 %v8287_v5 }
 0x783   :  { %4654 = vmatprep.mubr.bf16.mxu0 %v8123_v61  ;;  %4695 = vmatprep.mubr.bf16.mxu1 %v8123_v61 }
 0x785   :  { %4625 = vmatpush1.bf16.msra.mxu0 %v7627_v47  ;;  %4666 = vmatpush1.bf16.msra.mxu1 %v7630_v58  ;;  %v4382_v47 = vunpack.c.h.bf16 %v8286_v26  ;;  %v4384_v58 = vunpack.c.h.bf16 %v8287_v5 }
 0x786   :  { %4626 = vmatprep.subr.bf16.mxu0 %v7633_v60  ;;  %4667 = vmatprep.subr.bf16.mxu1 %v7636_v27 }
 0x789   :  { %4627 = vmatpush1.bf16.msra.mxu0 %v7639_v34  ;;  %4668 = vmatpush1.bf16.msra.mxu1 %v7642_v32 }
 0x78a   :  { %4628 = vmatprep.subr.bf16.mxu0 %v7645_v56  ;;  %4669 = vmatprep.subr.bf16.mxu1 %v7648_v30 }
 0x78d   :  { %4629 = vmatpush1.bf16.msra.mxu0 %v7651_v25  ;;  %4670 = vmatpush1.bf16.msra.mxu1 %v7654_v10 }
 0x78e   :  { %4630 = vmatprep.subr.bf16.mxu0 %v7657_v16  ;;  %4671 = vmatprep.subr.bf16.mxu1 %v7660_v51 }
 0x791   :  { %4631 = vmatpush1.bf16.msra.mxu0 %v7663_v43  ;;  %4672 = vmatpush1.bf16.msra.mxu1 %v7666_v13 }
 0x792   :  { %4632 = vmatprep.subr.bf16.mxu0 %v7669_v29  ;;  %4673 = vmatprep.subr.bf16.mxu1 %v7672_v48 }
 0x795   :  { %4633 = vmatpush1.bf16.msra.mxu0 %v7675_v9  ;;  %4674 = vmatpush1.bf16.msra.mxu1 %v7678_v62 }
 0x796   :  { %4634 = vmatprep.subr.bf16.mxu0 %v7681_v57  ;;  %4675 = vmatprep.subr.bf16.mxu1 %v7684_v44 }
 0x799   :  { %4635 = vmatpush1.bf16.msra.mxu0 %v7687_v54  ;;  %4676 = vmatpush1.bf16.msra.mxu1 %v7690_v18 }
 0x79a   :  { %4636 = vmatprep.subr.bf16.mxu0 %v7693_v37  ;;  %4677 = vmatprep.subr.bf16.mxu1 %v7696_v17 }
 0x79d   :  { %4637 = vmatpush1.bf16.msra.mxu0 %v7699_v36  ;;  %4678 = vmatpush1.bf16.msra.mxu1 %v7702_v3 }
 0x79e   :  { %4711 = vmatprep.subr.bf16.mxu0 %v7705_v8  ;;  %4752 = vmatprep.subr.bf16.mxu1 %v7708_v31  ;;  %v8288_v8 = vld [vmem:[#allocation31_spill] sm:$0xff] }
 0x79f   :  { %v4470_v31 = vunpack.c.l.bf16 %v8288_v8  ;;  %v4471_v26 = vunpack.c.h.bf16 %v8288_v8  ;;  %v4850_v8 = vld [vmem:[#allocation15] sm:$0xff] }
 0x833   :  { %v4419_v6 = vpop.f32.mrb[112].mxu0  ;;  %v4460_v49 = vpop.f32.mrb[112].mxu1 }
 0x834   :  { %v4420_v60 = vadd.f32 %v4419_v6, %v4381_v4  ;;  %v4461_v27 = vadd.f32 %v4460_v49, %v4383_v1  ;;  %v4421_v34 = vpop.f32.mrb[113].mxu0  ;;  %v4462_v32 = vpop.f32.mrb[113].mxu1  ;;  %v4473_v4 = vunpack.c.h.bf16 %v8289_v35 }
 0x835   :  { %v4422_v56 = vadd.f32 %v4421_v34, %v4382_v47  ;;  %v4463_v30 = vadd.f32 %v4462_v32, %v4384_v58  ;;  %v4423_v25 = vpop.f32.mrb[114].mxu0  ;;  %v4464_v10 = vpop.f32.mrb[114].mxu1  ;;  %v4863_v34 = vld [vmem:[#allocation15 + $0x68] sm:$0xff] }
 0x836   :  { %v5291_v16 = vmul.f32 -1.442695, %v4420_v60  ;;  %v4424_v51 = vpop.f32.mrb[115].mxu0  ;;  %v4465_v43 = vpop.f32.mrb[115].mxu1 }
 0x837   :  { %v5292_v13 = vmul.f32 -1.442695, %v4422_v56  ;;  %v5293_v29 = vmul.f32 -1.442695, %v4463_v30 }
 0x838   :  { %5800 = vpow2.f32 %v5291_v16 }
 0x839   :  { %5802 = vpow2.f32 %v5292_v13 }
 0x83a   :  { %5804 = vpow2.f32 %v5293_v29 }
 0x83b   :  { %5806 = vtanh.f32 %v4461_v27 }
 0x842   :  { %v5801_v48 = vpop.eup %5800 }
 0x843   :  { %v5803_v9 = vpop.eup %5802  ;;  %v4559_v62 = vadd.f32 1.0, %v5801_v48 }
 0x844   :  { %v4565_v57 = vadd.f32 1.0, %v5803_v9  ;;  %v5805_v44 = vpop.eup %5804 }
 0x845   :  { %5808 = vrcp.f32 %v4559_v62  ;;  %v5807_v54 = vpop.eup %5806  ;;  %v4572_v36 = vadd.f32 1.0, %v5805_v44  ;;  %v8299_v44 = vld [vmem:[#allocation89_spill] sm:$0xff] }
 0x846   :  { %5810 = vrcp.f32 %v4565_v57 }
 0x847   :  { %5812 = vrcp.f32 %v4572_v36 }
 0x84f   :  { %v5809_v18 = vpop.eup %5808 }
 0x850   :  { %v5811_v37 = vpop.eup %5810  ;;  %v4595_v17 = vmul.f32 %v5809_v18, %v5807_v54  ;;  %v8300_v54 = vld [vmem:[#allocation90_spill] sm:$0xff] }
 0x851   :  { %v4594_v3 = vmul.f32 %v5811_v37, %v7723_v22  ;;  %v5813_v16 = vpop.eup %5812 }
 0x853   :  { %v4596_v11 = vadd.f32 %v4595_v17, %v4594_v3  ;;  %v4508_v59 = vpop.f32.mrb[116].mxu0  ;;  %v4549_v42 = vpop.f32.mrb[116].mxu1  ;;  %v8302_v17 = vld [vmem:[#allocation37_spill] sm:$0xff] }
 0x854   :  { %v4509_v5 = vadd.f32 %v4508_v59, %v4470_v31  ;;  %v4550_v1 = vadd.f32 %v4549_v42, %v4472_v46  ;;  %v4510_v6 = vpop.f32.mrb[117].mxu0  ;;  %v4551_v49 = vpop.f32.mrb[117].mxu1  ;;  %v4851_v31 = vld [vmem:[#allocation15 + $0x8] sm:$0xff]  ;;  %v6242_v46 = vmov 0.0|0.0  }
 0x855   :  { %5814 = vtanh.f32 %v4596_v11  ;;  %v4511_v47 = vadd.f32 %v4510_v6, %v4471_v26  ;;  %v4552_v58 = vadd.f32 %v4551_v49, %v4473_v4  ;;  %v4512_v60 = vpop.f32.mrb[118].mxu0  ;;  %v4553_v27 = vpop.f32.mrb[118].mxu1  ;;  %v7885_v32 = vsel %vm3396_vm6, %v4596_v11, %v7723_v22  ;;  %v4854_v11 = vld [vmem:[#allocation15 + $0x20] sm:$0xff]  ;;  %v4855_v59 = vld [vmem:[#allocation15 + $0x28] sm:$0xff]  ;;  %v4856_v26 = vld [vmem:[#allocation15 + $0x30] sm:$0xff] }
 0x856   :  { %v5294_v56 = vmul.f32 -1.442695, %v4509_v5  ;;  %v4513_v30 = vpop.f32.mrb[119].mxu0  ;;  %v4554_v25 = vpop.f32.mrb[119].mxu1  ;;  %v5465_v35 = vpack.c.bf16 %v4851_v31, %v4850_v8  ;;  %v5471_v42 = vpack.c.bf16 %v4855_v59, %v4854_v11  ;;  %v4857_v4 = vld [vmem:[#allocation15 + $0x38] sm:$0xff]  ;;  %v4859_v6 = vld [vmem:[#allocation15 + $0x48] sm:$0xff] }
 0x857   :  { %v5295_v10 = vmul.f32 -1.442695, %v4511_v47  ;;  %v5296_v43 = vmul.f32 -1.442695, %v4552_v58  ;;  %v5474_v5 = vpack.c.bf16 %v4857_v4, %v4856_v26  ;;  %v4860_v47 = vld [vmem:[#allocation15 + $0x50] sm:$0xff]  ;;  %v4861_v58 = vld [vmem:[#allocation15 + $0x58] sm:$0xff] }
 0x858   :  { %5816 = vpow2.f32 %v5294_v56  ;;  %v5480_v60 = vpack.c.bf16 %v4861_v58, %v4860_v47  ;;  %v4862_v27 = vld [vmem:[#allocation15 + $0x60] sm:$0xff]  ;;  %v4864_v30 = vld [vmem:[#allocation15 + $0x70] sm:$0xff]  ;;  %v4865_v25 = vld [vmem:[#allocation15 + $0x78] sm:$0xff] }
 0x859   :  { %5818 = vpow2.f32 %v5295_v10  ;;  %v5483_v56 = vpack.c.bf16 %v4863_v34, %v4862_v27  ;;  %v5486_v10 = vpack.c.bf16 %v4865_v25, %v4864_v30 }
 0x85a   :  { %5820 = vpow2.f32 %v5296_v43  ;;  %v4867_v43 = vld [vmem:[#allocation16 + $0x8] sm:$0xff] }
 0x85b   :  { %5822 = vtanh.f32 %v4550_v1  ;;  %v4858_v1 = vld [vmem:[#allocation15 + $0x40] sm:$0xff] }
 0x85c   :  { %v5477_v49 = vpack.c.bf16 %v4859_v6, %v4858_v1 }
 0x85f   :  { %v5815_v51 = vpop.eup %5814 }
 0x860   :  { %v4601_v13 = vmul.f32 %v5815_v51, %v5813_v16  ;;  %v6244_v16 = vmov 0.0   ;;  %v4866_v51 = vld [vmem:[#allocation16] sm:$0xff] }
 0x862   :  { %v5817_v29 = vpop.eup %5816  ;;  %v7890_v48 = vsel %vm3396_vm6, %v4601_v13, %v7728_v12  ;;  %v5441_v13 = vpack.c.bf16 %v4867_v43, %v4866_v51  ;;  %v8306_v51 = vld [vmem:[#allocation30_spill] sm:$0xff] }
 0x863   :  { %v5819_v9 = vpop.eup %5818  ;;  %v4578_v62 = vadd.f32 1.0, %v5817_v29  ;;  %v4615_v22 = vpack.c.bf16 %v7890_v48, %v7890_v48  ;;  %v4868_v29 = vld [vmem:[#allocation16 + $0x10] sm:$0xff]  ;;  %v4709_v43 = vunpack.c.l.bf16 %v8306_v51 }
 0x864   :  { %v4584_v57 = vadd.f32 1.0, %v5819_v9  ;;  %v5821_v12 = vpop.eup %5820  ;;  %v4869_v9 = vld [vmem:[#allocation16 + $0x18] sm:$0xff] }
 0x865   :  { %5824 = vrcp.f32 %v4578_v62  ;;  %4655 = vmatmul.mubr.bf16.vlgmr.msra.gmra.mrb[120].mxu0 %v4615_v22  ;;  %4696 = vmatmul.mubr.bf16.vlgmr.msra.gmra.mrb[120].mxu1 %v4615_v22  ;;  %v5444_v62 = vpack.c.bf16 %v4869_v9, %v4868_v29  ;;  %v4870_v22 = vld [vmem:[#allocation16 + $0x20] sm:$0xff] }
 0x866   :  { %5826 = vrcp.f32 %v4584_v57  ;;  %4712 = vmatpush1.bf16.msra.mxu0 %v7732_v19  ;;  %4753 = vmatpush1.bf16.msra.mxu1 %v7735_v41  ;;  %v5823_v19 = vpop.eup %5822  ;;  %v4871_v57 = vld [vmem:[#allocation16 + $0x28] sm:$0xff] }
 0x867   :  { %4713 = vmatprep.subr.bf16.mxu0 %v7738_v50  ;;  %4754 = vmatprep.subr.bf16.mxu1 %v7741_v7  ;;  %v4591_v7 = vadd.f32 1.0, %v5821_v12  ;;  %v5447_v12 = vpack.c.bf16 %v4871_v57, %v4870_v22  ;;  %v4710_v22 = vunpack.c.h.bf16 %v8306_v51 }
 0x868   :  { %4743 = vmatprep.mubr.bf16.mxu0 %v8123_v61  ;;  %4784 = vmatprep.mubr.bf16.mxu1 %v8123_v61 }
 0x869   :  { %5828 = vrcp.f32 %v4591_v7  ;;  %v4875_v7 = vld [vmem:[#allocation16 + $0x48] sm:$0xff] }
 0x86a   :  { %4714 = vmatpush1.bf16.msra.mxu0 %v7746_v28  ;;  %4755 = vmatpush1.bf16.msra.mxu1 %v7749_v52 }
 0x86b   :  { %4715 = vmatprep.subr.bf16.mxu0 %v7752_v20  ;;  %4756 = vmatprep.subr.bf16.mxu1 %v7755_v21  ;;  %v8291_v20 = vld [vmem:[#allocation82_spill] sm:$0xff] }
 0x86e   :  { %4716 = vmatpush1.bf16.msra.mxu0 %v7758_v23  ;;  %4757 = vmatpush1.bf16.msra.mxu1 %v7761_v24  ;;  %v8293_v24 = vld [vmem:[#allocation83_spill] sm:$0xff] }
 0x86f   :  { %v5825_v41 = vpop.eup %5824  ;;  %4717 = vmatprep.subr.bf16.mxu0 %v7764_v45  ;;  %4758 = vmatprep.subr.bf16.mxu1 %v7767_v40  ;;  %v8294_v45 = vld [vmem:[#allocation84_spill] sm:$0xff]  ;;  %v8295_v40 = vld [vmem:[#allocation85_spill] sm:$0xff] }
 0x870   :  { %v5827_v61 = vpop.eup %5826  ;;  %v4598_v50 = vmul.f32 %v5825_v41, %v5823_v19  ;;  %v4872_v19 = vld [vmem:[#allocation16 + $0x30] sm:$0xff]  ;;  %v4873_v41 = vld [vmem:[#allocation16 + $0x38] sm:$0xff] }
 0x871   :  { %v4597_v28 = vmul.f32 %v5827_v61, %v7786_v0  ;;  %v5450_v61 = vpack.c.bf16 %v4873_v41, %v4872_v19 }
 0x872   :  { %4718 = vmatpush1.bf16.msra.mxu0 %v7771_v33  ;;  %4759 = vmatpush1.bf16.msra.mxu1 %v7774_v15  ;;  %v8296_v33 = vld [vmem:[#allocation86_spill] sm:$0xff]  ;;  %v8297_v15 = vld [vmem:[#allocation87_spill] sm:$0xff] }
 0x873   :  { %v4599_v52 = vadd.f32 %v4598_v50, %v4597_v28  ;;  %4719 = vmatprep.subr.bf16.mxu0 %v7777_v53  ;;  %4760 = vmatprep.subr.bf16.mxu1 %v8291_v20  ;;  %v8298_v53 = vld [vmem:[#allocation88_spill] sm:$0xff]  ;;  %v5829_v18 = vpop.eup %5828 }
 0x874   :  { %v4874_v50 = vld [vmem:[#allocation16 + $0x40] sm:$0xff]  ;;  %v4877_v20 = vld [vmem:[#allocation16 + $0x58] sm:$0xff] }
 0x875   :  { %5830 = vtanh.f32 %v4599_v52  ;;  %v7916_v23 = vsel %vm3389_vm5, %v4599_v52, %v7786_v0  ;;  %v8301_v0 = vld [vmem:[#allocation91_spill] sm:$0xff]  ;;  %v5453_v28 = vpack.c.bf16 %v4875_v7, %v4874_v50 }
 0x876   :  { %4720 = vmatpush1.bf16.msra.mxu0 %v8293_v24  ;;  %4761 = vmatpush1.bf16.msra.mxu1 %v8294_v45  ;;  %v4876_v52 = vld [vmem:[#allocation16 + $0x50] sm:$0xff]  ;;  %v4878_v24 = vld [vmem:[#allocation16 + $0x60] sm:$0xff]  ;;  %v4879_v45 = vld [vmem:[#allocation16 + $0x68] sm:$0xff] }
 0x877   :  { %4721 = vmatprep.subr.bf16.mxu0 %v8295_v40  ;;  %4762 = vmatprep.subr.bf16.mxu1 %v8296_v33  ;;  %v5456_v21 = vpack.c.bf16 %v4877_v20, %v4876_v52  ;;  %v5459_v40 = vpack.c.bf16 %v4879_v45, %v4878_v24  ;;  %v4880_v33 = vld [vmem:[#allocation16 + $0x70] sm:$0xff] }
 0x87a   :  { %4722 = vmatpush1.bf16.msra.mxu0 %v8297_v15  ;;  %4763 = vmatpush1.bf16.msra.mxu1 %v8298_v53  ;;  %v4881_v15 = vld [vmem:[#allocation16 + $0x78] sm:$0xff] }
 0x87b   :  { %4723 = vmatprep.subr.bf16.mxu0 %v8299_v44  ;;  %4764 = vmatprep.subr.bf16.mxu1 %v8300_v54  ;;  %v5462_v53 = vpack.c.bf16 %v4881_v15, %v4880_v33  ;;  %v8303_v44 = vld [vmem:[#allocation51_spill] sm:$0xff] }
 0x87c   :  { %v4618_v54 = vunpack.c.l.bf16 %v8303_v44 }
 0x87e   :  { %4724 = vmatpush1.bf16.msra.mxu0 %v7812_v39  ;;  %4765 = vmatpush1.bf16.msra.mxu1 %v8301_v0 }
 0x87f   :  { %v5831_v37 = vpop.eup %5830  ;;  %4725 = vmatprep.subr.bf16.mxu0 %v8302_v17  ;;  %4766 = vmatprep.subr.bf16.mxu1 %v7821_v63 }
 0x880   :  { %v4603_v36 = vmul.f32 %v5831_v37, %v5829_v18  ;;  %v8304_v18 = vld [vmem:[#allocation52_spill] sm:$0xff] }
 0x881   :  { %v4620_v0 = vunpack.c.l.bf16 %v8304_v18 }
 0x882   :  { %4726 = vmatpush1.bf16.msra.mxu0 %v7824_v38  ;;  %4767 = vmatpush1.bf16.msra.mxu1 %v7827_v55  ;;  %v7935_v3 = vsel %vm3389_vm5, %v4603_v36, %v7833_v14  ;;  %v4852_v38 = vld [vmem:[#allocation15 + $0x10] sm:$0xff]  ;;  %v4853_v55 = vld [vmem:[#allocation15 + $0x18] sm:$0xff]  ;;  %v4619_v36 = vunpack.c.h.bf16 %v8303_v44 }
 0x883   :  { %v4704_v39 = vpack.c.bf16 %v7935_v3, %v7935_v3  ;;  %5464 = vmatprep.subr.bf16.mxu1 %v6242_v46  ;;  %5440 = vmatprep.subr.bf16.mxu0 %v6242_v46  ;;  %v5468_v63 = vpack.c.bf16 %v4853_v55, %v4852_v38 }
 0x885   :  { %4744 = vmatmul.mubr.bf16.vlgmr.msra.gmra.mrb[124].mxu0 %v4704_v39  ;;  %4785 = vmatmul.mubr.bf16.vlgmr.msra.gmra.mrb[124].mxu1 %v4704_v39  ;;  %v4621_v39 = vunpack.c.h.bf16 %v8304_v18 }
 0x886   :  { %5466 = vmatpush3.bf16.msra.mxu1 %v5465_v35  ;;  %5437 = vmatprep.mubr.msk.f32.mxu1 %vm6243_vm11, %v6244_v16 }
 0x887   :  { %5467 = vmatprep.subr.bf16.mxu1 %v6242_v46  ;;  %5402 = vmatprep.mubr.msk.f32.mxu0 %vm6243_vm11, %v6244_v16 }
 0x888   :  { %5442 = vmatpush3.bf16.msra.mxu0 %v5441_v13 }
 0x889   :  { %5443 = vmatprep.subr.bf16.mxu0 %v6242_v46 }
 0x88a   :  { %5469 = vmatpush3.bf16.msra.mxu1 %v5468_v63 }
 0x88b   :  { %5470 = vmatprep.subr.bf16.mxu1 %v6242_v46 }
 0x88c   :  { %5445 = vmatpush3.bf16.msra.mxu0 %v5444_v62 }
 0x88d   :  { %5446 = vmatprep.subr.bf16.mxu0 %v6242_v46 }
 0x88e   :  { %5472 = vmatpush3.bf16.msra.mxu1 %v5471_v42 }
 0x88f   :  { %5473 = vmatprep.subr.bf16.mxu1 %v6242_v46 }
 0x890   :  { %5448 = vmatpush3.bf16.msra.mxu0 %v5447_v12 }
 0x891   :  { %5449 = vmatprep.subr.bf16.mxu0 %v6242_v46 }
 0x892   :  { %5475 = vmatpush3.bf16.msra.mxu1 %v5474_v5 }
 0x893   :  { %5476 = vmatprep.subr.bf16.mxu1 %v6242_v46 }
 0x894   :  { %5451 = vmatpush3.bf16.msra.mxu0 %v5450_v61 }
 0x895   :  { %5452 = vmatprep.subr.bf16.mxu0 %v6242_v46 }
 0x896   :  { %5478 = vmatpush3.bf16.msra.mxu1 %v5477_v49 }
 0x897   :  { %5479 = vmatprep.subr.bf16.mxu1 %v6242_v46 }
 0x898   :  { %5454 = vmatpush3.bf16.msra.mxu0 %v5453_v28 }
 0x899   :  { %5455 = vmatprep.subr.bf16.mxu0 %v6242_v46 }
 0x89a   :  { %5481 = vmatpush3.bf16.msra.mxu1 %v5480_v60 }
 0x89b   :  { %5482 = vmatprep.subr.bf16.mxu1 %v6242_v46 }
 0x89c   :  { %5457 = vmatpush3.bf16.msra.mxu0 %v5456_v21 }
 0x89d   :  { %5458 = vmatprep.subr.bf16.mxu0 %v6242_v46 }
 0x89e   :  { %5484 = vmatpush3.bf16.msra.mxu1 %v5483_v56 }
 0x89f   :  { %5485 = vmatprep.subr.bf16.mxu1 %v6242_v46 }
 0x8a0   :  { %5460 = vmatpush3.bf16.msra.mxu0 %v5459_v40 }
 0x8a1   :  { %5461 = vmatprep.subr.bf16.mxu0 %v6242_v46 }
 0x8a2   :  { %5487 = vmatpush3.bf16.msra.mxu1 %v5486_v10  ;;  %v8305_v10 = vld [vmem:[#allocation29_spill] sm:$0xff] }
 0x8a3   :  { %v4707_v16 = vunpack.c.l.bf16 %v8305_v10  ;;  %v4708_v62 = vunpack.c.h.bf16 %v8305_v10 }
 0x8a4   :  { %5463 = vmatpush3.bf16.msra.mxu0 %v5462_v53 }
 0x938   :  { %v4656_v37 = vpop.f32.mrb[120].mxu0  ;;  %v4697_v17 = vpop.f32.mrb[120].mxu1 }
 0x939   :  { %v4657_v8 = vadd.f32 %v4656_v37, %v4618_v54  ;;  %v4698_v31 = vadd.f32 %v4697_v17, %v4620_v0  ;;  %v4658_v35 = vpop.f32.mrb[121].mxu0  ;;  %v4699_v38 = vpop.f32.mrb[121].mxu1 }
 0x93a   :  { %v4659_v55 = vadd.f32 %v4658_v35, %v4619_v36  ;;  %v4700_v63 = vadd.f32 %v4699_v38, %v4621_v39  ;;  %v4660_v11 = vpop.f32.mrb[122].mxu0  ;;  %v4701_v59 = vpop.f32.mrb[122].mxu1 }
 0x93b   :  { %v5297_v46 = vmul.f32 -1.442695, %v4657_v8  ;;  %v4661_v42 = vpop.f32.mrb[123].mxu0  ;;  %v4702_v26 = vpop.f32.mrb[123].mxu1 }
 0x93c   :  { %v5298_v4 = vmul.f32 -1.442695, %v4659_v55  ;;  %v5299_v5 = vmul.f32 -1.442695, %v4700_v63  ;;  %v3154_v37 = vpop.permute.xlu0 %3153  ;;  %v3403_v36 = vpop.permute.xlu1 %3402  ;;  %v8308_v42 = vld [vmem:[#allocation92_spill] sm:$0xff] }
 0x93d   :  { %5832 = vpow2.f32 %v5297_v46  ;;  %vm3155_vm12 = vcmp.eq.s32.totalorder %v3154_v37, 1  ;;  %vm3404_vm13 = vcmp.eq.s32.totalorder %v3403_v36, 1 }
 0x93e   :  { %5834 = vpow2.f32 %v5298_v4  ;;  %v3156_v26 = vsel %vm3155_vm12, %v8308_v42, 0.0  ;;  %v8309_v4 = vld [vmem:[#allocation93_spill] sm:$0xff] }
 0x93f   :  { %5836 = vpow2.f32 %v5299_v5  ;;  %v3405_v5 = vsel %vm3404_vm13, %v8309_v4, %v3156_v26 }
 0x940   :  { %5838 = vtanh.f32 %v4698_v31  ;;  %v3652_v63 = vpop.permute.xlu0 %3651 }
 0x941   :  { %vm3653_vm14 = vcmp.eq.s32.totalorder %v3652_v63, 1 }
 0x944   :  { %v4138_v59 = vpop.permute.xlu0 %4137 }
 0x945   :  { %vm4139_vm0 = vcmp.eq.s32.totalorder %v4138_v59, 1 }
 0x947   :  { %v5833_v1 = vpop.eup %5832 }
 0x948   :  { %v5835_v6 = vpop.eup %5834  ;;  %v4796_v49 = vadd.f32 1.0, %v5833_v1 }
 0x949   :  { %v4802_v47 = vadd.f32 1.0, %v5835_v6  ;;  %v5837_v58 = vpop.eup %5836  ;;  %v4612_v6 = vpop.permute.xlu0 %4611 }
 0x94a   :  { %5840 = vrcp.f32 %v4796_v49  ;;  %v5839_v60 = vpop.eup %5838  ;;  %v4809_v30 = vadd.f32 1.0, %v5837_v58  ;;  %v8310_v49 = vld [vmem:[#allocation47_spill] sm:$0xff] }
 0x94b   :  { %5842 = vrcp.f32 %v4802_v47  ;;  %v3654_v47 = vsel %vm3653_vm14, %v8310_v49, %v3405_v5 }
 0x94c   :  { %5844 = vrcp.f32 %v4809_v30 }
 0x954   :  { %v5841_v27 = vpop.eup %5840 }
 0x955   :  { %v5843_v34 = vpop.eup %5842  ;;  %v4832_v56 = vmul.f32 %v5841_v27, %v5839_v60  ;;  %v8311_v60 = vld [vmem:[#allocation48_spill] sm:$0xff] }
 0x956   :  { %v4831_v25 = vmul.f32 %v5843_v34, %v7885_v32  ;;  %v5845_v24 = vpop.eup %5844 }
 0x958   :  { %v4833_v13 = vadd.f32 %v4832_v56, %v4831_v25  ;;  %v4745_v29 = vpop.f32.mrb[124].mxu0  ;;  %v4786_v9 = vpop.f32.mrb[124].mxu1 }
 0x959   :  { %v4746_v57 = vadd.f32 %v4745_v29, %v4707_v16  ;;  %v4787_v12 = vadd.f32 %v4786_v9, %v4709_v43  ;;  %v4747_v19 = vpop.f32.mrb[125].mxu0  ;;  %v4788_v41 = vpop.f32.mrb[125].mxu1  ;;  %v5303_v9 = vld [vmem:[#allocation18] ss:$0 sm:$0xff] }
 0x95a   :  { %5846 = vtanh.f32 %v4833_v13  ;;  %v4748_v61 = vadd.f32 %v4747_v19, %v4708_v62  ;;  %v4789_v50 = vadd.f32 %v4788_v41, %v4710_v22  ;;  %v4749_v32 = vpop.f32.mrb[126].mxu0  ;;  %v4790_v7 = vpop.f32.mrb[126].mxu1 }
 0x95b   :  { %v5300_v28 = vmul.f32 -1.442695, %v4746_v57  ;;  %v4750_v52 = vpop.f32.mrb[127].mxu0  ;;  %v4791_v20 = vpop.f32.mrb[127].mxu1 }
 0x95c   :  { %v5301_v21 = vmul.f32 -1.442695, %v4748_v61  ;;  %v5302_v40 = vmul.f32 -1.442695, %v4789_v50 }
 0x95d   :  { %5848 = vpow2.f32 %v5300_v28 }
 0x95e   :  { %5850 = vpow2.f32 %v5301_v21 }
 0x95f   :  { %5852 = vpow2.f32 %v5302_v40 }
 0x960   :  { %5854 = vtanh.f32 %v4787_v12 }
 0x964   :  { %v5847_v45 = vpop.eup %5846 }
 0x965   :  { %v4838_v33 = vmul.f32 %v5847_v45, %v5845_v24 }
 0x967   :  { %v5849_v15 = vpop.eup %5848  ;;  %v4841_v44 = vsel %vm3146_vm3, %v4838_v33, %v7890_v48  ;;  %v3901_v48 = vpop.permute.xlu1 %3900  ;;  %vm4613_vm3 = vcmp.eq.s32.totalorder %v4612_v6, 1 }
 0x968   :  { %v5851_v54 = vpop.eup %5850  ;;  %v4815_v18 = vadd.f32 1.0, %v5849_v15  ;;  %5438 = vmatmul.mubr.f32.vlgmr.msra.gmra.mrb[128].mxu1 %v4841_v44  ;;  %vm3902_vm15 = vcmp.eq.s32.totalorder %v3901_v48, 1 }
 0x969   :  { %v4821_v0 = vadd.f32 1.0, %v5851_v54  ;;  %v5853_v17 = vpop.eup %5852  ;;  %v3903_v27 = vsel %vm3902_vm15, %v8311_v60, %v3654_v47 }
 0x96a   :  { %5856 = vrcp.f32 %v4815_v18  ;;  %v5855_v39 = vpop.eup %5854  ;;  %v4828_v38 = vadd.f32 1.0, %v5853_v17  ;;  %v4140_v34 = vsel %vm4139_vm0, %v7603_v2, %v3903_v27 }
 0x96b   :  { %5858 = vrcp.f32 %v4821_v0  ;;  %v4375_v46 = vpop.permute.xlu1 %4374 }
 0x96c   :  { %5860 = vrcp.f32 %v4828_v38  ;;  %vm4376_vm2 = vcmp.eq.s32.totalorder %v4375_v46, 1 }
 0x96d   :  { %v4377_v30 = vsel %vm4376_vm2, %v7833_v14, %v4140_v34 }
 0x96e   :  { %v4614_v25 = vsel %vm4613_vm3, %v7935_v3, %v4377_v30 }
 0x96f   :  { %v4847_v58 = vpop.permute.xlu1 %4846 }
 0x970   :  { %vm4848_vm4 = vcmp.eq.s32.totalorder %v4847_v58, 1 }
 0x974   :  { %v5857_v8 = vpop.eup %5856 }
 0x975   :  { %v5859_v31 = vpop.eup %5858  ;;  %v4835_v35 = vmul.f32 %v5857_v8, %v5855_v39 }
 0x976   :  { %v4834_v55 = vmul.f32 %v5859_v31, %v7916_v23  ;;  %v5861_v1 = vpop.eup %5860 }
 0x978   :  { %v4836_v11 = vadd.f32 %v4835_v35, %v4834_v55 }
 0x97a   :  { %5862 = vtanh.f32 %v4836_v11 }
 0x984   :  { %v5863_v23 = vpop.eup %5862 }
 0x985   :  { %v4840_v56 = vmul.f32 %v5863_v23, %v5861_v1 }
 0x987   :  { %v4842_v16 = vsel %vm3139_vm1, %v4840_v56, %v7935_v3 }
 0x988   :  { %v4849_v51 = vsel %vm4848_vm4, %v4842_v16, %v4614_v25 }
 0x989   :  { %5403 = vmatmul.mubr.f32.vlgmr.msra.gmra.mrb[128].mxu0 %v4849_v51 }
 0xa3b   :  { %v5018_v43 = vpop.f32.mrb[128].mxu1 }
 0xa3c   :  { %v5439_v13 = vpop.f32.mrb[129].mxu1 }
 0xa5c   :  { %v4948_v29 = vpop.f32.mrb[128].mxu0 }
 0xa5d   :  { %v5019_v2 = vadd.f32 %v5018_v43, %v4948_v29  ;;  %v5404_v62 = vpop.f32.mrb[129].mxu0 }
 0xa5f   :  { %v5029_v22 = vadd.f32 %v5303_v9, %v5019_v2 }
 0xa61   :  { %5030 = vst [vmem:[#allocation19] sm:$0xff] %v5029_v22 }
 0xa62   :  { %6201 = shalt.err (!%p6198_p6)
}
 0xa63   :  { %s6202_s11 = scalar_lea.hbm %s7999_s9, 128 }
 0xa64   :  { %p6203_p7 = scmp.ne.s32.totalorder %s7999_s9, %s6202_s11  ;;  %p6206_p8 = scmp.lt.u32.totalorder %s6202_s11, %s7999_s9 }
 0xa66   :  { %p6208_p9 = pnand %p6206_p8, %p6203_p7 }
 0xa68   :  { %6211 = shalt.err (!%p6208_p9)
}
 0xa69   :  { %5040 = dma.vmem_to_hbm [thread:$0]  %s5038_s25, 128, %s7999_s9, [#allocation6]  }
 0xa6a   :  { %6222 = dma.done.wait [#allocation6], 128  }
 0xa6b   :  { %6223 = vsyncadd [#allocation6], 4294967168 }
 0xa6c   :  { %5044 = vsyncpa [#allocation5], 1 }
 0xa6d   :  { %5045 = vsyncpa [#allocation8], 1 }
 0xa6e   :  { %5046 = vsyncpa [#allocation11], 1 }
 0xa6f   :  { %5047 = vsyncpa [#allocation14], 1 }
 0xa70   :  { %5048 = vsyncpa [#allocation17], 1 }
 0xa71   :  { %5049 = vsyncpa [#allocation6], 1 }

</bundles_post_ra>
